<compile_context>
chip_gen: v7x
topology: tpu7x:2x2x1
jax: 0.10.0
libtpu: 0.0.40
codegen_flags: <defaults>
</compile_context>

<pallas_src>
import jax
import jax.numpy as jnp
from jax.experimental import pallas as pl
from jax.experimental.pallas import tpu as pltpu


def _round_up(v, m):
    return ((v + m - 1) // m) * m


# ----------------------------------------------------------------------------
# Shared fused conv3x3 + bias + residual body (VPU path for small C).
# read_rows(ci, ky) must return the (TH, W) float32 window equal to rows
# [ky, ky + TH) of the zero-row-padded input plane of channel ci for this tile
# (ky in {0, 1, 2}); read_rows(ci, 1) is therefore the original x tile and
# doubles as the residual.
# ----------------------------------------------------------------------------
def _conv3x3_bias_residual(read_rows, C, TH, W, w_ref, b_ref, o_ref):
    col = jax.lax.broadcasted_iota(jnp.int32, (TH, W), 1)
    first_col = col == 0
    last_col = col == W - 1

    # Accumulators start at the bias (saves a separate full-tile bias add).
    acc = [jnp.full((TH, W), b_ref[co], dtype=jnp.float32) for co in range(C)]

    for ci in range(C):
        for ky in range(3):
            center = read_rows(ci, ky)                        # (TH, W) f32
            # Column taps via lane rotation (XLU) + edge masking: keeps W
            # lane-dense instead of using a (W+2)-wide, lane-padded block.
            left = jnp.where(first_col, 0.0,
                             pltpu.roll(center, shift=1, axis=1))
            right = jnp.where(last_col, 0.0,
                              pltpu.roll(center, shift=W - 1, axis=1))
            for kx, tap in enumerate((left, center, right)):
                base = (ci * 3 + ky) * 3 + kx
                for co in range(C):
                    # SMEM scalar * vector -> scalar-broadcast VPU FMA.
                    acc[co] = acc[co] + w_ref[co * (C * 9) + base] * tap

    for co in range(C):
        o_ref[0, co, :, :] = (acc[co] + read_rows(co, 1)).astype(o_ref.dtype)


# ----------------------------------------------------------------------------
# Whole-image kernel: unpadded input, row taps also handled by rolls + masks.
# ----------------------------------------------------------------------------
def _shortcut_full_kernel(x_ref, w_ref, b_ref, o_ref):
    """x_ref: (1, C, H, W) VMEM; w_ref: (C*C*9,) SMEM; b_ref: (C,) SMEM."""
    C, H, W = o_ref.shape[1], o_ref.shape[2], o_ref.shape[3]
    row = jax.lax.broadcasted_iota(jnp.int32, (H, W), 0)
    first_row = row == 0
    last_row = row == H - 1

    def read_rows(ci, ky):
        plane = x_ref[0, ci, :, :].astype(jnp.float32)
        if ky == 1:
            return plane
        if ky == 0:   # row y <- x[y-1], row 0 <- 0   (sublane rotate on XLU)
            return jnp.where(first_row, 0.0,
                             pltpu.roll(plane, shift=1, axis=0))
        # ky == 2: row y <- x[y+1], last row <- 0
        return jnp.where(last_row, 0.0,
                         pltpu.roll(plane, shift=H - 1, axis=0))

    _conv3x3_bias_residual(read_rows, C, H, W, w_ref, b_ref, o_ref)


# ----------------------------------------------------------------------------
# Row-tiled fallback kernel: main tile + 2 halo rows staged once into scratch.
# ----------------------------------------------------------------------------
def _shortcut_tiled_kernel(xm_ref, xh_ref, w_ref, b_ref, o_ref, stage_ref):
    """xm_ref: (1, C, TH, W) row-padded rows [r*TH, r*TH+TH)
       xh_ref: (1, C, 8,  W) row-padded rows [(r+1)*TH, +8) (only rows 0..1 read)
       stage_ref: (C, TH+2, W) VMEM scratch."""
    C, TH, W = o_ref.shape[1], o_ref.shape[2], o_ref.shape[3]
    # Single staging copy per grid step (replaces the old per-channel concat).
    stage_ref[:, 0:TH, :] = xm_ref[0]
    stage_ref[:, TH:TH + 2, :] = xh_ref[0, :, 0:2, :]

    def read_rows(ci, ky):
        return stage_ref[ci, ky:ky + TH, :].astype(jnp.float32)

    _conv3x3_bias_residual(read_rows, C, TH, W, w_ref, b_ref, o_ref)


# ----------------------------------------------------------------------------
# Generation-aware VMEM sizing (lane/sublane padding + double buffering).
# ----------------------------------------------------------------------------
def _tpu_vmem_capacity_bytes():
    try:
        info = pltpu.get_tpu_info()
        for attr in ("vmem_capacity_bytes", "vmem_size_bytes", "vmem_bytes"):
            v = getattr(info, attr, None)
            if v:
                return int(v)
    except Exception:
        pass
    return 64 * 1024 * 1024            # conservative default (v7x per-core VMEM)


def _footprint_full(C, H, W, itemsize):
    blk = C * _round_up(H, 8) * _round_up(W, 128) * itemsize
    return 2 * (blk + blk)             # (input + output) x double buffering


def _footprint_tiled(C, tile_h, W, itemsize):
    lane = _round_up(W, 128)
    main = C * _round_up(tile_h, 8) * lane * itemsize
    halo = C * 8 * lane * itemsize
    out = C * _round_up(tile_h, 8) * lane * itemsize
    stage = C * _round_up(tile_h + 2, 8) * lane * itemsize
    return 2 * (main + halo + out) + stage


def _vmem_limit_bytes(cap, footprint):
    return int(min(cap * 3 // 4, max(32 * 1024 * 1024, footprint + (16 << 20))))


def _choose_tile_h(H, W, C, itemsize, budget, max_tile_h):
    best = 8
    th = 8
    while th <= max_tile_h:
        if H % th == 0 and _footprint_tiled(C, th, W, itemsize) <= budget:
            best = th
        th += 8
    return best


# ----------------------------------------------------------------------------
# Wrapper: out = x + conv3x3(x, w, b); NCHW in / NCHW out (PyTorch semantics).
# ----------------------------------------------------------------------------
def shortcut_block_forward(x, w_oihw, bias, *, tile_h=None):
    N, C, H, W = x.shape
    assert w_oihw.shape == (C, C, 3, 3) and bias.shape == (C,)
    assert H % 8 == 0, "H must be a multiple of 8 (sublane tiling)"
    # TODO(synk): large-C MXU path; the unrolled VPU loop is O(C^2) trace size.
    assert C <= 16, "scalar-broadcast VPU path is intended for small C"

    itemsize = x.dtype.itemsize
    cap = _tpu_vmem_capacity_bytes()
    budget = int(cap * 0.6)            # double-buffered block budget w/ headroom

    w_flat = w_oihw.astype(jnp.float32).reshape(-1)   # OIHW scalar table (SMEM)
    b_vec = bias.astype(jnp.float32)
    smem = pltpu.MemorySpace.SMEM

    # With N == 1, force >= 2 row tiles so both v7x TensorCores get work.
    force_split = (N == 1 and H >= 16)
    use_full = (tile_h is None and not force_split
                and _footprint_full(C, H, W, itemsize) <= budget)

    if use_full:
        # Whole (unpadded) image per grid step: no pad pass, no halo stream.
        limit = _vmem_limit_bytes(cap, _footprint_full(C, H, W, itemsize))
        return pl.pallas_call(
            _shortcut_full_kernel,
            out_shape=jax.ShapeDtypeStruct((N, C, H, W), x.dtype),
            grid_spec=pltpu.PrefetchScalarGridSpec(
                num_scalar_prefetch=0,
                grid=(N,),
                in_specs=[
                    pl.BlockSpec((1, C, H, W), lambda n: (n, 0, 0, 0)),
                    pl.BlockSpec(memory_space=smem),
                    pl.BlockSpec(memory_space=smem),
                ],
                out_specs=pl.BlockSpec((1, C, H, W), lambda n: (n, 0, 0, 0)),
            ),
            compiler_params=pltpu.CompilerParams(
                dimension_semantics=("parallel",),
                vmem_limit_bytes=limit,
            ),
        )(x, w_flat, b_vec)

    # ---- Row-tiled fallback (large H, or forced split when N == 1) ----
    if tile_h is None:
        max_th = H if not force_split else max(8, (H // 2) // 8 * 8)
        tile_h = _choose_tile_h(H, W, C, itemsize, budget, max_th)
    assert tile_h % 8 == 0 and H % tile_h == 0
    limit = _vmem_limit_bytes(cap, _footprint_tiled(C, tile_h, W, itemsize))

    # Cheap 2-row pad only; width stays lane-dense (columns rolled in-kernel).
    x_rp = jnp.pad(x, ((0, 0), (0, 0), (1, 1), (0, 0)))
    n_tiles = H // tile_h
    hb = tile_h // 8   # main tile height measured in 8-row halo blocks

    # NOTE: x_rp is intentionally passed twice (main tile view + 8-row halo
    # view of the SAME array); the kernel only reads halo rows 0..1, which are
    # always in bounds of the (H+2)-row padded array.
    return pl.pallas_call(
        _shortcut_tiled_kernel,
        out_shape=jax.ShapeDtypeStruct((N, C, H, W), x.dtype),
        grid_spec=pltpu.PrefetchScalarGridSpec(
            num_scalar_prefetch=0,
            grid=(N, n_tiles),
            in_specs=[
                pl.BlockSpec((1, C, tile_h, W), lambda n, r: (n, 0, r, 0)),
                pl.BlockSpec((1, C, 8, W), lambda n, r: (n, 0, (r + 1) * hb, 0)),
                pl.BlockSpec(memory_space=smem),
                pl.BlockSpec(memory_space=smem),
            ],
            out_specs=pl.BlockSpec((1, C, tile_h, W), lambda n, r: (n, 0, r, 0)),
            scratch_shapes=[pltpu.VMEM((C, tile_h + 2, W), x.dtype)],
        ),
        compiler_params=pltpu.CompilerParams(
            dimension_semantics=("parallel", "parallel"),
            vmem_limit_bytes=limit,
        ),
    )(x_rp, x_rp, w_flat, b_vec)


if __name__ == "__main__":
    key = jax.random.PRNGKey(0)
    k_x, k_w, k_b = jax.random.split(key, 3)

    # W = 128 puts the full 128-lane axis to work (lane-dense loads/stores).
    N, C, H, W = 2, 4, 16, 128
    x = jax.random.normal(k_x, (N, C, H, W), dtype=jnp.float32)
    # Deterministic synthetic parameters for the Conv2d(C, C, 3, padding=1).
    w = jax.random.normal(k_w, (C, C, 3, 3), dtype=jnp.float32) * 0.1
    b = jax.random.normal(k_b, (C,), dtype=jnp.float32) * 0.1

    fwd = jax.jit(shortcut_block_forward, static_argnames=("tile_h",))

    def ref_fwd(xx):
        conv = jax.lax.conv_general_dilated(
            xx, w, window_strides=(1, 1), padding="SAME",
            dimension_numbers=("NCHW", "OIHW", "NCHW"))
        return xx + conv + b[None, :, None, None]

    # 1) Default whole-image path (no padding pass, grid=(N,)).
    out = jax.block_until_ready(fwd(x, w, b))
    assert jnp.allclose(out, ref_fwd(x), atol=1e-4, rtol=1e-4)

    # 2) Forced row-tiled path (halo stream + staged VMEM scratch).
    out_t = jax.block_until_ready(fwd(x, w, b, tile_h=8))
    assert jnp.allclose(out_t, ref_fwd(x), atol=1e-4, rtol=1e-4)

    # 3) Narrow, non-lane-aligned width (lane-starved but correct).
    x2 = jax.random.normal(k_x, (2, 4, 16, 16), dtype=jnp.float32)
    out2 = jax.block_until_ready(fwd(x2, w, b))
    assert jnp.allclose(out2, ref_fwd(x2), atol=1e-4, rtol=1e-4)

    # 4) N == 1 forces >= 2 row tiles (keeps both v7x TensorCores busy).
    x3 = x[:1]
    out3 = jax.block_until_ready(fwd(x3, w, b))
    assert jnp.allclose(out3, ref_fwd(x3), atol=1e-4, rtol=1e-4)

    print("KERNEL_OK")
</pallas_src>

<mosaic_0001>
module attributes {stable_mosaic.version = 11 : i64} {
  func.func @_shortcut_full_kernel(%arg0: i32, %arg1: memref<1x4x16x128xf32, #tpu.memory_space<vmem>>, %arg2: memref<144xf32, #tpu.memory_space<smem>>, %arg3: memref<4xf32, #tpu.memory_space<smem>>, %arg4: memref<1x4x16x128xf32, #tpu.memory_space<vmem>>) attributes {dimension_semantics = [#tpu.dimension_semantics<parallel>], iteration_bounds = array<i64: 2>, scalar_prefetch = 0 : i64, scratch_operands = 0 : i64, tpu.core_type = #tpu.core_type<tc>, window_params = [{transform_indices = @transform_0, window_bounds = array<i64: 1, 4, 16, 128>}, {transform_indices = @transform_1, window_bounds = array<i64: 144>}, {transform_indices = @transform_2, window_bounds = array<i64: 4>}, {transform_indices = @transform_3, window_bounds = array<i64: 1, 4, 16, 128>}]} {
    %0 = tpu.iota {dimensions = array<i32: 0>} : vector<16x128xi32>
    %c0_i32 = arith.constant 0 : i32
    %1 = vector.broadcast %c0_i32 : i32 to vector<16x128xi32>
    %2 = arith.cmpi eq, %0, %1 : vector<16x128xi32>
    %c15_i32 = arith.constant 15 : i32
    %3 = vector.broadcast %c15_i32 : i32 to vector<16x128xi32>
    %4 = arith.cmpi eq, %0, %3 : vector<16x128xi32>
    %5 = tpu.iota {dimensions = array<i32: 1>} : vector<16x128xi32>
    %c0_i32_0 = arith.constant 0 : i32
    %6 = vector.broadcast %c0_i32_0 : i32 to vector<16x128xi32>
    %7 = arith.cmpi eq, %5, %6 : vector<16x128xi32>
    %c127_i32 = arith.constant 127 : i32
    %8 = vector.broadcast %c127_i32 : i32 to vector<16x128xi32>
    %9 = arith.cmpi eq, %5, %8 : vector<16x128xi32>
    %c0 = arith.constant 0 : index
    %10 = memref.load %arg3[%c0] : memref<4xf32, #tpu.memory_space<smem>>
    %11 = vector.broadcast %10 : f32 to vector<16x128xf32>
    %c1 = arith.constant 1 : index
    %12 = memref.load %arg3[%c1] : memref<4xf32, #tpu.memory_space<smem>>
    %13 = vector.broadcast %12 : f32 to vector<16x128xf32>
    %c2 = arith.constant 2 : index
    %14 = memref.load %arg3[%c2] : memref<4xf32, #tpu.memory_space<smem>>
    %15 = vector.broadcast %14 : f32 to vector<16x128xf32>
    %c3 = arith.constant 3 : index
    %16 = memref.load %arg3[%c3] : memref<4xf32, #tpu.memory_space<smem>>
    %17 = vector.broadcast %16 : f32 to vector<16x128xf32>
    %c0_1 = arith.constant 0 : index
    %c0_2 = arith.constant 0 : index
    %c0_3 = arith.constant 0 : index
    %c0_4 = arith.constant 0 : index
    %18 = vector.load %arg1[%c0_1, %c0_2, %c0_3, %c0_4] : memref<1x4x16x128xf32, #tpu.memory_space<vmem>>, vector<1x1x16x128xf32>
    %19 = vector.shape_cast %18 : vector<1x1x16x128xf32> to vector<16x128xf32>
    %c1_i32 = arith.constant 1 : i32
    %20 = tpu.dynamic_rotate %19 by %c1_i32 dim 0 : vector<16x128xf32>, i32 -> vector<16x128xf32>
    %cst = arith.constant 0.000000e+00 : f32
    %21 = vector.broadcast %cst : f32 to vector<16x128xf32>
    %22 = arith.select %2, %21, %20 : vector<16x128xi1>, vector<16x128xf32>
    %c1_i32_5 = arith.constant 1 : i32
    %23 = tpu.dynamic_rotate %22 by %c1_i32_5 dim 1 : vector<16x128xf32>, i32 -> vector<16x128xf32>
    %cst_6 = arith.constant 0.000000e+00 : f32
    %24 = vector.broadcast %cst_6 : f32 to vector<16x128xf32>
    %25 = arith.select %7, %24, %23 : vector<16x128xi1>, vector<16x128xf32>
    %c127_i32_7 = arith.constant 127 : i32
    %26 = tpu.dynamic_rotate %22 by %c127_i32_7 dim 1 : vector<16x128xf32>, i32 -> vector<16x128xf32>
    %cst_8 = arith.constant 0.000000e+00 : f32
    %27 = vector.broadcast %cst_8 : f32 to vector<16x128xf32>
    %28 = arith.select %9, %27, %26 : vector<16x128xi1>, vector<16x128xf32>
    %c0_9 = arith.constant 0 : index
    %29 = memref.load %arg2[%c0_9] : memref<144xf32, #tpu.memory_space<smem>>
    %30 = vector.broadcast %29 : f32 to vector<16x128xf32>
    %31 = arith.mulf %30, %25 : vector<16x128xf32>
    %32 = arith.addf %11, %31 : vector<16x128xf32>
    %c36 = arith.constant 36 : index
    %33 = memref.load %arg2[%c36] : memref<144xf32, #tpu.memory_space<smem>>
    %34 = vector.broadcast %33 : f32 to vector<16x128xf32>
    %35 = arith.mulf %34, %25 : vector<16x128xf32>
    %36 = arith.addf %13, %35 : vector<16x128xf32>
    %c72 = arith.constant 72 : index
    %37 = memref.load %arg2[%c72] : memref<144xf32, #tpu.memory_space<smem>>
    %38 = vector.broadcast %37 : f32 to vector<16x128xf32>
    %39 = arith.mulf %38, %25 : vector<16x128xf32>
    %40 = arith.addf %15, %39 : vector<16x128xf32>
    %c108 = arith.constant 108 : index
    %41 = memref.load %arg2[%c108] : memref<144xf32, #tpu.memory_space<smem>>
    %42 = vector.broadcast %41 : f32 to vector<16x128xf32>
    %43 = arith.mulf %42, %25 : vector<16x128xf32>
    %44 = arith.addf %17, %43 : vector<16x128xf32>
    %c1_10 = arith.constant 1 : index
    %45 = memref.load %arg2[%c1_10] : memref<144xf32, #tpu.memory_space<smem>>
    %46 = vector.broadcast %45 : f32 to vector<16x128xf32>
    %47 = arith.mulf %46, %22 : vector<16x128xf32>
    %48 = arith.addf %32, %47 : vector<16x128xf32>
    %c37 = arith.constant 37 : index
    %49 = memref.load %arg2[%c37] : memref<144xf32, #tpu.memory_space<smem>>
    %50 = vector.broadcast %49 : f32 to vector<16x128xf32>
    %51 = arith.mulf %50, %22 : vector<16x128xf32>
    %52 = arith.addf %36, %51 : vector<16x128xf32>
    %c73 = arith.constant 73 : index
    %53 = memref.load %arg2[%c73] : memref<144xf32, #tpu.memory_space<smem>>
    %54 = vector.broadcast %53 : f32 to vector<16x128xf32>
    %55 = arith.mulf %54, %22 : vector<16x128xf32>
    %56 = arith.addf %40, %55 : vector<16x128xf32>
    %c109 = arith.constant 109 : index
    %57 = memref.load %arg2[%c109] : memref<144xf32, #tpu.memory_space<smem>>
    %58 = vector.broadcast %57 : f32 to vector<16x128xf32>
    %59 = arith.mulf %58, %22 : vector<16x128xf32>
    %60 = arith.addf %44, %59 : vector<16x128xf32>
    %c2_11 = arith.constant 2 : index
    %61 = memref.load %arg2[%c2_11] : memref<144xf32, #tpu.memory_space<smem>>
    %62 = vector.broadcast %61 : f32 to vector<16x128xf32>
    %63 = arith.mulf %62, %28 : vector<16x128xf32>
    %64 = arith.addf %48, %63 : vector<16x128xf32>
    %c38 = arith.constant 38 : index
    %65 = memref.load %arg2[%c38] : memref<144xf32, #tpu.memory_space<smem>>
    %66 = vector.broadcast %65 : f32 to vector<16x128xf32>
    %67 = arith.mulf %66, %28 : vector<16x128xf32>
    %68 = arith.addf %52, %67 : vector<16x128xf32>
    %c74 = arith.constant 74 : index
    %69 = memref.load %arg2[%c74] : memref<144xf32, #tpu.memory_space<smem>>
    %70 = vector.broadcast %69 : f32 to vector<16x128xf32>
    %71 = arith.mulf %70, %28 : vector<16x128xf32>
    %72 = arith.addf %56, %71 : vector<16x128xf32>
    %c110 = arith.constant 110 : index
    %73 = memref.load %arg2[%c110] : memref<144xf32, #tpu.memory_space<smem>>
    %74 = vector.broadcast %73 : f32 to vector<16x128xf32>
    %75 = arith.mulf %74, %28 : vector<16x128xf32>
    %76 = arith.addf %60, %75 : vector<16x128xf32>
    %c0_12 = arith.constant 0 : index
    %c0_13 = arith.constant 0 : index
    %c0_14 = arith.constant 0 : index
    %c0_15 = arith.constant 0 : index
    %77 = vector.load %arg1[%c0_12, %c0_13, %c0_14, %c0_15] : memref<1x4x16x128xf32, #tpu.memory_space<vmem>>, vector<1x1x16x128xf32>
    %78 = vector.shape_cast %77 : vector<1x1x16x128xf32> to vector<16x128xf32>
    %c1_i32_16 = arith.constant 1 : i32
    %79 = tpu.dynamic_rotate %78 by %c1_i32_16 dim 1 : vector<16x128xf32>, i32 -> vector<16x128xf32>
    %cst_17 = arith.constant 0.000000e+00 : f32
    %80 = vector.broadcast %cst_17 : f32 to vector<16x128xf32>
    %81 = arith.select %7, %80, %79 : vector<16x128xi1>, vector<16x128xf32>
    %c127_i32_18 = arith.constant 127 : i32
    %82 = tpu.dynamic_rotate %78 by %c127_i32_18 dim 1 : vector<16x128xf32>, i32 -> vector<16x128xf32>
    %cst_19 = arith.constant 0.000000e+00 : f32
    %83 = vector.broadcast %cst_19 : f32 to vector<16x128xf32>
    %84 = arith.select %9, %83, %82 : vector<16x128xi1>, vector<16x128xf32>
    %c3_20 = arith.constant 3 : index
    %85 = memref.load %arg2[%c3_20] : memref<144xf32, #tpu.memory_space<smem>>
    %86 = vector.broadcast %85 : f32 to vector<16x128xf32>
    %87 = arith.mulf %86, %81 : vector<16x128xf32>
    %88 = arith.addf %64, %87 : vector<16x128xf32>
    %c39 = arith.constant 39 : index
    %89 = memref.load %arg2[%c39] : memref<144xf32, #tpu.memory_space<smem>>
    %90 = vector.broadcast %89 : f32 to vector<16x128xf32>
    %91 = arith.mulf %90, %81 : vector<16x128xf32>
    %92 = arith.addf %68, %91 : vector<16x128xf32>
    %c75 = arith.constant 75 : index
    %93 = memref.load %arg2[%c75] : memref<144xf32, #tpu.memory_space<smem>>
    %94 = vector.broadcast %93 : f32 to vector<16x128xf32>
    %95 = arith.mulf %94, %81 : vector<16x128xf32>
    %96 = arith.addf %72, %95 : vector<16x128xf32>
    %c111 = arith.constant 111 : index
    %97 = memref.load %arg2[%c111] : memref<144xf32, #tpu.memory_space<smem>>
    %98 = vector.broadcast %97 : f32 to vector<16x128xf32>
    %99 = arith.mulf %98, %81 : vector<16x128xf32>
    %100 = arith.addf %76, %99 : vector<16x128xf32>
    %c4 = arith.constant 4 : index
    %101 = memref.load %arg2[%c4] : memref<144xf32, #tpu.memory_space<smem>>
    %102 = vector.broadcast %101 : f32 to vector<16x128xf32>
    %103 = arith.mulf %102, %78 : vector<16x128xf32>
    %104 = arith.addf %88, %103 : vector<16x128xf32>
    %c40 = arith.constant 40 : index
    %105 = memref.load %arg2[%c40] : memref<144xf32, #tpu.memory_space<smem>>
    %106 = vector.broadcast %105 : f32 to vector<16x128xf32>
    %107 = arith.mulf %106, %78 : vector<16x128xf32>
    %108 = arith.addf %92, %107 : vector<16x128xf32>
    %c76 = arith.constant 76 : index
    %109 = memref.load %arg2[%c76] : memref<144xf32, #tpu.memory_space<smem>>
    %110 = vector.broadcast %109 : f32 to vector<16x128xf32>
    %111 = arith.mulf %110, %78 : vector<16x128xf32>
    %112 = arith.addf %96, %111 : vector<16x128xf32>
    %c112 = arith.constant 112 : index
    %113 = memref.load %arg2[%c112] : memref<144xf32, #tpu.memory_space<smem>>
    %114 = vector.broadcast %113 : f32 to vector<16x128xf32>
    %115 = arith.mulf %114, %78 : vector<16x128xf32>
    %116 = arith.addf %100, %115 : vector<16x128xf32>
    %c5 = arith.constant 5 : index
    %117 = memref.load %arg2[%c5] : memref<144xf32, #tpu.memory_space<smem>>
    %118 = vector.broadcast %117 : f32 to vector<16x128xf32>
    %119 = arith.mulf %118, %84 : vector<16x128xf32>
    %120 = arith.addf %104, %119 : vector<16x128xf32>
    %c41 = arith.constant 41 : index
    %121 = memref.load %arg2[%c41] : memref<144xf32, #tpu.memory_space<smem>>
    %122 = vector.broadcast %121 : f32 to vector<16x128xf32>
    %123 = arith.mulf %122, %84 : vector<16x128xf32>
    %124 = arith.addf %108, %123 : vector<16x128xf32>
    %c77 = arith.constant 77 : index
    %125 = memref.load %arg2[%c77] : memref<144xf32, #tpu.memory_space<smem>>
    %126 = vector.broadcast %125 : f32 to vector<16x128xf32>
    %127 = arith.mulf %126, %84 : vector<16x128xf32>
    %128 = arith.addf %112, %127 : vector<16x128xf32>
    %c113 = arith.constant 113 : index
    %129 = memref.load %arg2[%c113] : memref<144xf32, #tpu.memory_space<smem>>
    %130 = vector.broadcast %129 : f32 to vector<16x128xf32>
    %131 = arith.mulf %130, %84 : vector<16x128xf32>
    %132 = arith.addf %116, %131 : vector<16x128xf32>
    %c0_21 = arith.constant 0 : index
    %c0_22 = arith.constant 0 : index
    %c0_23 = arith.constant 0 : index
    %c0_24 = arith.constant 0 : index
    %133 = vector.load %arg1[%c0_21, %c0_22, %c0_23, %c0_24] : memref<1x4x16x128xf32, #tpu.memory_space<vmem>>, vector<1x1x16x128xf32>
    %134 = vector.shape_cast %133 : vector<1x1x16x128xf32> to vector<16x128xf32>
    %c15_i32_25 = arith.constant 15 : i32
    %135 = tpu.dynamic_rotate %134 by %c15_i32_25 dim 0 : vector<16x128xf32>, i32 -> vector<16x128xf32>
    %cst_26 = arith.constant 0.000000e+00 : f32
    %136 = vector.broadcast %cst_26 : f32 to vector<16x128xf32>
    %137 = arith.select %4, %136, %135 : vector<16x128xi1>, vector<16x128xf32>
    %c1_i32_27 = arith.constant 1 : i32
    %138 = tpu.dynamic_rotate %137 by %c1_i32_27 dim 1 : vector<16x128xf32>, i32 -> vector<16x128xf32>
    %cst_28 = arith.constant 0.000000e+00 : f32
    %139 = vector.broadcast %cst_28 : f32 to vector<16x128xf32>
    %140 = arith.select %7, %139, %138 : vector<16x128xi1>, vector<16x128xf32>
    %c127_i32_29 = arith.constant 127 : i32
    %141 = tpu.dynamic_rotate %137 by %c127_i32_29 dim 1 : vector<16x128xf32>, i32 -> vector<16x128xf32>
    %cst_30 = arith.constant 0.000000e+00 : f32
    %142 = vector.broadcast %cst_30 : f32 to vector<16x128xf32>
    %143 = arith.select %9, %142, %141 : vector<16x128xi1>, vector<16x128xf32>
    %c6 = arith.constant 6 : index
    %144 = memref.load %arg2[%c6] : memref<144xf32, #tpu.memory_space<smem>>
    %145 = vector.broadcast %144 : f32 to vector<16x128xf32>
    %146 = arith.mulf %145, %140 : vector<16x128xf32>
    %147 = arith.addf %120, %146 : vector<16x128xf32>
    %c42 = arith.constant 42 : index
    %148 = memref.load %arg2[%c42] : memref<144xf32, #tpu.memory_space<smem>>
    %149 = vector.broadcast %148 : f32 to vector<16x128xf32>
    %150 = arith.mulf %149, %140 : vector<16x128xf32>
    %151 = arith.addf %124, %150 : vector<16x128xf32>
    %c78 = arith.constant 78 : index
    %152 = memref.load %arg2[%c78] : memref<144xf32, #tpu.memory_space<smem>>
    %153 = vector.broadcast %152 : f32 to vector<16x128xf32>
    %154 = arith.mulf %153, %140 : vector<16x128xf32>
    %155 = arith.addf %128, %154 : vector<16x128xf32>
    %c114 = arith.constant 114 : index
    %156 = memref.load %arg2[%c114] : memref<144xf32, #tpu.memory_space<smem>>
    %157 = vector.broadcast %156 : f32 to vector<16x128xf32>
    %158 = arith.mulf %157, %140 : vector<16x128xf32>
    %159 = arith.addf %132, %158 : vector<16x128xf32>
    %c7 = arith.constant 7 : index
    %160 = memref.load %arg2[%c7] : memref<144xf32, #tpu.memory_space<smem>>
    %161 = vector.broadcast %160 : f32 to vector<16x128xf32>
    %162 = arith.mulf %161, %137 : vector<16x128xf32>
    %163 = arith.addf %147, %162 : vector<16x128xf32>
    %c43 = arith.constant 43 : index
    %164 = memref.load %arg2[%c43] : memref<144xf32, #tpu.memory_space<smem>>
    %165 = vector.broadcast %164 : f32 to vector<16x128xf32>
    %166 = arith.mulf %165, %137 : vector<16x128xf32>
    %167 = arith.addf %151, %166 : vector<16x128xf32>
    %c79 = arith.constant 79 : index
    %168 = memref.load %arg2[%c79] : memref<144xf32, #tpu.memory_space<smem>>
    %169 = vector.broadcast %168 : f32 to vector<16x128xf32>
    %170 = arith.mulf %169, %137 : vector<16x128xf32>
    %171 = arith.addf %155, %170 : vector<16x128xf32>
    %c115 = arith.constant 115 : index
    %172 = memref.load %arg2[%c115] : memref<144xf32, #tpu.memory_space<smem>>
    %173 = vector.broadcast %172 : f32 to vector<16x128xf32>
    %174 = arith.mulf %173, %137 : vector<16x128xf32>
    %175 = arith.addf %159, %174 : vector<16x128xf32>
    %c8 = arith.constant 8 : index
    %176 = memref.load %arg2[%c8] : memref<144xf32, #tpu.memory_space<smem>>
    %177 = vector.broadcast %176 : f32 to vector<16x128xf32>
    %178 = arith.mulf %177, %143 : vector<16x128xf32>
    %179 = arith.addf %163, %178 : vector<16x128xf32>
    %c44 = arith.constant 44 : index
    %180 = memref.load %arg2[%c44] : memref<144xf32, #tpu.memory_space<smem>>
    %181 = vector.broadcast %180 : f32 to vector<16x128xf32>
    %182 = arith.mulf %181, %143 : vector<16x128xf32>
    %183 = arith.addf %167, %182 : vector<16x128xf32>
    %c80 = arith.constant 80 : index
    %184 = memref.load %arg2[%c80] : memref<144xf32, #tpu.memory_space<smem>>
    %185 = vector.broadcast %184 : f32 to vector<16x128xf32>
    %186 = arith.mulf %185, %143 : vector<16x128xf32>
    %187 = arith.addf %171, %186 : vector<16x128xf32>
    %c116 = arith.constant 116 : index
    %188 = memref.load %arg2[%c116] : memref<144xf32, #tpu.memory_space<smem>>
    %189 = vector.broadcast %188 : f32 to vector<16x128xf32>
    %190 = arith.mulf %189, %143 : vector<16x128xf32>
    %191 = arith.addf %175, %190 : vector<16x128xf32>
    %c0_31 = arith.constant 0 : index
    %c1_32 = arith.constant 1 : index
    %c0_33 = arith.constant 0 : index
    %c0_34 = arith.constant 0 : index
    %192 = vector.load %arg1[%c0_31, %c1_32, %c0_33, %c0_34] : memref<1x4x16x128xf32, #tpu.memory_space<vmem>>, vector<1x1x16x128xf32>
    %193 = vector.shape_cast %192 : vector<1x1x16x128xf32> to vector<16x128xf32>
    %c1_i32_35 = arith.constant 1 : i32
    %194 = tpu.dynamic_rotate %193 by %c1_i32_35 dim 0 : vector<16x128xf32>, i32 -> vector<16x128xf32>
    %cst_36 = arith.constant 0.000000e+00 : f32
    %195 = vector.broadcast %cst_36 : f32 to vector<16x128xf32>
    %196 = arith.select %2, %195, %194 : vector<16x128xi1>, vector<16x128xf32>
    %c1_i32_37 = arith.constant 1 : i32
    %197 = tpu.dynamic_rotate %196 by %c1_i32_37 dim 1 : vector<16x128xf32>, i32 -> vector<16x128xf32>
    %cst_38 = arith.constant 0.000000e+00 : f32
    %198 = vector.broadcast %cst_38 : f32 to vector<16x128xf32>
    %199 = arith.select %7, %198, %197 : vector<16x128xi1>, vector<16x128xf32>
    %c127_i32_39 = arith.constant 127 : i32
    %200 = tpu.dynamic_rotate %196 by %c127_i32_39 dim 1 : vector<16x128xf32>, i32 -> vector<16x128xf32>
    %cst_40 = arith.constant 0.000000e+00 : f32
    %201 = vector.broadcast %cst_40 : f32 to vector<16x128xf32>
    %202 = arith.select %9, %201, %200 : vector<16x128xi1>, vector<16x128xf32>
    %c9 = arith.constant 9 : index
    %203 = memref.load %arg2[%c9] : memref<144xf32, #tpu.memory_space<smem>>
    %204 = vector.broadcast %203 : f32 to vector<16x128xf32>
    %205 = arith.mulf %204, %199 : vector<16x128xf32>
    %206 = arith.addf %179, %205 : vector<16x128xf32>
    %c45 = arith.constant 45 : index
    %207 = memref.load %arg2[%c45] : memref<144xf32, #tpu.memory_space<smem>>
    %208 = vector.broadcast %207 : f32 to vector<16x128xf32>
    %209 = arith.mulf %208, %199 : vector<16x128xf32>
    %210 = arith.addf %183, %209 : vector<16x128xf32>
    %c81 = arith.constant 81 : index
    %211 = memref.load %arg2[%c81] : memref<144xf32, #tpu.memory_space<smem>>
    %212 = vector.broadcast %211 : f32 to vector<16x128xf32>
    %213 = arith.mulf %212, %199 : vector<16x128xf32>
    %214 = arith.addf %187, %213 : vector<16x128xf32>
    %c117 = arith.constant 117 : index
    %215 = memref.load %arg2[%c117] : memref<144xf32, #tpu.memory_space<smem>>
    %216 = vector.broadcast %215 : f32 to vector<16x128xf32>
    %217 = arith.mulf %216, %199 : vector<16x128xf32>
    %218 = arith.addf %191, %217 : vector<16x128xf32>
    %c10 = arith.constant 10 : index
    %219 = memref.load %arg2[%c10] : memref<144xf32, #tpu.memory_space<smem>>
    %220 = vector.broadcast %219 : f32 to vector<16x128xf32>
    %221 = arith.mulf %220, %196 : vector<16x128xf32>
    %222 = arith.addf %206, %221 : vector<16x128xf32>
    %c46 = arith.constant 46 : index
    %223 = memref.load %arg2[%c46] : memref<144xf32, #tpu.memory_space<smem>>
    %224 = vector.broadcast %223 : f32 to vector<16x128xf32>
    %225 = arith.mulf %224, %196 : vector<16x128xf32>
    %226 = arith.addf %210, %225 : vector<16x128xf32>
    %c82 = arith.constant 82 : index
    %227 = memref.load %arg2[%c82] : memref<144xf32, #tpu.memory_space<smem>>
    %228 = vector.broadcast %227 : f32 to vector<16x128xf32>
    %229 = arith.mulf %228, %196 : vector<16x128xf32>
    %230 = arith.addf %214, %229 : vector<16x128xf32>
    %c118 = arith.constant 118 : index
    %231 = memref.load %arg2[%c118] : memref<144xf32, #tpu.memory_space<smem>>
    %232 = vector.broadcast %231 : f32 to vector<16x128xf32>
    %233 = arith.mulf %232, %196 : vector<16x128xf32>
    %234 = arith.addf %218, %233 : vector<16x128xf32>
    %c11 = arith.constant 11 : index
    %235 = memref.load %arg2[%c11] : memref<144xf32, #tpu.memory_space<smem>>
    %236 = vector.broadcast %235 : f32 to vector<16x128xf32>
    %237 = arith.mulf %236, %202 : vector<16x128xf32>
    %238 = arith.addf %222, %237 : vector<16x128xf32>
    %c47 = arith.constant 47 : index
    %239 = memref.load %arg2[%c47] : memref<144xf32, #tpu.memory_space<smem>>
    %240 = vector.broadcast %239 : f32 to vector<16x128xf32>
    %241 = arith.mulf %240, %202 : vector<16x128xf32>
    %242 = arith.addf %226, %241 : vector<16x128xf32>
    %c83 = arith.constant 83 : index
    %243 = memref.load %arg2[%c83] : memref<144xf32, #tpu.memory_space<smem>>
    %244 = vector.broadcast %243 : f32 to vector<16x128xf32>
    %245 = arith.mulf %244, %202 : vector<16x128xf32>
    %246 = arith.addf %230, %245 : vector<16x128xf32>
    %c119 = arith.constant 119 : index
    %247 = memref.load %arg2[%c119] : memref<144xf32, #tpu.memory_space<smem>>
    %248 = vector.broadcast %247 : f32 to vector<16x128xf32>
    %249 = arith.mulf %248, %202 : vector<16x128xf32>
    %250 = arith.addf %234, %249 : vector<16x128xf32>
    %c0_41 = arith.constant 0 : index
    %c1_42 = arith.constant 1 : index
    %c0_43 = arith.constant 0 : index
    %c0_44 = arith.constant 0 : index
    %251 = vector.load %arg1[%c0_41, %c1_42, %c0_43, %c0_44] : memref<1x4x16x128xf32, #tpu.memory_space<vmem>>, vector<1x1x16x128xf32>
    %252 = vector.shape_cast %251 : vector<1x1x16x128xf32> to vector<16x128xf32>
    %c1_i32_45 = arith.constant 1 : i32
    %253 = tpu.dynamic_rotate %252 by %c1_i32_45 dim 1 : vector<16x128xf32>, i32 -> vector<16x128xf32>
    %cst_46 = arith.constant 0.000000e+00 : f32
    %254 = vector.broadcast %cst_46 : f32 to vector<16x128xf32>
    %255 = arith.select %7, %254, %253 : vector<16x128xi1>, vector<16x128xf32>
    %c127_i32_47 = arith.constant 127 : i32
    %256 = tpu.dynamic_rotate %252 by %c127_i32_47 dim 1 : vector<16x128xf32>, i32 -> vector<16x128xf32>
    %cst_48 = arith.constant 0.000000e+00 : f32
    %257 = vector.broadcast %cst_48 : f32 to vector<16x128xf32>
    %258 = arith.select %9, %257, %256 : vector<16x128xi1>, vector<16x128xf32>
    %c12 = arith.constant 12 : index
    %259 = memref.load %arg2[%c12] : memref<144xf32, #tpu.memory_space<smem>>
    %260 = vector.broadcast %259 : f32 to vector<16x128xf32>
    %261 = arith.mulf %260, %255 : vector<16x128xf32>
    %262 = arith.addf %238, %261 : vector<16x128xf32>
    %c48 = arith.constant 48 : index
    %263 = memref.load %arg2[%c48] : memref<144xf32, #tpu.memory_space<smem>>
    %264 = vector.broadcast %263 : f32 to vector<16x128xf32>
    %265 = arith.mulf %264, %255 : vector<16x128xf32>
    %266 = arith.addf %242, %265 : vector<16x128xf32>
    %c84 = arith.constant 84 : index
    %267 = memref.load %arg2[%c84] : memref<144xf32, #tpu.memory_space<smem>>
    %268 = vector.broadcast %267 : f32 to vector<16x128xf32>
    %269 = arith.mulf %268, %255 : vector<16x128xf32>
    %270 = arith.addf %246, %269 : vector<16x128xf32>
    %c120 = arith.constant 120 : index
    %271 = memref.load %arg2[%c120] : memref<144xf32, #tpu.memory_space<smem>>
    %272 = vector.broadcast %271 : f32 to vector<16x128xf32>
    %273 = arith.mulf %272, %255 : vector<16x128xf32>
    %274 = arith.addf %250, %273 : vector<16x128xf32>
    %c13 = arith.constant 13 : index
    %275 = memref.load %arg2[%c13] : memref<144xf32, #tpu.memory_space<smem>>
    %276 = vector.broadcast %275 : f32 to vector<16x128xf32>
    %277 = arith.mulf %276, %252 : vector<16x128xf32>
    %278 = arith.addf %262, %277 : vector<16x128xf32>
    %c49 = arith.constant 49 : index
    %279 = memref.load %arg2[%c49] : memref<144xf32, #tpu.memory_space<smem>>
    %280 = vector.broadcast %279 : f32 to vector<16x128xf32>
    %281 = arith.mulf %280, %252 : vector<16x128xf32>
    %282 = arith.addf %266, %281 : vector<16x128xf32>
    %c85 = arith.constant 85 : index
    %283 = memref.load %arg2[%c85] : memref<144xf32, #tpu.memory_space<smem>>
    %284 = vector.broadcast %283 : f32 to vector<16x128xf32>
    %285 = arith.mulf %284, %252 : vector<16x128xf32>
    %286 = arith.addf %270, %285 : vector<16x128xf32>
    %c121 = arith.constant 121 : index
    %287 = memref.load %arg2[%c121] : memref<144xf32, #tpu.memory_space<smem>>
    %288 = vector.broadcast %287 : f32 to vector<16x128xf32>
    %289 = arith.mulf %288, %252 : vector<16x128xf32>
    %290 = arith.addf %274, %289 : vector<16x128xf32>
    %c14 = arith.constant 14 : index
    %291 = memref.load %arg2[%c14] : memref<144xf32, #tpu.memory_space<smem>>
    %292 = vector.broadcast %291 : f32 to vector<16x128xf32>
    %293 = arith.mulf %292, %258 : vector<16x128xf32>
    %294 = arith.addf %278, %293 : vector<16x128xf32>
    %c50 = arith.constant 50 : index
    %295 = memref.load %arg2[%c50] : memref<144xf32, #tpu.memory_space<smem>>
    %296 = vector.broadcast %295 : f32 to vector<16x128xf32>
    %297 = arith.mulf %296, %258 : vector<16x128xf32>
    %298 = arith.addf %282, %297 : vector<16x128xf32>
    %c86 = arith.constant 86 : index
    %299 = memref.load %arg2[%c86] : memref<144xf32, #tpu.memory_space<smem>>
    %300 = vector.broadcast %299 : f32 to vector<16x128xf32>
    %301 = arith.mulf %300, %258 : vector<16x128xf32>
    %302 = arith.addf %286, %301 : vector<16x128xf32>
    %c122 = arith.constant 122 : index
    %303 = memref.load %arg2[%c122] : memref<144xf32, #tpu.memory_space<smem>>
    %304 = vector.broadcast %303 : f32 to vector<16x128xf32>
    %305 = arith.mulf %304, %258 : vector<16x128xf32>
    %306 = arith.addf %290, %305 : vector<16x128xf32>
    %c0_49 = arith.constant 0 : index
    %c1_50 = arith.constant 1 : index
    %c0_51 = arith.constant 0 : index
    %c0_52 = arith.constant 0 : index
    %307 = vector.load %arg1[%c0_49, %c1_50, %c0_51, %c0_52] : memref<1x4x16x128xf32, #tpu.memory_space<vmem>>, vector<1x1x16x128xf32>
    %308 = vector.shape_cast %307 : vector<1x1x16x128xf32> to vector<16x128xf32>
    %c15_i32_53 = arith.constant 15 : i32
    %309 = tpu.dynamic_rotate %308 by %c15_i32_53 dim 0 : vector<16x128xf32>, i32 -> vector<16x128xf32>
    %cst_54 = arith.constant 0.000000e+00 : f32
    %310 = vector.broadcast %cst_54 : f32 to vector<16x128xf32>
    %311 = arith.select %4, %310, %309 : vector<16x128xi1>, vector<16x128xf32>
    %c1_i32_55 = arith.constant 1 : i32
    %312 = tpu.dynamic_rotate %311 by %c1_i32_55 dim 1 : vector<16x128xf32>, i32 -> vector<16x128xf32>
    %cst_56 = arith.constant 0.000000e+00 : f32
    %313 = vector.broadcast %cst_56 : f32 to vector<16x128xf32>
    %314 = arith.select %7, %313, %312 : vector<16x128xi1>, vector<16x128xf32>
    %c127_i32_57 = arith.constant 127 : i32
    %315 = tpu.dynamic_rotate %311 by %c127_i32_57 dim 1 : vector<16x128xf32>, i32 -> vector<16x128xf32>
    %cst_58 = arith.constant 0.000000e+00 : f32
    %316 = vector.broadcast %cst_58 : f32 to vector<16x128xf32>
    %317 = arith.select %9, %316, %315 : vector<16x128xi1>, vector<16x128xf32>
    %c15 = arith.constant 15 : index
    %318 = memref.load %arg2[%c15] : memref<144xf32, #tpu.memory_space<smem>>
    %319 = vector.broadcast %318 : f32 to vector<16x128xf32>
    %320 = arith.mulf %319, %314 : vector<16x128xf32>
    %321 = arith.addf %294, %320 : vector<16x128xf32>
    %c51 = arith.constant 51 : index
    %322 = memref.load %arg2[%c51] : memref<144xf32, #tpu.memory_space<smem>>
    %323 = vector.broadcast %322 : f32 to vector<16x128xf32>
    %324 = arith.mulf %323, %314 : vector<16x128xf32>
    %325 = arith.addf %298, %324 : vector<16x128xf32>
    %c87 = arith.constant 87 : index
    %326 = memref.load %arg2[%c87] : memref<144xf32, #tpu.memory_space<smem>>
    %327 = vector.broadcast %326 : f32 to vector<16x128xf32>
    %328 = arith.mulf %327, %314 : vector<16x128xf32>
    %329 = arith.addf %302, %328 : vector<16x128xf32>
    %c123 = arith.constant 123 : index
    %330 = memref.load %arg2[%c123] : memref<144xf32, #tpu.memory_space<smem>>
    %331 = vector.broadcast %330 : f32 to vector<16x128xf32>
    %332 = arith.mulf %331, %314 : vector<16x128xf32>
    %333 = arith.addf %306, %332 : vector<16x128xf32>
    %c16 = arith.constant 16 : index
    %334 = memref.load %arg2[%c16] : memref<144xf32, #tpu.memory_space<smem>>
    %335 = vector.broadcast %334 : f32 to vector<16x128xf32>
    %336 = arith.mulf %335, %311 : vector<16x128xf32>
    %337 = arith.addf %321, %336 : vector<16x128xf32>
    %c52 = arith.constant 52 : index
    %338 = memref.load %arg2[%c52] : memref<144xf32, #tpu.memory_space<smem>>
    %339 = vector.broadcast %338 : f32 to vector<16x128xf32>
    %340 = arith.mulf %339, %311 : vector<16x128xf32>
    %341 = arith.addf %325, %340 : vector<16x128xf32>
    %c88 = arith.constant 88 : index
    %342 = memref.load %arg2[%c88] : memref<144xf32, #tpu.memory_space<smem>>
    %343 = vector.broadcast %342 : f32 to vector<16x128xf32>
    %344 = arith.mulf %343, %311 : vector<16x128xf32>
    %345 = arith.addf %329, %344 : vector<16x128xf32>
    %c124 = arith.constant 124 : index
    %346 = memref.load %arg2[%c124] : memref<144xf32, #tpu.memory_space<smem>>
    %347 = vector.broadcast %346 : f32 to vector<16x128xf32>
    %348 = arith.mulf %347, %311 : vector<16x128xf32>
    %349 = arith.addf %333, %348 : vector<16x128xf32>
    %c17 = arith.constant 17 : index
    %350 = memref.load %arg2[%c17] : memref<144xf32, #tpu.memory_space<smem>>
    %351 = vector.broadcast %350 : f32 to vector<16x128xf32>
    %352 = arith.mulf %351, %317 : vector<16x128xf32>
    %353 = arith.addf %337, %352 : vector<16x128xf32>
    %c53 = arith.constant 53 : index
    %354 = memref.load %arg2[%c53] : memref<144xf32, #tpu.memory_space<smem>>
    %355 = vector.broadcast %354 : f32 to vector<16x128xf32>
    %356 = arith.mulf %355, %317 : vector<16x128xf32>
    %357 = arith.addf %341, %356 : vector<16x128xf32>
    %c89 = arith.constant 89 : index
    %358 = memref.load %arg2[%c89] : memref<144xf32, #tpu.memory_space<smem>>
    %359 = vector.broadcast %358 : f32 to vector<16x128xf32>
    %360 = arith.mulf %359, %317 : vector<16x128xf32>
    %361 = arith.addf %345, %360 : vector<16x128xf32>
    %c125 = arith.constant 125 : index
    %362 = memref.load %arg2[%c125] : memref<144xf32, #tpu.memory_space<smem>>
    %363 = vector.broadcast %362 : f32 to vector<16x128xf32>
    %364 = arith.mulf %363, %317 : vector<16x128xf32>
    %365 = arith.addf %349, %364 : vector<16x128xf32>
    %c0_59 = arith.constant 0 : index
    %c2_60 = arith.constant 2 : index
    %c0_61 = arith.constant 0 : index
    %c0_62 = arith.constant 0 : index
    %366 = vector.load %arg1[%c0_59, %c2_60, %c0_61, %c0_62] : memref<1x4x16x128xf32, #tpu.memory_space<vmem>>, vector<1x1x16x128xf32>
    %367 = vector.shape_cast %366 : vector<1x1x16x128xf32> to vector<16x128xf32>
    %c1_i32_63 = arith.constant 1 : i32
    %368 = tpu.dynamic_rotate %367 by %c1_i32_63 dim 0 : vector<16x128xf32>, i32 -> vector<16x128xf32>
    %cst_64 = arith.constant 0.000000e+00 : f32
    %369 = vector.broadcast %cst_64 : f32 to vector<16x128xf32>
    %370 = arith.select %2, %369, %368 : vector<16x128xi1>, vector<16x128xf32>
    %c1_i32_65 = arith.constant 1 : i32
    %371 = tpu.dynamic_rotate %370 by %c1_i32_65 dim 1 : vector<16x128xf32>, i32 -> vector<16x128xf32>
    %cst_66 = arith.constant 0.000000e+00 : f32
    %372 = vector.broadcast %cst_66 : f32 to vector<16x128xf32>
    %373 = arith.select %7, %372, %371 : vector<16x128xi1>, vector<16x128xf32>
    %c127_i32_67 = arith.constant 127 : i32
    %374 = tpu.dynamic_rotate %370 by %c127_i32_67 dim 1 : vector<16x128xf32>, i32 -> vector<16x128xf32>
    %cst_68 = arith.constant 0.000000e+00 : f32
    %375 = vector.broadcast %cst_68 : f32 to vector<16x128xf32>
    %376 = arith.select %9, %375, %374 : vector<16x128xi1>, vector<16x128xf32>
    %c18 = arith.constant 18 : index
    %377 = memref.load %arg2[%c18] : memref<144xf32, #tpu.memory_space<smem>>
    %378 = vector.broadcast %377 : f32 to vector<16x128xf32>
    %379 = arith.mulf %378, %373 : vector<16x128xf32>
    %380 = arith.addf %353, %379 : vector<16x128xf32>
    %c54 = arith.constant 54 : index
    %381 = memref.load %arg2[%c54] : memref<144xf32, #tpu.memory_space<smem>>
    %382 = vector.broadcast %381 : f32 to vector<16x128xf32>
    %383 = arith.mulf %382, %373 : vector<16x128xf32>
    %384 = arith.addf %357, %383 : vector<16x128xf32>
    %c90 = arith.constant 90 : index
    %385 = memref.load %arg2[%c90] : memref<144xf32, #tpu.memory_space<smem>>
    %386 = vector.broadcast %385 : f32 to vector<16x128xf32>
    %387 = arith.mulf %386, %373 : vector<16x128xf32>
    %388 = arith.addf %361, %387 : vector<16x128xf32>
    %c126 = arith.constant 126 : index
    %389 = memref.load %arg2[%c126] : memref<144xf32, #tpu.memory_space<smem>>
    %390 = vector.broadcast %389 : f32 to vector<16x128xf32>
    %391 = arith.mulf %390, %373 : vector<16x128xf32>
    %392 = arith.addf %365, %391 : vector<16x128xf32>
    %c19 = arith.constant 19 : index
    %393 = memref.load %arg2[%c19] : memref<144xf32, #tpu.memory_space<smem>>
    %394 = vector.broadcast %393 : f32 to vector<16x128xf32>
    %395 = arith.mulf %394, %370 : vector<16x128xf32>
    %396 = arith.addf %380, %395 : vector<16x128xf32>
    %c55 = arith.constant 55 : index
    %397 = memref.load %arg2[%c55] : memref<144xf32, #tpu.memory_space<smem>>
    %398 = vector.broadcast %397 : f32 to vector<16x128xf32>
    %399 = arith.mulf %398, %370 : vector<16x128xf32>
    %400 = arith.addf %384, %399 : vector<16x128xf32>
    %c91 = arith.constant 91 : index
    %401 = memref.load %arg2[%c91] : memref<144xf32, #tpu.memory_space<smem>>
    %402 = vector.broadcast %401 : f32 to vector<16x128xf32>
    %403 = arith.mulf %402, %370 : vector<16x128xf32>
    %404 = arith.addf %388, %403 : vector<16x128xf32>
    %c127 = arith.constant 127 : index
    %405 = memref.load %arg2[%c127] : memref<144xf32, #tpu.memory_space<smem>>
    %406 = vector.broadcast %405 : f32 to vector<16x128xf32>
    %407 = arith.mulf %406, %370 : vector<16x128xf32>
    %408 = arith.addf %392, %407 : vector<16x128xf32>
    %c20 = arith.constant 20 : index
    %409 = memref.load %arg2[%c20] : memref<144xf32, #tpu.memory_space<smem>>
    %410 = vector.broadcast %409 : f32 to vector<16x128xf32>
    %411 = arith.mulf %410, %376 : vector<16x128xf32>
    %412 = arith.addf %396, %411 : vector<16x128xf32>
    %c56 = arith.constant 56 : index
    %413 = memref.load %arg2[%c56] : memref<144xf32, #tpu.memory_space<smem>>
    %414 = vector.broadcast %413 : f32 to vector<16x128xf32>
    %415 = arith.mulf %414, %376 : vector<16x128xf32>
    %416 = arith.addf %400, %415 : vector<16x128xf32>
    %c92 = arith.constant 92 : index
    %417 = memref.load %arg2[%c92] : memref<144xf32, #tpu.memory_space<smem>>
    %418 = vector.broadcast %417 : f32 to vector<16x128xf32>
    %419 = arith.mulf %418, %376 : vector<16x128xf32>
    %420 = arith.addf %404, %419 : vector<16x128xf32>
    %c128 = arith.constant 128 : index
    %421 = memref.load %arg2[%c128] : memref<144xf32, #tpu.memory_space<smem>>
    %422 = vector.broadcast %421 : f32 to vector<16x128xf32>
    %423 = arith.mulf %422, %376 : vector<16x128xf32>
    %424 = arith.addf %408, %423 : vector<16x128xf32>
    %c0_69 = arith.constant 0 : index
    %c2_70 = arith.constant 2 : index
    %c0_71 = arith.constant 0 : index
    %c0_72 = arith.constant 0 : index
    %425 = vector.load %arg1[%c0_69, %c2_70, %c0_71, %c0_72] : memref<1x4x16x128xf32, #tpu.memory_space<vmem>>, vector<1x1x16x128xf32>
    %426 = vector.shape_cast %425 : vector<1x1x16x128xf32> to vector<16x128xf32>
    %c1_i32_73 = arith.constant 1 : i32
    %427 = tpu.dynamic_rotate %426 by %c1_i32_73 dim 1 : vector<16x128xf32>, i32 -> vector<16x128xf32>
    %cst_74 = arith.constant 0.000000e+00 : f32
    %428 = vector.broadcast %cst_74 : f32 to vector<16x128xf32>
    %429 = arith.select %7, %428, %427 : vector<16x128xi1>, vector<16x128xf32>
    %c127_i32_75 = arith.constant 127 : i32
    %430 = tpu.dynamic_rotate %426 by %c127_i32_75 dim 1 : vector<16x128xf32>, i32 -> vector<16x128xf32>
    %cst_76 = arith.constant 0.000000e+00 : f32
    %431 = vector.broadcast %cst_76 : f32 to vector<16x128xf32>
    %432 = arith.select %9, %431, %430 : vector<16x128xi1>, vector<16x128xf32>
    %c21 = arith.constant 21 : index
    %433 = memref.load %arg2[%c21] : memref<144xf32, #tpu.memory_space<smem>>
    %434 = vector.broadcast %433 : f32 to vector<16x128xf32>
    %435 = arith.mulf %434, %429 : vector<16x128xf32>
    %436 = arith.addf %412, %435 : vector<16x128xf32>
    %c57 = arith.constant 57 : index
    %437 = memref.load %arg2[%c57] : memref<144xf32, #tpu.memory_space<smem>>
    %438 = vector.broadcast %437 : f32 to vector<16x128xf32>
    %439 = arith.mulf %438, %429 : vector<16x128xf32>
    %440 = arith.addf %416, %439 : vector<16x128xf32>
    %c93 = arith.constant 93 : index
    %441 = memref.load %arg2[%c93] : memref<144xf32, #tpu.memory_space<smem>>
    %442 = vector.broadcast %441 : f32 to vector<16x128xf32>
    %443 = arith.mulf %442, %429 : vector<16x128xf32>
    %444 = arith.addf %420, %443 : vector<16x128xf32>
    %c129 = arith.constant 129 : index
    %445 = memref.load %arg2[%c129] : memref<144xf32, #tpu.memory_space<smem>>
    %446 = vector.broadcast %445 : f32 to vector<16x128xf32>
    %447 = arith.mulf %446, %429 : vector<16x128xf32>
    %448 = arith.addf %424, %447 : vector<16x128xf32>
    %c22 = arith.constant 22 : index
    %449 = memref.load %arg2[%c22] : memref<144xf32, #tpu.memory_space<smem>>
    %450 = vector.broadcast %449 : f32 to vector<16x128xf32>
    %451 = arith.mulf %450, %426 : vector<16x128xf32>
    %452 = arith.addf %436, %451 : vector<16x128xf32>
    %c58 = arith.constant 58 : index
    %453 = memref.load %arg2[%c58] : memref<144xf32, #tpu.memory_space<smem>>
    %454 = vector.broadcast %453 : f32 to vector<16x128xf32>
    %455 = arith.mulf %454, %426 : vector<16x128xf32>
    %456 = arith.addf %440, %455 : vector<16x128xf32>
    %c94 = arith.constant 94 : index
    %457 = memref.load %arg2[%c94] : memref<144xf32, #tpu.memory_space<smem>>
    %458 = vector.broadcast %457 : f32 to vector<16x128xf32>
    %459 = arith.mulf %458, %426 : vector<16x128xf32>
    %460 = arith.addf %444, %459 : vector<16x128xf32>
    %c130 = arith.constant 130 : index
    %461 = memref.load %arg2[%c130] : memref<144xf32, #tpu.memory_space<smem>>
    %462 = vector.broadcast %461 : f32 to vector<16x128xf32>
    %463 = arith.mulf %462, %426 : vector<16x128xf32>
    %464 = arith.addf %448, %463 : vector<16x128xf32>
    %c23 = arith.constant 23 : index
    %465 = memref.load %arg2[%c23] : memref<144xf32, #tpu.memory_space<smem>>
    %466 = vector.broadcast %465 : f32 to vector<16x128xf32>
    %467 = arith.mulf %466, %432 : vector<16x128xf32>
    %468 = arith.addf %452, %467 : vector<16x128xf32>
    %c59 = arith.constant 59 : index
    %469 = memref.load %arg2[%c59] : memref<144xf32, #tpu.memory_space<smem>>
    %470 = vector.broadcast %469 : f32 to vector<16x128xf32>
    %471 = arith.mulf %470, %432 : vector<16x128xf32>
    %472 = arith.addf %456, %471 : vector<16x128xf32>
    %c95 = arith.constant 95 : index
    %473 = memref.load %arg2[%c95] : memref<144xf32, #tpu.memory_space<smem>>
    %474 = vector.broadcast %473 : f32 to vector<16x128xf32>
    %475 = arith.mulf %474, %432 : vector<16x128xf32>
    %476 = arith.addf %460, %475 : vector<16x128xf32>
    %c131 = arith.constant 131 : index
    %477 = memref.load %arg2[%c131] : memref<144xf32, #tpu.memory_space<smem>>
    %478 = vector.broadcast %477 : f32 to vector<16x128xf32>
    %479 = arith.mulf %478, %432 : vector<16x128xf32>
    %480 = arith.addf %464, %479 : vector<16x128xf32>
    %c0_77 = arith.constant 0 : index
    %c2_78 = arith.constant 2 : index
    %c0_79 = arith.constant 0 : index
    %c0_80 = arith.constant 0 : index
    %481 = vector.load %arg1[%c0_77, %c2_78, %c0_79, %c0_80] : memref<1x4x16x128xf32, #tpu.memory_space<vmem>>, vector<1x1x16x128xf32>
    %482 = vector.shape_cast %481 : vector<1x1x16x128xf32> to vector<16x128xf32>
    %c15_i32_81 = arith.constant 15 : i32
    %483 = tpu.dynamic_rotate %482 by %c15_i32_81 dim 0 : vector<16x128xf32>, i32 -> vector<16x128xf32>
    %cst_82 = arith.constant 0.000000e+00 : f32
    %484 = vector.broadcast %cst_82 : f32 to vector<16x128xf32>
    %485 = arith.select %4, %484, %483 : vector<16x128xi1>, vector<16x128xf32>
    %c1_i32_83 = arith.constant 1 : i32
    %486 = tpu.dynamic_rotate %485 by %c1_i32_83 dim 1 : vector<16x128xf32>, i32 -> vector<16x128xf32>
    %cst_84 = arith.constant 0.000000e+00 : f32
    %487 = vector.broadcast %cst_84 : f32 to vector<16x128xf32>
    %488 = arith.select %7, %487, %486 : vector<16x128xi1>, vector<16x128xf32>
    %c127_i32_85 = arith.constant 127 : i32
    %489 = tpu.dynamic_rotate %485 by %c127_i32_85 dim 1 : vector<16x128xf32>, i32 -> vector<16x128xf32>
    %cst_86 = arith.constant 0.000000e+00 : f32
    %490 = vector.broadcast %cst_86 : f32 to vector<16x128xf32>
    %491 = arith.select %9, %490, %489 : vector<16x128xi1>, vector<16x128xf32>
    %c24 = arith.constant 24 : index
    %492 = memref.load %arg2[%c24] : memref<144xf32, #tpu.memory_space<smem>>
    %493 = vector.broadcast %492 : f32 to vector<16x128xf32>
    %494 = arith.mulf %493, %488 : vector<16x128xf32>
    %495 = arith.addf %468, %494 : vector<16x128xf32>
    %c60 = arith.constant 60 : index
    %496 = memref.load %arg2[%c60] : memref<144xf32, #tpu.memory_space<smem>>
    %497 = vector.broadcast %496 : f32 to vector<16x128xf32>
    %498 = arith.mulf %497, %488 : vector<16x128xf32>
    %499 = arith.addf %472, %498 : vector<16x128xf32>
    %c96 = arith.constant 96 : index
    %500 = memref.load %arg2[%c96] : memref<144xf32, #tpu.memory_space<smem>>
    %501 = vector.broadcast %500 : f32 to vector<16x128xf32>
    %502 = arith.mulf %501, %488 : vector<16x128xf32>
    %503 = arith.addf %476, %502 : vector<16x128xf32>
    %c132 = arith.constant 132 : index
    %504 = memref.load %arg2[%c132] : memref<144xf32, #tpu.memory_space<smem>>
    %505 = vector.broadcast %504 : f32 to vector<16x128xf32>
    %506 = arith.mulf %505, %488 : vector<16x128xf32>
    %507 = arith.addf %480, %506 : vector<16x128xf32>
    %c25 = arith.constant 25 : index
    %508 = memref.load %arg2[%c25] : memref<144xf32, #tpu.memory_space<smem>>
    %509 = vector.broadcast %508 : f32 to vector<16x128xf32>
    %510 = arith.mulf %509, %485 : vector<16x128xf32>
    %511 = arith.addf %495, %510 : vector<16x128xf32>
    %c61 = arith.constant 61 : index
    %512 = memref.load %arg2[%c61] : memref<144xf32, #tpu.memory_space<smem>>
    %513 = vector.broadcast %512 : f32 to vector<16x128xf32>
    %514 = arith.mulf %513, %485 : vector<16x128xf32>
    %515 = arith.addf %499, %514 : vector<16x128xf32>
    %c97 = arith.constant 97 : index
    %516 = memref.load %arg2[%c97] : memref<144xf32, #tpu.memory_space<smem>>
    %517 = vector.broadcast %516 : f32 to vector<16x128xf32>
    %518 = arith.mulf %517, %485 : vector<16x128xf32>
    %519 = arith.addf %503, %518 : vector<16x128xf32>
    %c133 = arith.constant 133 : index
    %520 = memref.load %arg2[%c133] : memref<144xf32, #tpu.memory_space<smem>>
    %521 = vector.broadcast %520 : f32 to vector<16x128xf32>
    %522 = arith.mulf %521, %485 : vector<16x128xf32>
    %523 = arith.addf %507, %522 : vector<16x128xf32>
    %c26 = arith.constant 26 : index
    %524 = memref.load %arg2[%c26] : memref<144xf32, #tpu.memory_space<smem>>
    %525 = vector.broadcast %524 : f32 to vector<16x128xf32>
    %526 = arith.mulf %525, %491 : vector<16x128xf32>
    %527 = arith.addf %511, %526 : vector<16x128xf32>
    %c62 = arith.constant 62 : index
    %528 = memref.load %arg2[%c62] : memref<144xf32, #tpu.memory_space<smem>>
    %529 = vector.broadcast %528 : f32 to vector<16x128xf32>
    %530 = arith.mulf %529, %491 : vector<16x128xf32>
    %531 = arith.addf %515, %530 : vector<16x128xf32>
    %c98 = arith.constant 98 : index
    %532 = memref.load %arg2[%c98] : memref<144xf32, #tpu.memory_space<smem>>
    %533 = vector.broadcast %532 : f32 to vector<16x128xf32>
    %534 = arith.mulf %533, %491 : vector<16x128xf32>
    %535 = arith.addf %519, %534 : vector<16x128xf32>
    %c134 = arith.constant 134 : index
    %536 = memref.load %arg2[%c134] : memref<144xf32, #tpu.memory_space<smem>>
    %537 = vector.broadcast %536 : f32 to vector<16x128xf32>
    %538 = arith.mulf %537, %491 : vector<16x128xf32>
    %539 = arith.addf %523, %538 : vector<16x128xf32>
    %c0_87 = arith.constant 0 : index
    %c3_88 = arith.constant 3 : index
    %c0_89 = arith.constant 0 : index
    %c0_90 = arith.constant 0 : index
    %540 = vector.load %arg1[%c0_87, %c3_88, %c0_89, %c0_90] : memref<1x4x16x128xf32, #tpu.memory_space<vmem>>, vector<1x1x16x128xf32>
    %541 = vector.shape_cast %540 : vector<1x1x16x128xf32> to vector<16x128xf32>
    %c1_i32_91 = arith.constant 1 : i32
    %542 = tpu.dynamic_rotate %541 by %c1_i32_91 dim 0 : vector<16x128xf32>, i32 -> vector<16x128xf32>
    %cst_92 = arith.constant 0.000000e+00 : f32
    %543 = vector.broadcast %cst_92 : f32 to vector<16x128xf32>
    %544 = arith.select %2, %543, %542 : vector<16x128xi1>, vector<16x128xf32>
    %c1_i32_93 = arith.constant 1 : i32
    %545 = tpu.dynamic_rotate %544 by %c1_i32_93 dim 1 : vector<16x128xf32>, i32 -> vector<16x128xf32>
    %cst_94 = arith.constant 0.000000e+00 : f32
    %546 = vector.broadcast %cst_94 : f32 to vector<16x128xf32>
    %547 = arith.select %7, %546, %545 : vector<16x128xi1>, vector<16x128xf32>
    %c127_i32_95 = arith.constant 127 : i32
    %548 = tpu.dynamic_rotate %544 by %c127_i32_95 dim 1 : vector<16x128xf32>, i32 -> vector<16x128xf32>
    %cst_96 = arith.constant 0.000000e+00 : f32
    %549 = vector.broadcast %cst_96 : f32 to vector<16x128xf32>
    %550 = arith.select %9, %549, %548 : vector<16x128xi1>, vector<16x128xf32>
    %c27 = arith.constant 27 : index
    %551 = memref.load %arg2[%c27] : memref<144xf32, #tpu.memory_space<smem>>
    %552 = vector.broadcast %551 : f32 to vector<16x128xf32>
    %553 = arith.mulf %552, %547 : vector<16x128xf32>
    %554 = arith.addf %527, %553 : vector<16x128xf32>
    %c63 = arith.constant 63 : index
    %555 = memref.load %arg2[%c63] : memref<144xf32, #tpu.memory_space<smem>>
    %556 = vector.broadcast %555 : f32 to vector<16x128xf32>
    %557 = arith.mulf %556, %547 : vector<16x128xf32>
    %558 = arith.addf %531, %557 : vector<16x128xf32>
    %c99 = arith.constant 99 : index
    %559 = memref.load %arg2[%c99] : memref<144xf32, #tpu.memory_space<smem>>
    %560 = vector.broadcast %559 : f32 to vector<16x128xf32>
    %561 = arith.mulf %560, %547 : vector<16x128xf32>
    %562 = arith.addf %535, %561 : vector<16x128xf32>
    %c135 = arith.constant 135 : index
    %563 = memref.load %arg2[%c135] : memref<144xf32, #tpu.memory_space<smem>>
    %564 = vector.broadcast %563 : f32 to vector<16x128xf32>
    %565 = arith.mulf %564, %547 : vector<16x128xf32>
    %566 = arith.addf %539, %565 : vector<16x128xf32>
    %c28 = arith.constant 28 : index
    %567 = memref.load %arg2[%c28] : memref<144xf32, #tpu.memory_space<smem>>
    %568 = vector.broadcast %567 : f32 to vector<16x128xf32>
    %569 = arith.mulf %568, %544 : vector<16x128xf32>
    %570 = arith.addf %554, %569 : vector<16x128xf32>
    %c64 = arith.constant 64 : index
    %571 = memref.load %arg2[%c64] : memref<144xf32, #tpu.memory_space<smem>>
    %572 = vector.broadcast %571 : f32 to vector<16x128xf32>
    %573 = arith.mulf %572, %544 : vector<16x128xf32>
    %574 = arith.addf %558, %573 : vector<16x128xf32>
    %c100 = arith.constant 100 : index
    %575 = memref.load %arg2[%c100] : memref<144xf32, #tpu.memory_space<smem>>
    %576 = vector.broadcast %575 : f32 to vector<16x128xf32>
    %577 = arith.mulf %576, %544 : vector<16x128xf32>
    %578 = arith.addf %562, %577 : vector<16x128xf32>
    %c136 = arith.constant 136 : index
    %579 = memref.load %arg2[%c136] : memref<144xf32, #tpu.memory_space<smem>>
    %580 = vector.broadcast %579 : f32 to vector<16x128xf32>
    %581 = arith.mulf %580, %544 : vector<16x128xf32>
    %582 = arith.addf %566, %581 : vector<16x128xf32>
    %c29 = arith.constant 29 : index
    %583 = memref.load %arg2[%c29] : memref<144xf32, #tpu.memory_space<smem>>
    %584 = vector.broadcast %583 : f32 to vector<16x128xf32>
    %585 = arith.mulf %584, %550 : vector<16x128xf32>
    %586 = arith.addf %570, %585 : vector<16x128xf32>
    %c65 = arith.constant 65 : index
    %587 = memref.load %arg2[%c65] : memref<144xf32, #tpu.memory_space<smem>>
    %588 = vector.broadcast %587 : f32 to vector<16x128xf32>
    %589 = arith.mulf %588, %550 : vector<16x128xf32>
    %590 = arith.addf %574, %589 : vector<16x128xf32>
    %c101 = arith.constant 101 : index
    %591 = memref.load %arg2[%c101] : memref<144xf32, #tpu.memory_space<smem>>
    %592 = vector.broadcast %591 : f32 to vector<16x128xf32>
    %593 = arith.mulf %592, %550 : vector<16x128xf32>
    %594 = arith.addf %578, %593 : vector<16x128xf32>
    %c137 = arith.constant 137 : index
    %595 = memref.load %arg2[%c137] : memref<144xf32, #tpu.memory_space<smem>>
    %596 = vector.broadcast %595 : f32 to vector<16x128xf32>
    %597 = arith.mulf %596, %550 : vector<16x128xf32>
    %598 = arith.addf %582, %597 : vector<16x128xf32>
    %c0_97 = arith.constant 0 : index
    %c3_98 = arith.constant 3 : index
    %c0_99 = arith.constant 0 : index
    %c0_100 = arith.constant 0 : index
    %599 = vector.load %arg1[%c0_97, %c3_98, %c0_99, %c0_100] : memref<1x4x16x128xf32, #tpu.memory_space<vmem>>, vector<1x1x16x128xf32>
    %600 = vector.shape_cast %599 : vector<1x1x16x128xf32> to vector<16x128xf32>
    %c1_i32_101 = arith.constant 1 : i32
    %601 = tpu.dynamic_rotate %600 by %c1_i32_101 dim 1 : vector<16x128xf32>, i32 -> vector<16x128xf32>
    %cst_102 = arith.constant 0.000000e+00 : f32
    %602 = vector.broadcast %cst_102 : f32 to vector<16x128xf32>
    %603 = arith.select %7, %602, %601 : vector<16x128xi1>, vector<16x128xf32>
    %c127_i32_103 = arith.constant 127 : i32
    %604 = tpu.dynamic_rotate %600 by %c127_i32_103 dim 1 : vector<16x128xf32>, i32 -> vector<16x128xf32>
    %cst_104 = arith.constant 0.000000e+00 : f32
    %605 = vector.broadcast %cst_104 : f32 to vector<16x128xf32>
    %606 = arith.select %9, %605, %604 : vector<16x128xi1>, vector<16x128xf32>
    %c30 = arith.constant 30 : index
    %607 = memref.load %arg2[%c30] : memref<144xf32, #tpu.memory_space<smem>>
    %608 = vector.broadcast %607 : f32 to vector<16x128xf32>
    %609 = arith.mulf %608, %603 : vector<16x128xf32>
    %610 = arith.addf %586, %609 : vector<16x128xf32>
    %c66 = arith.constant 66 : index
    %611 = memref.load %arg2[%c66] : memref<144xf32, #tpu.memory_space<smem>>
    %612 = vector.broadcast %611 : f32 to vector<16x128xf32>
    %613 = arith.mulf %612, %603 : vector<16x128xf32>
    %614 = arith.addf %590, %613 : vector<16x128xf32>
    %c102 = arith.constant 102 : index
    %615 = memref.load %arg2[%c102] : memref<144xf32, #tpu.memory_space<smem>>
    %616 = vector.broadcast %615 : f32 to vector<16x128xf32>
    %617 = arith.mulf %616, %603 : vector<16x128xf32>
    %618 = arith.addf %594, %617 : vector<16x128xf32>
    %c138 = arith.constant 138 : index
    %619 = memref.load %arg2[%c138] : memref<144xf32, #tpu.memory_space<smem>>
    %620 = vector.broadcast %619 : f32 to vector<16x128xf32>
    %621 = arith.mulf %620, %603 : vector<16x128xf32>
    %622 = arith.addf %598, %621 : vector<16x128xf32>
    %c31 = arith.constant 31 : index
    %623 = memref.load %arg2[%c31] : memref<144xf32, #tpu.memory_space<smem>>
    %624 = vector.broadcast %623 : f32 to vector<16x128xf32>
    %625 = arith.mulf %624, %600 : vector<16x128xf32>
    %626 = arith.addf %610, %625 : vector<16x128xf32>
    %c67 = arith.constant 67 : index
    %627 = memref.load %arg2[%c67] : memref<144xf32, #tpu.memory_space<smem>>
    %628 = vector.broadcast %627 : f32 to vector<16x128xf32>
    %629 = arith.mulf %628, %600 : vector<16x128xf32>
    %630 = arith.addf %614, %629 : vector<16x128xf32>
    %c103 = arith.constant 103 : index
    %631 = memref.load %arg2[%c103] : memref<144xf32, #tpu.memory_space<smem>>
    %632 = vector.broadcast %631 : f32 to vector<16x128xf32>
    %633 = arith.mulf %632, %600 : vector<16x128xf32>
    %634 = arith.addf %618, %633 : vector<16x128xf32>
    %c139 = arith.constant 139 : index
    %635 = memref.load %arg2[%c139] : memref<144xf32, #tpu.memory_space<smem>>
    %636 = vector.broadcast %635 : f32 to vector<16x128xf32>
    %637 = arith.mulf %636, %600 : vector<16x128xf32>
    %638 = arith.addf %622, %637 : vector<16x128xf32>
    %c32 = arith.constant 32 : index
    %639 = memref.load %arg2[%c32] : memref<144xf32, #tpu.memory_space<smem>>
    %640 = vector.broadcast %639 : f32 to vector<16x128xf32>
    %641 = arith.mulf %640, %606 : vector<16x128xf32>
    %642 = arith.addf %626, %641 : vector<16x128xf32>
    %c68 = arith.constant 68 : index
    %643 = memref.load %arg2[%c68] : memref<144xf32, #tpu.memory_space<smem>>
    %644 = vector.broadcast %643 : f32 to vector<16x128xf32>
    %645 = arith.mulf %644, %606 : vector<16x128xf32>
    %646 = arith.addf %630, %645 : vector<16x128xf32>
    %c104 = arith.constant 104 : index
    %647 = memref.load %arg2[%c104] : memref<144xf32, #tpu.memory_space<smem>>
    %648 = vector.broadcast %647 : f32 to vector<16x128xf32>
    %649 = arith.mulf %648, %606 : vector<16x128xf32>
    %650 = arith.addf %634, %649 : vector<16x128xf32>
    %c140 = arith.constant 140 : index
    %651 = memref.load %arg2[%c140] : memref<144xf32, #tpu.memory_space<smem>>
    %652 = vector.broadcast %651 : f32 to vector<16x128xf32>
    %653 = arith.mulf %652, %606 : vector<16x128xf32>
    %654 = arith.addf %638, %653 : vector<16x128xf32>
    %c0_105 = arith.constant 0 : index
    %c3_106 = arith.constant 3 : index
    %c0_107 = arith.constant 0 : index
    %c0_108 = arith.constant 0 : index
    %655 = vector.load %arg1[%c0_105, %c3_106, %c0_107, %c0_108] : memref<1x4x16x128xf32, #tpu.memory_space<vmem>>, vector<1x1x16x128xf32>
    %656 = vector.shape_cast %655 : vector<1x1x16x128xf32> to vector<16x128xf32>
    %c15_i32_109 = arith.constant 15 : i32
    %657 = tpu.dynamic_rotate %656 by %c15_i32_109 dim 0 : vector<16x128xf32>, i32 -> vector<16x128xf32>
    %cst_110 = arith.constant 0.000000e+00 : f32
    %658 = vector.broadcast %cst_110 : f32 to vector<16x128xf32>
    %659 = arith.select %4, %658, %657 : vector<16x128xi1>, vector<16x128xf32>
    %c1_i32_111 = arith.constant 1 : i32
    %660 = tpu.dynamic_rotate %659 by %c1_i32_111 dim 1 : vector<16x128xf32>, i32 -> vector<16x128xf32>
    %cst_112 = arith.constant 0.000000e+00 : f32
    %661 = vector.broadcast %cst_112 : f32 to vector<16x128xf32>
    %662 = arith.select %7, %661, %660 : vector<16x128xi1>, vector<16x128xf32>
    %c127_i32_113 = arith.constant 127 : i32
    %663 = tpu.dynamic_rotate %659 by %c127_i32_113 dim 1 : vector<16x128xf32>, i32 -> vector<16x128xf32>
    %cst_114 = arith.constant 0.000000e+00 : f32
    %664 = vector.broadcast %cst_114 : f32 to vector<16x128xf32>
    %665 = arith.select %9, %664, %663 : vector<16x128xi1>, vector<16x128xf32>
    %c33 = arith.constant 33 : index
    %666 = memref.load %arg2[%c33] : memref<144xf32, #tpu.memory_space<smem>>
    %667 = vector.broadcast %666 : f32 to vector<16x128xf32>
    %668 = arith.mulf %667, %662 : vector<16x128xf32>
    %669 = arith.addf %642, %668 : vector<16x128xf32>
    %c69 = arith.constant 69 : index
    %670 = memref.load %arg2[%c69] : memref<144xf32, #tpu.memory_space<smem>>
    %671 = vector.broadcast %670 : f32 to vector<16x128xf32>
    %672 = arith.mulf %671, %662 : vector<16x128xf32>
    %673 = arith.addf %646, %672 : vector<16x128xf32>
    %c105 = arith.constant 105 : index
    %674 = memref.load %arg2[%c105] : memref<144xf32, #tpu.memory_space<smem>>
    %675 = vector.broadcast %674 : f32 to vector<16x128xf32>
    %676 = arith.mulf %675, %662 : vector<16x128xf32>
    %677 = arith.addf %650, %676 : vector<16x128xf32>
    %c141 = arith.constant 141 : index
    %678 = memref.load %arg2[%c141] : memref<144xf32, #tpu.memory_space<smem>>
    %679 = vector.broadcast %678 : f32 to vector<16x128xf32>
    %680 = arith.mulf %679, %662 : vector<16x128xf32>
    %681 = arith.addf %654, %680 : vector<16x128xf32>
    %c34 = arith.constant 34 : index
    %682 = memref.load %arg2[%c34] : memref<144xf32, #tpu.memory_space<smem>>
    %683 = vector.broadcast %682 : f32 to vector<16x128xf32>
    %684 = arith.mulf %683, %659 : vector<16x128xf32>
    %685 = arith.addf %669, %684 : vector<16x128xf32>
    %c70 = arith.constant 70 : index
    %686 = memref.load %arg2[%c70] : memref<144xf32, #tpu.memory_space<smem>>
    %687 = vector.broadcast %686 : f32 to vector<16x128xf32>
    %688 = arith.mulf %687, %659 : vector<16x128xf32>
    %689 = arith.addf %673, %688 : vector<16x128xf32>
    %c106 = arith.constant 106 : index
    %690 = memref.load %arg2[%c106] : memref<144xf32, #tpu.memory_space<smem>>
    %691 = vector.broadcast %690 : f32 to vector<16x128xf32>
    %692 = arith.mulf %691, %659 : vector<16x128xf32>
    %693 = arith.addf %677, %692 : vector<16x128xf32>
    %c142 = arith.constant 142 : index
    %694 = memref.load %arg2[%c142] : memref<144xf32, #tpu.memory_space<smem>>
    %695 = vector.broadcast %694 : f32 to vector<16x128xf32>
    %696 = arith.mulf %695, %659 : vector<16x128xf32>
    %697 = arith.addf %681, %696 : vector<16x128xf32>
    %c35 = arith.constant 35 : index
    %698 = memref.load %arg2[%c35] : memref<144xf32, #tpu.memory_space<smem>>
    %699 = vector.broadcast %698 : f32 to vector<16x128xf32>
    %700 = arith.mulf %699, %665 : vector<16x128xf32>
    %701 = arith.addf %685, %700 : vector<16x128xf32>
    %c71 = arith.constant 71 : index
    %702 = memref.load %arg2[%c71] : memref<144xf32, #tpu.memory_space<smem>>
    %703 = vector.broadcast %702 : f32 to vector<16x128xf32>
    %704 = arith.mulf %703, %665 : vector<16x128xf32>
    %705 = arith.addf %689, %704 : vector<16x128xf32>
    %c107 = arith.constant 107 : index
    %706 = memref.load %arg2[%c107] : memref<144xf32, #tpu.memory_space<smem>>
    %707 = vector.broadcast %706 : f32 to vector<16x128xf32>
    %708 = arith.mulf %707, %665 : vector<16x128xf32>
    %709 = arith.addf %693, %708 : vector<16x128xf32>
    %c143 = arith.constant 143 : index
    %710 = memref.load %arg2[%c143] : memref<144xf32, #tpu.memory_space<smem>>
    %711 = vector.broadcast %710 : f32 to vector<16x128xf32>
    %712 = arith.mulf %711, %665 : vector<16x128xf32>
    %713 = arith.addf %697, %712 : vector<16x128xf32>
    %c0_115 = arith.constant 0 : index
    %c0_116 = arith.constant 0 : index
    %c0_117 = arith.constant 0 : index
    %c0_118 = arith.constant 0 : index
    %714 = vector.load %arg1[%c0_115, %c0_116, %c0_117, %c0_118] : memref<1x4x16x128xf32, #tpu.memory_space<vmem>>, vector<1x1x16x128xf32>
    %715 = vector.shape_cast %714 : vector<1x1x16x128xf32> to vector<16x128xf32>
    %716 = arith.addf %701, %715 : vector<16x128xf32>
    %c0_119 = arith.constant 0 : index
    %c0_120 = arith.constant 0 : index
    %c0_121 = arith.constant 0 : index
    %c0_122 = arith.constant 0 : index
    %717 = vector.load %arg4[%c0_119, %c0_120, %c0_121, %c0_122] : memref<1x4x16x128xf32, #tpu.memory_space<vmem>>, vector<1x1x16x128xf32>
    %718 = vector.shape_cast %717 : vector<1x1x16x128xf32> to vector<16x128xf32>
    %719 = vector.shape_cast %716 : vector<16x128xf32> to vector<1x1x16x128xf32>
    tpu.vector_store %arg4[%c0_119, %c0_120, %c0_121, %c0_122], %719 {strides = array<i32>} : memref<1x4x16x128xf32, #tpu.memory_space<vmem>>, vector<1x1x16x128xf32>,
    %c0_123 = arith.constant 0 : index
    %c1_124 = arith.constant 1 : index
    %c0_125 = arith.constant 0 : index
    %c0_126 = arith.constant 0 : index
    %720 = vector.load %arg1[%c0_123, %c1_124, %c0_125, %c0_126] : memref<1x4x16x128xf32, #tpu.memory_space<vmem>>, vector<1x1x16x128xf32>
    %721 = vector.shape_cast %720 : vector<1x1x16x128xf32> to vector<16x128xf32>
    %722 = arith.addf %705, %721 : vector<16x128xf32>
    %c0_127 = arith.constant 0 : index
    %c1_128 = arith.constant 1 : index
    %c0_129 = arith.constant 0 : index
    %c0_130 = arith.constant 0 : index
    %723 = vector.load %arg4[%c0_127, %c1_128, %c0_129, %c0_130] : memref<1x4x16x128xf32, #tpu.memory_space<vmem>>, vector<1x1x16x128xf32>
    %724 = vector.shape_cast %723 : vector<1x1x16x128xf32> to vector<16x128xf32>
    %725 = vector.shape_cast %722 : vector<16x128xf32> to vector<1x1x16x128xf32>
    tpu.vector_store %arg4[%c0_127, %c1_128, %c0_129, %c0_130], %725 {strides = array<i32>} : memref<1x4x16x128xf32, #tpu.memory_space<vmem>>, vector<1x1x16x128xf32>,
    %c0_131 = arith.constant 0 : index
    %c2_132 = arith.constant 2 : index
    %c0_133 = arith.constant 0 : index
    %c0_134 = arith.constant 0 : index
    %726 = vector.load %arg1[%c0_131, %c2_132, %c0_133, %c0_134] : memref<1x4x16x128xf32, #tpu.memory_space<vmem>>, vector<1x1x16x128xf32>
    %727 = vector.shape_cast %726 : vector<1x1x16x128xf32> to vector<16x128xf32>
    %728 = arith.addf %709, %727 : vector<16x128xf32>
    %c0_135 = arith.constant 0 : index
    %c2_136 = arith.constant 2 : index
    %c0_137 = arith.constant 0 : index
    %c0_138 = arith.constant 0 : index
    %729 = vector.load %arg4[%c0_135, %c2_136, %c0_137, %c0_138] : memref<1x4x16x128xf32, #tpu.memory_space<vmem>>, vector<1x1x16x128xf32>
    %730 = vector.shape_cast %729 : vector<1x1x16x128xf32> to vector<16x128xf32>
    %731 = vector.shape_cast %728 : vector<16x128xf32> to vector<1x1x16x128xf32>
    tpu.vector_store %arg4[%c0_135, %c2_136, %c0_137, %c0_138], %731 {strides = array<i32>} : memref<1x4x16x128xf32, #tpu.memory_space<vmem>>, vector<1x1x16x128xf32>,
    %c0_139 = arith.constant 0 : index
    %c3_140 = arith.constant 3 : index
    %c0_141 = arith.constant 0 : index
    %c0_142 = arith.constant 0 : index
    %732 = vector.load %arg1[%c0_139, %c3_140, %c0_141, %c0_142] : memref<1x4x16x128xf32, #tpu.memory_space<vmem>>, vector<1x1x16x128xf32>
    %733 = vector.shape_cast %732 : vector<1x1x16x128xf32> to vector<16x128xf32>
    %734 = arith.addf %713, %733 : vector<16x128xf32>
    %c0_143 = arith.constant 0 : index
    %c3_144 = arith.constant 3 : index
    %c0_145 = arith.constant 0 : index
    %c0_146 = arith.constant 0 : index
    %735 = vector.load %arg4[%c0_143, %c3_144, %c0_145, %c0_146] : memref<1x4x16x128xf32, #tpu.memory_space<vmem>>, vector<1x1x16x128xf32>
    %736 = vector.shape_cast %735 : vector<1x1x16x128xf32> to vector<16x128xf32>
    %737 = vector.shape_cast %734 : vector<16x128xf32> to vector<1x1x16x128xf32>
    tpu.vector_store %arg4[%c0_143, %c3_144, %c0_145, %c0_146], %737 {strides = array<i32>} : memref<1x4x16x128xf32, #tpu.memory_space<vmem>>, vector<1x1x16x128xf32>,
    return
  }
  func.func @transform_0(%arg0: i32) -> (i32, i32, i32, i32) {
    %c0_i32 = arith.constant 0 : i32
    %c0_i32_0 = arith.constant 0 : i32
    %c0_i32_1 = arith.constant 0 : i32
    %c0_i32_2 = arith.constant 0 : i32
    return %arg0, %c0_i32, %c0_i32_0, %c0_i32_1 : i32, i32, i32, i32
  }
  func.func @transform_1(%arg0: i32) -> i32 {
    %c0_i32 = arith.constant 0 : i32
    %c0_i32_0 = arith.constant 0 : i32
    return %c0_i32 : i32
  }
  func.func @transform_2(%arg0: i32) -> i32 {
    %c0_i32 = arith.constant 0 : i32
    %c0_i32_0 = arith.constant 0 : i32
    return %c0_i32 : i32
  }
  func.func @transform_3(%arg0: i32) -> (i32, i32, i32, i32) {
    %c0_i32 = arith.constant 0 : i32
    %c0_i32_0 = arith.constant 0 : i32
    %c0_i32_1 = arith.constant 0 : i32
    %c0_i32_2 = arith.constant 0 : i32
    return %arg0, %c0_i32, %c0_i32_0, %c0_i32_1 : i32, i32, i32, i32
  }
}

</mosaic_0001>

<bundles_post_ra>
// kernel: shortcut_block_forward.1
= control target key start
LH: loop header
LB: loop body
LE: loop exit
PB: predicated region body
PF: predicated region fallthrough
CT: control target
= control target key end

     0   :  { %s3527_s0 = inlined_call_operand.vmem [shape: f32[2,4,16,128], index: 0, kind: input, shape index: {}]   ;;  %s3528_s1 = inlined_call_operand.vmem [shape: f32[144], index: 1, kind: input, shape index: {}]   ;;  %s3529_s2 = inlined_call_operand.vmem [shape: f32[4], index: 2, kind: input, shape index: {}]   ;;  %s3530_s3 = inlined_call_operand.hbm [shape: f32[2,4,16,128], index: 3, kind: output, shape index: {}]  }
   0x1   :  { %3701 = sst [smem:[#allocation172_spill]] %s3527_s0 }
   0x2   :  { %3702 = sst [smem:[#allocation173_spill]] %s3528_s1 }
   0x3   :  { %3703 = sst [smem:[#allocation174_spill]] %s3529_s2 }
   0x4   :  { %3704 = sst [smem:[#allocation175_spill]] %s3530_s3 }
   0x5   :  { %8 = vsyncpa [#allocation4], 0 }
   0x6   :  { %9 = vsyncpa [#allocation6], 0 }
   0x7   :  { %10 = vsyncpa [#allocation3], 0 }
   0x8   :  { %12 = vsyncpa [#allocation3 + $0x1], 0  ;;  %s1784_s12 = smov 0   ;;  %s1786_s13 = smov 0  }
   0x9   :  { %s1788_s14 = smov 0   ;;  %s1790_s15 = smov 0  }
   0xa LB: > { %3705 = sst [smem:[#allocation11_spill]] %s1743_s12  ;;  %s1805_s16 = sadd.s32 4294967295, %s1755_s15   ;;  %s1755_s15 = sphi %s1790_s15, %s4274_s15   ;;  %s1751_s14 = sphi %s1788_s14, %s4277_s14   ;;  %s1747_s13 = sphi %s1786_s13, %s4276_s13   ;;  %s1743_s12 = sphi %s1784_s12, %s4275_s12  }
   0xb   : > { %3706 = sst [smem:[#allocation12_spill]] %s1747_s13  ;;  %s1407_s17 = sadd.s32 4294967294, %s1755_s15  }
   0xc   : > { %3707 = sst [smem:[#allocation13_spill]] %s1751_s14  ;;  %s1809_s18 = sadd.s32 1, %s1755_s15  }
   0xd   : > { %3708 = sst [smem:[#allocation14_spill]] %s1755_s15  ;;  %s93_s19 = sadd.s32 1, %s1751_s14 }
   0xe   : > { %3709 = sst [smem:[#allocation15_spill]] %s1805_s16  ;;  %s90_s20 = ssub.s32 %s1755_s15, %s1809_s18 }
   0xf   : > { %3710 = sst [smem:[#allocation16_spill]] %s1809_s18  ;;  %p103_p0 = scmp.ne.s32.totalorder %s1751_s14, %s1747_s13 }
  0x10   : > { %p91_p1 = scmp.eq.s32.totalorder %s90_s20, 0  ;;  %p104_p2 = scmp.eq.s32.totalorder %s1805_s16, 1 }
  0x11   : > { %p109_p3 = scmp.ne.s32.totalorder %s1747_s13, %s1743_s12  ;;  %p110_p4 = scmp.eq.s32.totalorder %s1407_s17, 1 }
  0x12   : > { %s1820_s21 = scalar_select %p91_p1, %s1751_s14, %s93_s19  }
  0x13   : > { %p1822_p5 = por %p104_p2, %p103_p0  ;;  %p1826_p6 = por %p110_p4, %p109_p3 }
  0x14   : > { %3711 = sst [smem:[#allocation17_spill]] %s1820_s21  ;;  %p1408_p7 = scmp.ge.s32.totalorder %s1755_s15, 1 }
  0x15   : > { %s3712_s22 = scalar_select %p1822_p5, 1, 0 }
  0x16   : > { %s3714_s23 = scalar_select %p1826_p6, 1, 0 }
  0x17   : > { %3713 = sst [smem:[#allocation18_spill]] %s3712_s22  ;;  %p117_p8 = scmp.lt.s32.totalorder %s1755_s15, 3 }
  0x18   : > { %3715 = sst [smem:[#allocation19_spill]] %s3714_s23  ;;  %p3531_p9 = scmp.eq.s32.totalorder %s1805_s16, 0 }
  0x19   : > { %p1833_p10 = pnand %p1408_p7, %p117_p8  ;;  %s3717_s1 = sld [smem:[#allocation173_spill]] }
  0x1a   : > { %s3718_s2 = sld [smem:[#allocation174_spill]] }
  0x1b   : > { %s3716_s24 = scalar_select %p1833_p10, 1, 0 }
  0x1c   : > { %p1599_p11 = pneg %p1833_p10 }
  0x1e   : > { %p1847_p12 = pnand %p3531_p9, %p1599_p11 }
  0x1f   : > { %s130_s27 = sshll.u32 %s3717_s1, 4  ;;  %s131_s27 = int_to_ptr.vmem [resolvable:$true] %s130_s27 }
  0x20   : > { %s141_s30 = sshll.u32 %s3718_s2, 4  ;;  %s1655_s5 = scalar_lea.vmem %s131_s27, 32  ;;  %s142_s30 = int_to_ptr.vmem [resolvable:$true] %s141_s30 }
  0x21   : > { %p1656_p13 = scmp.ne.s32.totalorder %s131_s27, %s1655_s5  ;;  %p1657_p0 = pneg %p1847_p12 }
  0x22   : > { %p1663_p3 = scmp.lt.s32.totalorder %s131_s27, %s131_s27  ;;  %p1664_p4 = scmp.lt.s32.totalorder %s1655_s5, %s1655_s5 }
  0x23   : > { %p1658_p1 = pnand %p1657_p0, %p1656_p13 }
  0x24   : > { %p1665_p7 = por %p1664_p4, %p1663_p3 }
  0x25   : > { %p1659_p2 = pneg %p1658_p1 }
  0x27   : > { %p1666_p8 = pnand %p1665_p7, %p1659_p2 }
  0x29   : > { %1669 = shalt.err (!%p1666_p8)
}
  0x2a   : > { %s1757_s6 = smov [#allocation2]   ;;  %s1670_s7 = scalar_lea.vmem %s142_s30, 16 }
  0x2b   : > { %1602 = dma.vmem_to_smem (!%p1847_p12), %s131_s27, 32, %s1757_s6, [#allocation4]  }
  0x2c   : > { %p1671_p11 = scmp.ne.s32.totalorder %s142_s30, %s1670_s7  ;;  %p1678_p5 = scmp.lt.s32.totalorder %s142_s30, %s142_s30 }
  0x2d   : > { %p1679_p10 = scmp.lt.s32.totalorder %s1670_s7, %s1670_s7 }
  0x2e   : > { %p1673_p9 = pnand %p1671_p11, %p1657_p0 }
  0x2f   : > { %p1680_p13 = por %p1679_p10, %p1678_p5 }
  0x30   : > { %p1674_p6 = pneg %p1673_p9 }
  0x32   : > { %p1681_p1 = pnand %p1680_p13, %p1674_p6 }
  0x34   : > { %1684 = shalt.err (!%p1681_p1)
}
  0x35   : > { %s1758_s8 = smov [#allocation5]   ;;  %p3720_p2 = scmp.ne.s32.totalorder %s3716_s24, 0 }
  0x36   : > { %1605 = dma.vmem_to_smem (!%p1847_p12), %s142_s30, 16, %s1758_s8, [#allocation6]  }
  0x37   : > { %162 = sbr.rel (%p3720_p2) target bundleno = 406 (0x196), region = 32 }
  0x3e   : > { %p3721_p3 = scmp.eq.s32.totalorder %s1805_s16, 0 }
  0x40   : > { %1730 = dma.done.wait (%p3721_p3), [#allocation4], 32   ;;  %p3722_p4 = pmov %p3721_p3 }
  0x41   : > { %p3723_p9 = pmov %p3721_p3 }
  0x42   : > { %1732 = vsyncadd (%p3722_p4), [#allocation4], 4294967264 }
  0x43   : > { %1734 = dma.done.wait (%p3723_p9), [#allocation6], 16   ;;  %p3724_p5 = pmov %p3721_p3 }
  0x45   : > { %1736 = vsyncadd (%p3724_p5), [#allocation6], 4294967280 }
  0x46   : > { %172 = sfence }
  0x47   : > { %p191_p6 = scmp.lt.s32.totalorder %s1805_s16, 1  ;;  %v196_v0 = vlaneseq  ;;  %s3725_s0 = sld [smem:[#allocation172_spill]] }
  0x48   : > { %s3534_s20 = smov 1   ;;  %s3536_s24 = smov 127  }
  0x49   : > { %s192_s9 = scalar_select %p191_p6, %s1805_s16, 1  ;;  %v1870_v1 = vshrl.u32 %v196_v0, 7  ;;  %v2127_v46 = vand.u32 127, %v196_v0 }
  0x4a   : > { %s2020_s25 = sld [smem:[#allocation2 + $0x3]]  ;;  %s2022_s26 = sld [smem:[#allocation2 + $0x27]] }
  0x4b   : > { %s1587_s10 = sshll.u32 %s192_s9, 6  ;;  %vm219_vm0 = vcmp.lt.s32.totalorder %v1870_v1, 1  ;;  %vm199_vm1 = vcmp.eq.s32.totalorder %v1870_v1, 0  ;;  %v1912_v11 = vadd.s32 8, %v1870_v1  ;;  %vm394_vm2 = vcmp.lt.s32.totalorder %v1870_v1, 7  ;;  %s2026_s27 = sld [smem:[#allocation2 + $0x4b]] }
  0x4c   : > { %s2028_s28 = sld [smem:[#allocation2 + $0x6f]]  ;;  %s2030_s29 = sld [smem:[#allocation2 + $0x2]]  ;;  %vm205_vm4 = vcmp.eq.s32.totalorder %v2127_v46, 0  ;;  %vm206_vm5 = vcmp.eq.s32.totalorder %v2127_v46, 127 }
  0x4d   : > { %s1875_s19 = scalar_lea.vmem %s3725_s0, %s1587_s10  ;;  %vm202_vm3 = vcmp.eq.s32.totalorder %v1912_v11, 15  ;;  %s2032_s30 = sld [smem:[#allocation2 + $0x26]] }
  0x4e   : > { %3726 = sst [smem:[#allocation20_spill]] %s1875_s19  ;;  %v1878_v2 = vld [vmem:[%s1875_s19 + $0x8] sm:$0xff]  ;;  %v1881_v3 = vld [vmem:[%s1875_s19] sm:$0xff]  ;;  %v1898_v8 = vld [vmem:[%s1875_s19 + $0x30] sm:$0xff]  ;;  %s2038_s4 = sld [smem:[#allocation2 + $0x4a]] }
  0x4f   : > { %310 = vrot.lane.b32.xlu1 %v1878_v2, %s3534_s20  ;;  %308 = vrot.lane.b32.xlu0 %v1881_v3, %s3534_s20  ;;  %v217_v4 = vrot.slane %v1881_v3, 7  ;;  %v218_v5 = vrot.slane %v1878_v2, 7  ;;  %v1901_v9 = vld [vmem:[%s1875_s19 + $0x38] sm:$0xff]  ;;  %v392_v12 = vrot.slane %v1881_v3, 1  ;;  %v393_v13 = vrot.slane %v1878_v2, 1  ;;  %v1949_v23 = vld [vmem:[%s1875_s19 + $0x10] sm:$0xff] }
  0x50   : > { %v1020_v14 = vrot.slane %v1898_v8, 7  ;;  %v1021_v15 = vrot.slane %v1901_v9, 7  ;;  %v1194_v16 = vrot.slane %v1898_v8, 1  ;;  %v1195_v17 = vrot.slane %v1901_v9, 1  ;;  %v1952_v24 = vld [vmem:[%s1875_s19 + $0x18] sm:$0xff]  ;;  %v2003_v35 = vld [vmem:[%s1875_s19 + $0x20] sm:$0xff] }
  0x51   : > { %v1892_v6 = vsel %vm219_vm0, %v217_v4, %v218_v5  ;;  %v221_v7 = vsel %vm219_vm0, %v218_v5, %v217_v4  ;;  %v396_v20 = vsel %vm394_vm2, %v393_v13, %v392_v12  ;;  %v1964_v26 = vsel %vm394_vm2, %v392_v12, %v393_v13  ;;  %v2006_v36 = vld [vmem:[%s1875_s19 + $0x28] sm:$0xff]  ;;  %3727 = sst [smem:[#allocation21_spill]] %s2020_s25  ;;  %s2040_s5 = sld [smem:[#allocation2 + $0x6e]] }
  0x52   : > { %v1909_v10 = vsel %vm199_vm1, 0.0, %v221_v7  ;;  %v1023_v18 = vsel %vm219_vm0, %v1021_v15, %v1020_v14  ;;  %v1197_v19 = vsel %vm394_vm2, %v1195_v17, %v1194_v16  ;;  %v1960_v25 = vsel %vm202_vm3, 0.0, %v396_v20  ;;  %3728 = sst [smem:[#allocation22_spill]] %s2022_s26  ;;  %s2042_s6 = sld [smem:[#allocation5]] }
  0x53   : > { %232 = vrot.lane.b32.xlu1 %v1892_v6, %s3536_s24  ;;  %226 = vrot.lane.b32.xlu0 %v1892_v6, %s3534_s20  ;;  %v1942_v21 = vsel %vm199_vm1, 0.0, %v1023_v18  ;;  %v1946_v22 = vsel %vm202_vm3, 0.0, %v1197_v19  ;;  %v486_v27 = vrot.slane %v1949_v23, 7  ;;  %v487_v28 = vrot.slane %v1952_v24, 7  ;;  %3729 = sst [smem:[#allocation23_spill]] %s2026_s27  ;;  %s2044_s7 = sld [smem:[#allocation5 + $0x1]] }
  0x54   : > { %v660_v32 = vrot.slane %v1949_v23, 1  ;;  %v661_v33 = vrot.slane %v1952_v24, 1  ;;  %v753_v39 = vrot.slane %v2003_v35, 7  ;;  %v754_v40 = vrot.slane %v2006_v36, 7  ;;  %3730 = sst [smem:[#allocation24_spill]] %s2028_s28  ;;  %s2048_s8 = sld [smem:[#allocation5 + $0x2]] }
  0x55   : > { %v489_v29 = vsel %vm219_vm0, %v487_v28, %v486_v27  ;;  %v1980_v30 = vsel %vm219_vm0, %v486_v27, %v487_v28  ;;  %3731 = sst [smem:[#allocation25_spill]] %s2030_s29  ;;  %s2050_s9 = sld [smem:[#allocation5 + $0x3]]  ;;  %v927_v44 = vrot.slane %v2003_v35, 1  ;;  %v928_v45 = vrot.slane %v2006_v36, 1 }
  0x56   : > { %v1984_v31 = vsel %vm199_vm1, 0.0, %v489_v29  ;;  %v663_v34 = vsel %vm394_vm2, %v661_v33, %v660_v32  ;;  %v2018_v38 = vsel %vm394_vm2, %v660_v32, %v661_v33  ;;  %3732 = sst [smem:[#allocation26_spill]] %s2032_s30  ;;  %v756_v41 = vsel %vm219_vm0, %v754_v40, %v753_v39  ;;  %s2052_s10 = sld [smem:[#allocation2]] }
  0x57   : > { %230 = vrot.lane.b32.xlu1 %v1909_v10, %s3536_s24  ;;  %224 = vrot.lane.b32.xlu0 %v1909_v10, %s3534_s20  ;;  %v2014_v37 = vsel %vm202_vm3, 0.0, %v663_v34  ;;  %3733 = sst [smem:[#allocation27_spill]] %s2038_s4  ;;  %s2054_s11 = sld [smem:[#allocation2 + $0x24]]  ;;  %v2066_v42 = vsel %vm219_vm0, %v753_v39, %v754_v40  ;;  %v2070_v43 = vsel %vm199_vm1, 0.0, %v756_v41  ;;  %v930_v48 = vsel %vm394_vm2, %v928_v45, %v927_v44 }
  0x58   : > { %3734 = sst [smem:[#allocation28_spill]] %s2040_s5  ;;  %s2060_s17 = sld [smem:[#allocation2 + $0x48]]  ;;  %v2142_v49 = vsel %vm394_vm2, %v927_v44, %v928_v45  ;;  %v2150_v50 = vsel %vm219_vm0, %v1020_v14, %v1021_v15  ;;  %v2179_v60 = vsel %vm202_vm3, 0.0, %v930_v48  ;;  %v2187_v61 = vsel %vm394_vm2, %v1194_v16, %v1195_v17 }
  0x59   : > { %3735 = sst [smem:[#allocation29_spill]] %s2042_s6  ;;  %s2072_s0 = sld [smem:[#allocation2 + $0x1]]  ;;  %3762 = vst [vmem:[#allocation54_spill] sm:$0xff] %v2187_v61 }
  0x5a   : > { %3736 = sst [smem:[#allocation30_spill]] %s2044_s7  ;;  %s2074_s1 = sld [smem:[#allocation2 + $0x25]] }
  0x5b   : > { %316 = vrot.lane.b32.xlu1 %v1878_v2, %s3536_s24  ;;  %314 = vrot.lane.b32.xlu0 %v1881_v3, %s3536_s24  ;;  %3737 = sst [smem:[#allocation31_spill]] %s2048_s8  ;;  %s2076_s2 = sld [smem:[#allocation2 + $0x49]] }
  0x5c   : > { %3738 = sst [smem:[#allocation32_spill]] %s2050_s9  ;;  %s2082_s14 = sld [smem:[#allocation2 + $0x28]] }
  0x5d   : > { %3739 = sst [smem:[#allocation33_spill]] %s2052_s10  ;;  %s2078_s21 = sld [smem:[#allocation2 + $0x6d]] }
  0x5e   : > { %3740 = sst [smem:[#allocation34_spill]] %s2054_s11  ;;  %s3743_s18 = smov 1  }
  0x5f   : > { %401 = vrot.lane.b32.xlu1 %v1960_v25, %s3534_s20  ;;  %399 = vrot.lane.b32.xlu0 %v1964_v26, %s3534_s20  ;;  %3741 = sst [smem:[#allocation35_spill]] %s2060_s17  ;;  %s2088_s23 = sld [smem:[#allocation2 + $0x4c]]  ;;  %v261_v59 = vstv %s2072_s0 }
  0x60   : > { %s2090_s12 = sld [smem:[#allocation2 + $0x70]]  ;;  %s2092_s15 = sld [smem:[#allocation2 + $0x5]]  ;;  %v267_v4 = vstv %s2074_s1  ;;  %v2207_v13 = vmul.f32 %v261_v59, %v1892_v6  ;;  %v2240_v28 = vmul.f32 %v261_v59, %v1909_v10 }
  0x61   : > { %s2094_s3 = sld [smem:[#allocation2 + $0x29]]  ;;  %s2096_s22 = sld [smem:[#allocation2 + $0x4d]]  ;;  %v273_v5 = vstv %s2076_s2  ;;  %v2227_v19 = vmul.f32 %v267_v4, %v1892_v6  ;;  %v2243_v29 = vmul.f32 %v267_v4, %v1909_v10 }
  0x62   : > { %s2098_s16 = sld [smem:[#allocation2 + $0x71]]  ;;  %s2100_s19 = sld [smem:[#allocation2 + $0x6]]  ;;  %v351_v15 = vstv %s2082_s14  ;;  %v2230_v20 = vmul.f32 %v273_v5, %v1892_v6  ;;  %v2246_v32 = vmul.f32 %v273_v5, %v1909_v10 }
  0x63   : > { %407 = vrot.lane.b32.xlu1 %v1960_v25, %s3536_s24  ;;  %405 = vrot.lane.b32.xlu0 %v1964_v26, %s3536_s24  ;;  %s2102_s13 = sld [smem:[#allocation2 + $0x2a]]  ;;  %s2153_s25 = sld [smem:[#allocation2 + $0x9]]  ;;  %v279_v7 = vstv %s2078_s21  ;;  %v2259_v34 = vmul.f32 %v351_v15, %v1878_v2  ;;  %v2287_v48 = vmul.f32 %v351_v15, %v1881_v3 }
  0x64   : > { %s2169_s26 = sld [smem:[#allocation2 + $0xa]]  ;;  %s2171_s27 = sld [smem:[#allocation2 + $0x2e]]  ;;  %v2233_v27 = vmul.f32 %v279_v7, %v1892_v6  ;;  %v2249_v33 = vmul.f32 %v279_v7, %v1909_v10 }
  0x65   : > { %s2191_s0 = sld [smem:[#allocation2 + $0x52]]  ;;  %s2193_s6 = sld [smem:[#allocation2 + $0x76]]  ;;  %v357_v16 = vstv %s2088_s23 }
  0x66   : > { %3744 = sst [smem:[#allocation37_spill]] %s2090_s12  ;;  %s2108_s12 = sld [smem:[#allocation2 + $0x4e]]  ;;  %v2262_v39 = vmul.f32 %v357_v16, %v1878_v2  ;;  %v2296_v5 = vmul.f32 %v357_v16, %v1881_v3 }
  0x67   : > { %494 = vrot.lane.b32.xlu1 %v1980_v30, %s3534_s20  ;;  %492 = vrot.lane.b32.xlu0 %v1984_v31, %s3534_s20  ;;  %3745 = sst [smem:[#allocation38_spill]] %s2092_s15  ;;  %s2110_s15 = sld [smem:[#allocation2 + $0x72]] }
  0x68   : > { %3746 = sst [smem:[#allocation39_spill]] %s2094_s3  ;;  %s2122_s3 = sld [smem:[#allocation2 + $0x8]] }
  0x69   : > { %3747 = sst [smem:[#allocation40_spill]] %s2096_s22  ;;  %s2120_s22 = sld [smem:[#allocation2 + $0x73]] }
  0x6a   : > { %3748 = sst [smem:[#allocation41_spill]] %s2098_s16  ;;  %s2114_s16 = sld [smem:[#allocation2 + $0x7]]  ;;  %v535_v0 = vstv %s2171_s27 }
  0x6b   : > { %500 = vrot.lane.b32.xlu1 %v1980_v30, %s3536_s24  ;;  %498 = vrot.lane.b32.xlu0 %v1984_v31, %s3536_s24  ;;  %3749 = sst [smem:[#allocation42_spill]] %s2100_s19  ;;  %s2116_s19 = sld [smem:[#allocation2 + $0x2b]]  ;;  %v541_v63 = vstv %s2191_s0  ;;  %v547_v62 = vstv %s2193_s6  ;;  %v2415_v11 = vmul.f32 %v535_v0, %v1984_v31 }
  0x6c   : > { %3750 = sst [smem:[#allocation43_spill]] %s2102_s13  ;;  %s2118_s13 = sld [smem:[#allocation2 + $0x4f]] }
  0x6d   : > { %3752 = sst [smem:[#allocation44_spill]] %s2108_s12  ;;  %s2124_s12 = sld [smem:[#allocation2 + $0x2c]]  ;;  %3808 = vst [vmem:[#allocation79_spill] sm:$0xff] %v2415_v11 }
  0x6e   : > { %3753 = sst [smem:[#allocation45_spill]] %s2110_s15  ;;  %s2134_s15 = sld [smem:[#allocation2 + $0x50]] }
  0x6f   : > { %578 = vrot.lane.b32.xlu1 %v1952_v24, %s3534_s20  ;;  %576 = vrot.lane.b32.xlu0 %v1949_v23, %s3534_s20  ;;  %3754 = sst [smem:[#allocation46_spill]] %s2122_s3  ;;  %s2136_s3 = sld [smem:[#allocation2 + $0x74]] }
  0x70   : > { %3758 = sst [smem:[#allocation50_spill]] %s2153_s25  ;;  %s3763_s5 = sld [smem:[#allocation37_spill]]  ;;  %v436_v59 = vstv %s2114_s16 }
  0x71   : > { %s2199_s4 = sld [smem:[#allocation2 + $0xb]]  ;;  %s2201_s29 = sld [smem:[#allocation2 + $0x2f]]  ;;  %v442_v4 = vstv %s2116_s19 }
  0x72   : > { %s2209_s8 = sld [smem:[#allocation2 + $0x53]]  ;;  %s2211_s7 = sld [smem:[#allocation2 + $0x77]]  ;;  %v448_v45 = vstv %s2118_s13  ;;  %v2319_v16 = vmul.f32 %v442_v4, %v1960_v25  ;;  %v2355_v44 = vmul.f32 %v442_v4, %v1964_v26 }
  0x73   : > { %584 = vrot.lane.b32.xlu1 %v1952_v24, %s3536_s24  ;;  %582 = vrot.lane.b32.xlu0 %v1949_v23, %s3536_s24  ;;  %3755 = sst [smem:[#allocation47_spill]] %s2124_s12  ;;  %s2163_s12 = sld [smem:[#allocation2 + $0x75]]  ;;  %v2332_v10 = vmul.f32 %v448_v45, %v1960_v25  ;;  %v2358_v58 = vmul.f32 %v448_v45, %v1964_v26  ;;  %v2383_v45 = vmul.f32 %v535_v0, %v1980_v30 }
  0x74   : > { %3756 = sst [smem:[#allocation48_spill]] %s2134_s15  ;;  %s2161_s15 = sld [smem:[#allocation2 + $0x51]]  ;;  %v2431_v0 = vmul.f32 %v547_v62, %v1984_v31 }
  0x75   : > { %3757 = sst [smem:[#allocation49_spill]] %s2136_s3  ;;  %s2155_s3 = sld [smem:[#allocation2 + $0x2d]] }
  0x76   : > { %v363_v17 = vstv %s3763_s5  ;;  %s2217_s1 = sld [smem:[#allocation2 + $0xc]]  ;;  %s2219_s2 = sld [smem:[#allocation2 + $0x30]]  ;;  %3815 = vst [vmem:[#allocation83_spill] sm:$0xff] %v2431_v0 }
  0x77   : > { %668 = vrot.lane.b32.xlu1 %v2014_v37, %s3534_s20  ;;  %666 = vrot.lane.b32.xlu0 %v2018_v38, %s3534_s20  ;;  %s2062_s20 = sld [smem:[#allocation2 + $0x6c]]  ;;  %3764 = sst [smem:[#allocation37_spill]] %s2199_s4  ;;  %v2265_v40 = vmul.f32 %v363_v17, %v1878_v2  ;;  %v2299_v7 = vmul.f32 %v363_v17, %v1881_v3  ;;  %v529_v17 = vstv %s2169_s26 }
  0x78   : > { %3766 = sst [smem:[#allocation55_spill]] %s2201_s29  ;;  %s2235_s23 = sld [smem:[#allocation2 + $0x54]]  ;;  %v2371_v4 = vmul.f32 %v529_v17, %v1980_v30  ;;  %v2412_v55 = vmul.f32 %v529_v17, %v1984_v31  ;;  %v2428_v17 = vmul.f32 %v541_v63, %v1984_v31 }
  0x79   : > { %3761 = sst [smem:[#allocation53_spill]] %s2163_s12  ;;  %s2237_s5 = sld [smem:[#allocation2 + $0x78]] }
  0x7a   : > { %3760 = sst [smem:[#allocation52_spill]] %s2161_s15  ;;  %s2251_s30 = sld [smem:[#allocation2 + $0xd]]  ;;  %3807 = vst [vmem:[#allocation78_spill] sm:$0xff] %v2412_v55  ;;  %3814 = vst [vmem:[#allocation82_spill] sm:$0xff] %v2428_v17 }
  0x7b   : > { %674 = vrot.lane.b32.xlu1 %v2014_v37, %s3536_s24  ;;  %672 = vrot.lane.b32.xlu0 %v2018_v38, %s3536_s24  ;;  %s2080_s24 = sld [smem:[#allocation2 + $0x4]]  ;;  %3759 = sst [smem:[#allocation51_spill]] %s2155_s3 }
  0x7c   : > { %3767 = sst [smem:[#allocation56_spill]] %s2209_s8  ;;  %s2253_s17 = sld [smem:[#allocation2 + $0x31]] }
  0x7d   : > { %3742 = sst [smem:[#allocation36_spill]] %s2062_s20  ;;  %s3751_s20 = smov 127  }
  0x7e   : > { %3768 = sst [smem:[#allocation57_spill]] %s2211_s7  ;;  %s2269_s10 = sld [smem:[#allocation2 + $0x79]] }
  0x7f   : > { %761 = vrot.lane.b32.xlu1 %v2066_v42, %s3743_s18  ;;  %759 = vrot.lane.b32.xlu0 %v2070_v43, %s3743_s18  ;;  %3769 = sst [smem:[#allocation58_spill]] %s2217_s1  ;;  %s2267_s11 = sld [smem:[#allocation2 + $0x55]] }
  0x80   : > { %3770 = sst [smem:[#allocation59_spill]] %s2219_s2  ;;  %s2275_s28 = sld [smem:[#allocation2 + $0xe]] }
  0x81   : > { %v345_v14 = vstv %s2080_s24  ;;  %3773 = sst [smem:[#allocation60_spill]] %s2235_s23  ;;  %s2277_s23 = sld [smem:[#allocation2 + $0x32]] }
  0x82   : > { %3775 = sst [smem:[#allocation61_spill]] %s2237_s5  ;;  %v2256_v6 = vmul.f32 %v345_v14, %v1878_v2  ;;  %v2284_v2 = vmul.f32 %v345_v14, %v1881_v3  ;;  %s2291_s9 = sld [smem:[#allocation2 + $0x56]]  ;;  %v454_v14 = vstv %s2120_s22  ;;  %v2316_v3 = vmul.f32 %v436_v59, %v1960_v25 }
  0x83   : > { %767 = vrot.lane.b32.xlu1 %v2066_v42, %s3751_s20  ;;  %765 = vrot.lane.b32.xlu0 %v2070_v43, %s3751_s20  ;;  %s2293_s21 = sld [smem:[#allocation2 + $0x7a]]  ;;  %s2311_s19 = sld [smem:[#allocation2 + $0x57]]  ;;  %v2335_v41 = vmul.f32 %v454_v14, %v1960_v25  ;;  %v2352_v25 = vmul.f32 %v436_v59, %v1964_v26  ;;  %v2361_v18 = vmul.f32 %v454_v14, %v1964_v26  ;;  %v613_v26 = vstv %s2251_s30 }
  0x84   : > { %3777 = sst [smem:[#allocation62_spill]] %s2269_s10  ;;  %s2305_s10 = sld [smem:[#allocation2 + $0x33]]  ;;  %v2386_v14 = vmul.f32 %v541_v63, %v1980_v30  ;;  %v2389_v59 = vmul.f32 %v547_v62, %v1980_v30  ;;  %v619_v57 = vstv %s2253_s17  ;;  %v2440_v12 = vmul.f32 %v1952_v24, %v613_v26 }
  0x85   : > { %s2323_s13 = sld [smem:[#allocation2 + $0x10]]  ;;  %s2325_s22 = sld [smem:[#allocation2 + $0x34]]  ;;  %v625_v30 = vstv %s2267_s11  ;;  %v2443_v54 = vmul.f32 %v1952_v24, %v619_v57  ;;  %v2459_v53 = vmul.f32 %v1949_v23, %v613_v26  ;;  %v2479_v15 = vmul.f32 %v1949_v23, %v619_v57 }
  0x86   : > { %3778 = sst [smem:[#allocation63_spill]] %s2275_s28  ;;  %s2303_s28 = sld [smem:[#allocation2 + $0xf]]  ;;  %3800 = vst [vmem:[#allocation76_spill] sm:$0xff] %v2389_v59  ;;  %3818 = vst [vmem:[#allocation86_spill] sm:$0xff] %v2440_v12  ;;  %v2446_v63 = vmul.f32 %v1952_v24, %v625_v30  ;;  %v2482_v1 = vmul.f32 %v1949_v23, %v625_v30 }
  0x87   : > { %845 = vrot.lane.b32.xlu1 %v2006_v36, %s3743_s18  ;;  %843 = vrot.lane.b32.xlu0 %v2003_v35, %s3743_s18  ;;  %3780 = sst [smem:[#allocation64_spill]] %s2277_s23  ;;  %s2339_s23 = sld [smem:[#allocation2 + $0x58]]  ;;  %3819 = vst [vmem:[#allocation87_spill] sm:$0xff] %v2443_v54  ;;  %3825 = vst [vmem:[#allocation92_spill] sm:$0xff] %v2459_v53 }
  0x88   : > { %3784 = sst [smem:[#allocation65_spill]] %s2291_s9  ;;  %s2313_s9 = sld [smem:[#allocation2 + $0x7b]]  ;;  %3820 = vst [vmem:[#allocation88_spill] sm:$0xff] %v2446_v63  ;;  %3828 = vst [vmem:[#allocation95_spill] sm:$0xff] %v2479_v15 }
  0x89   : > { %3786 = sst [smem:[#allocation66_spill]] %s2293_s21  ;;  %s2341_s24 = sld [smem:[#allocation2 + $0x7c]]  ;;  %3829 = vst [vmem:[#allocation96_spill] sm:$0xff] %v2482_v1 }
  0x8a   : > { %3789 = sst [smem:[#allocation68_spill]] %s2305_s10  ;;  %s2347_s14 = sld [smem:[#allocation2 + $0x11]] }
  0x8b   : > { %851 = vrot.lane.b32.xlu1 %v2006_v36, %s3751_s20  ;;  %849 = vrot.lane.b32.xlu0 %v2003_v35, %s3751_s20  ;;  %3791 = sst [smem:[#allocation69_spill]] %s2311_s19  ;;  %s2349_s1 = sld [smem:[#allocation2 + $0x35]]  ;;  %v703_v52 = vstv %s2323_s13 }
  0x8c   : > { %3788 = sst [smem:[#allocation67_spill]] %s2303_s28  ;;  %s2363_s26 = sld [smem:[#allocation2 + $0x59]]  ;;  %v2500_v57 = vmul.f32 %v703_v52, %v2014_v37 }
  0x8d   : > { %s2365_s27 = sld [smem:[#allocation2 + $0x7d]]  ;;  %s2373_s6 = sld [smem:[#allocation2 + $0x12]]  ;;  %v715_v51 = vstv %s2339_s23 }
  0x8e   : > { %3793 = sst [smem:[#allocation70_spill]] %s2313_s9  ;;  %s2375_s0 = sld [smem:[#allocation2 + $0x36]]  ;;  %3831 = vst [vmem:[#allocation98_spill] sm:$0xff] %v2500_v57  ;;  %v2540_v63 = vmul.f32 %v715_v51, %v2018_v38 }
  0x8f   : > { %935 = vrot.lane.b32.xlu1 %v2179_v60, %s3743_s18  ;;  %933 = vrot.lane.b32.xlu0 %v2142_v49, %s3743_s18  ;;  %s3799_s25 = sld [smem:[#allocation62_spill]]  ;;  %s2393_s21 = sld [smem:[#allocation2 + $0x7e]]  ;;  %v721_v47 = vstv %s2341_s24 }
  0x90   : > { %s2391_s15 = sld [smem:[#allocation2 + $0x5a]]  ;;  %s2399_s12 = sld [smem:[#allocation2 + $0x13]]  ;;  %v2509_v30 = vmul.f32 %v721_v47, %v2014_v37  ;;  %3846 = vst [vmem:[#allocation108_spill] sm:$0xff] %v2540_v63 }
  0x91   : > { %3794 = sst [smem:[#allocation71_spill]] %s2349_s1  ;;  %s2401_s2 = sld [smem:[#allocation2 + $0x37]] }
  0x92   : > { %3795 = sst [smem:[#allocation72_spill]] %s2363_s26  ;;  %s2421_s8 = sld [smem:[#allocation2 + $0x38]]  ;;  %3834 = vst [vmem:[#allocation101_spill] sm:$0xff] %v2509_v30  ;;  %v2543_v30 = vmul.f32 %v721_v47, %v2018_v38 }
  0x93   : > { %941 = vrot.lane.b32.xlu1 %v2179_v60, %s3751_s20  ;;  %939 = vrot.lane.b32.xlu0 %v2142_v49, %s3751_s20  ;;  %3796 = sst [smem:[#allocation73_spill]] %s2365_s27  ;;  %s2419_s7 = sld [smem:[#allocation2 + $0x14]] }
  0x94   : > { %3797 = sst [smem:[#allocation74_spill]] %s2373_s6  ;;  %s2407_s6 = sld [smem:[#allocation2 + $0x5b]]  ;;  %3847 = vst [vmem:[#allocation109_spill] sm:$0xff] %v2543_v30 }
  0x95   : > { %3798 = sst [smem:[#allocation75_spill]] %s2375_s0  ;;  %v631_v56 = vstv %s3799_s25  ;;  %s2435_s17 = sld [smem:[#allocation2 + $0x5c]] }
  0x96   : > { %3801 = sst [smem:[#allocation62_spill]] %s2391_s15  ;;  %s2409_s15 = sld [smem:[#allocation2 + $0x7f]]  ;;  %v2449_v31 = vmul.f32 %v1952_v24, %v631_v56  ;;  %v709_v24 = vstv %s2325_s22  ;;  %v2485_v62 = vmul.f32 %v1949_v23, %v631_v56  ;;  %v2506_v56 = vmul.f32 %v715_v51, %v2014_v37 }
  0x97   : > { %1028 = vrot.lane.b32.xlu1 %v2150_v50, %s3743_s18  ;;  %1026 = vrot.lane.b32.xlu0 %v1942_v21, %s3743_s18  ;;  %3803 = sst [smem:[#allocation77_spill]] %s2393_s21  ;;  %s2451_s0 = sld [smem:[#allocation2 + $0x15]]  ;;  %v2503_v23 = vmul.f32 %v709_v24, %v2014_v37  ;;  %v2528_v37 = vmul.f32 %v703_v52, %v2018_v38  ;;  %v796_v53 = vstv %s2399_s12  ;;  %v802_v26 = vstv %s2401_s2 }
  0x98   : > { %3811 = sst [smem:[#allocation81_spill]] %s2421_s8  ;;  %s2437_s16 = sld [smem:[#allocation2 + $0x80]]  ;;  %3821 = vst [vmem:[#allocation89_spill] sm:$0xff] %v2449_v31  ;;  %3830 = vst [vmem:[#allocation97_spill] sm:$0xff] %v2485_v62  ;;  %v2531_v31 = vmul.f32 %v709_v24, %v2018_v38  ;;  %v2560_v38 = vmul.f32 %v796_v53, %v2066_v42  ;;  %v2563_v47 = vmul.f32 %v802_v26, %v2066_v42 }
  0x99   : > { %3809 = sst [smem:[#allocation80_spill]] %s2419_s7  ;;  %s2461_s29 = sld [smem:[#allocation2 + $0x5d]]  ;;  %3832 = vst [vmem:[#allocation99_spill] sm:$0xff] %v2503_v23  ;;  %3833 = vst [vmem:[#allocation100_spill] sm:$0xff] %v2506_v56  ;;  %v2599_v51 = vmul.f32 %v802_v26, %v2070_v43 }
  0x9a   : > { %s2453_s3 = sld [smem:[#allocation2 + $0x39]]  ;;  %s2471_s30 = sld [smem:[#allocation2 + $0x3a]]  ;;  %3842 = vst [vmem:[#allocation105_spill] sm:$0xff] %v2528_v37  ;;  %3843 = vst [vmem:[#allocation106_spill] sm:$0xff] %v2531_v31  ;;  %v808_v56 = vstv %s2407_s6 }
  0x9b   : > { %1034 = vrot.lane.b32.xlu1 %v2150_v50, %s3751_s20  ;;  %1032 = vrot.lane.b32.xlu0 %v1942_v21, %s3751_s20  ;;  %3816 = sst [smem:[#allocation84_spill]] %s2435_s17  ;;  %s2463_s4 = sld [smem:[#allocation2 + $0x81]]  ;;  %3848 = vst [vmem:[#allocation110_spill] sm:$0xff] %v2560_v38  ;;  %3849 = vst [vmem:[#allocation111_spill] sm:$0xff] %v2563_v47  ;;  %v2576_v23 = vmul.f32 %v808_v56, %v2066_v42  ;;  %v2602_v31 = vmul.f32 %v808_v56, %v2070_v43 }
  0x9c   : > { %s2487_s23 = sld [smem:[#allocation2 + $0x5e]]  ;;  %s2489_s24 = sld [smem:[#allocation2 + $0x82]]  ;;  %v814_v52 = vstv %s2409_s15  ;;  %3854 = vst [vmem:[#allocation115_spill] sm:$0xff] %v2599_v51 }
  0x9d   : > { %3822 = sst [smem:[#allocation90_spill]] %s2451_s0  ;;  %s2469_s0 = sld [smem:[#allocation2 + $0x16]]  ;;  %3850 = vst [vmem:[#allocation112_spill] sm:$0xff] %v2576_v23  ;;  %v2579_v37 = vmul.f32 %v814_v52, %v2066_v42  ;;  %v2596_v42 = vmul.f32 %v796_v53, %v2070_v43  ;;  %3855 = vst [vmem:[#allocation116_spill] sm:$0xff] %v2602_v31 }
  0x9e   : > { %3817 = sst [smem:[#allocation85_spill]] %s2437_s16  ;;  %s2495_s13 = sld [smem:[#allocation2 + $0x17]] }
  0x9f   : > { %1112 = vrot.lane.b32.xlu1 %v1901_v9, %s3743_s18  ;;  %1110 = vrot.lane.b32.xlu0 %v1898_v8, %s3743_s18  ;;  %3826 = sst [smem:[#allocation93_spill]] %s2461_s29  ;;  %s2497_s22 = sld [smem:[#allocation2 + $0x3b]]  ;;  %3851 = vst [vmem:[#allocation113_spill] sm:$0xff] %v2579_v37  ;;  %3853 = vst [vmem:[#allocation114_spill] sm:$0xff] %v2596_v42  ;;  %v2605_v37 = vmul.f32 %v814_v52, %v2070_v43 }
  0xa0   : > { %3824 = sst [smem:[#allocation91_spill]] %s2453_s3  ;;  %s2511_s19 = sld [smem:[#allocation2 + $0x5f]]  ;;  %v886_v47 = vstv %s2471_s30 }
  0xa1   : > { %3827 = sst [smem:[#allocation94_spill]] %s2463_s4  ;;  %s2513_s9 = sld [smem:[#allocation2 + $0x83]]  ;;  %3856 = vst [vmem:[#allocation117_spill] sm:$0xff] %v2605_v37  ;;  %v2623_v56 = vmul.f32 %v2006_v36, %v886_v47  ;;  %v2655_v37 = vmul.f32 %v2003_v35, %v886_v47 }
  0xa2   : > { %s2519_s10 = sld [smem:[#allocation2 + $0x18]]  ;;  %s3838_s28 = sld [smem:[#allocation74_spill]]  ;;  %v892_v38 = vstv %s2487_s23  ;;  %v898_v30 = vstv %s2489_s24 }
  0xa3   : > { %1118 = vrot.lane.b32.xlu1 %v1901_v9, %s3751_s20  ;;  %1116 = vrot.lane.b32.xlu0 %v1898_v8, %s3751_s20  ;;  %s2521_s5 = sld [smem:[#allocation2 + $0x3c]]  ;;  %s3840_s11 = sld [smem:[#allocation75_spill]]  ;;  %v880_v24 = vstv %s2469_s0  ;;  %3858 = vst [vmem:[#allocation119_spill] sm:$0xff] %v2623_v56  ;;  %v2626_v52 = vmul.f32 %v2006_v36, %v892_v38  ;;  %v2629_v42 = vmul.f32 %v2006_v36, %v898_v30  ;;  %3866 = vst [vmem:[#allocation127_spill] sm:$0xff] %v2655_v37 }
  0xa4   : > { %s2535_s27 = sld [smem:[#allocation2 + $0x60]]  ;;  %s2537_s26 = sld [smem:[#allocation2 + $0x84]]  ;;  %v2620_v43 = vmul.f32 %v2006_v36, %v880_v24  ;;  %v2652_v53 = vmul.f32 %v2003_v35, %v880_v24  ;;  %v2658_v23 = vmul.f32 %v2003_v35, %v892_v38  ;;  %v2661_v26 = vmul.f32 %v2003_v35, %v898_v30 }
  0xa5   : > { %s2549_s1 = sld [smem:[#allocation2 + $0x3d]]  ;;  %s2555_s12 = sld [smem:[#allocation2 + $0x61]]  ;;  %3859 = vst [vmem:[#allocation120_spill] sm:$0xff] %v2626_v52  ;;  %3860 = vst [vmem:[#allocation121_spill] sm:$0xff] %v2629_v42 }
  0xa6   : > { %3835 = sst [smem:[#allocation102_spill]] %s2511_s19  ;;  %s2557_s2 = sld [smem:[#allocation2 + $0x85]]  ;;  %3857 = vst [vmem:[#allocation118_spill] sm:$0xff] %v2620_v43  ;;  %3865 = vst [vmem:[#allocation126_spill] sm:$0xff] %v2652_v53 }
  0xa7   : > { %3836 = sst [smem:[#allocation103_spill]] %s2513_s9  ;;  %1202 = vrot.lane.b32.xlu1 %v1946_v22, %s3743_s18  ;;  %1200 = vrot.lane.b32.xlu0 %v2187_v61, %s3743_s18  ;;  %s2547_s18 = sld [smem:[#allocation2 + $0x19]]  ;;  %3867 = vst [vmem:[#allocation128_spill] sm:$0xff] %v2658_v23  ;;  %3868 = vst [vmem:[#allocation129_spill] sm:$0xff] %v2661_v26 }
  0xa8   : > { %3837 = sst [smem:[#allocation104_spill]] %s2519_s10  ;;  %s2567_s15 = sld [smem:[#allocation2 + $0x1a]] }
  0xa9   : > { %3839 = sst [smem:[#allocation74_spill]] %s2521_s5  ;;  %s2583_s8 = sld [smem:[#allocation2 + $0x62]] }
  0xaa   : > { %3844 = sst [smem:[#allocation75_spill]] %s2535_s27  ;;  %s2569_s6 = sld [smem:[#allocation2 + $0x3e]] }
  0xab   : > { %3845 = sst [smem:[#allocation107_spill]] %s2537_s26  ;;  %1208 = vrot.lane.b32.xlu1 %v1946_v22, %s3751_s20  ;;  %1206 = vrot.lane.b32.xlu0 %v2187_v61, %s3751_s20  ;;  %s2585_s7 = sld [smem:[#allocation2 + $0x86]]  ;;  %v976_v56 = vstv %s2549_s1  ;;  %v982_v36 = vstv %s2555_s12 }
  0xac   : > { %s2591_s20 = sld [smem:[#allocation2 + $0x1b]]  ;;  %s2593_s25 = sld [smem:[#allocation2 + $0x3f]]  ;;  %v988_v42 = vstv %s2557_s2  ;;  %v2679_v30 = vmul.f32 %v976_v56, %v2179_v60  ;;  %v2682_v38 = vmul.f32 %v982_v36, %v2179_v60  ;;  %v2712_v43 = vmul.f32 %v976_v56, %v2142_v49 }
  0xad   : > { %s2607_s0 = sld [smem:[#allocation2 + $0x1c]]  ;;  %s2609_s30 = sld [smem:[#allocation2 + $0x40]]  ;;  %v970_v52 = vstv %s2547_s18  ;;  %v2685_v53 = vmul.f32 %v988_v42, %v2179_v60  ;;  %v2715_v24 = vmul.f32 %v982_v36, %v2142_v49  ;;  %v2718_v47 = vmul.f32 %v988_v42, %v2142_v49 }
  0xae   : > { %s2615_s23 = sld [smem:[#allocation2 + $0x64]]  ;;  %s2617_s24 = sld [smem:[#allocation2 + $0x88]]  ;;  %v2676_v35 = vmul.f32 %v970_v52, %v2179_v60  ;;  %3870 = vst [vmem:[#allocation131_spill] sm:$0xff] %v2679_v30  ;;  %3871 = vst [vmem:[#allocation132_spill] sm:$0xff] %v2682_v38  ;;  %v2709_v26 = vmul.f32 %v970_v52, %v2142_v49 }
  0xaf   : > { %s2631_s4 = sld [smem:[#allocation2 + $0x63]]  ;;  %s2633_s29 = sld [smem:[#allocation2 + $0x87]]  ;;  %3872 = vst [vmem:[#allocation133_spill] sm:$0xff] %v2685_v53  ;;  %3880 = vst [vmem:[#allocation141_spill] sm:$0xff] %v2712_v43 }
  0xb0   : > { %s2639_s3 = sld [smem:[#allocation2 + $0x1d]]  ;;  %s2641_s21 = sld [smem:[#allocation2 + $0x41]]  ;;  %3869 = vst [vmem:[#allocation130_spill] sm:$0xff] %v2676_v35  ;;  %3879 = vst [vmem:[#allocation140_spill] sm:$0xff] %v2709_v26 }
  0xb1   : > { %s2647_s16 = sld [smem:[#allocation2 + $0x65]]  ;;  %s2649_s17 = sld [smem:[#allocation2 + $0x89]]  ;;  %3881 = vst [vmem:[#allocation142_spill] sm:$0xff] %v2715_v24  ;;  %3882 = vst [vmem:[#allocation143_spill] sm:$0xff] %v2718_v47 }
  0xb2   : > { %s2663_s1 = sld [smem:[#allocation2 + $0x1f]]  ;;  %s2665_s18 = sld [smem:[#allocation2 + $0x43]] }
  0xb3   : > { %s2671_s12 = sld [smem:[#allocation2 + $0x67]]  ;;  %s2673_s2 = sld [smem:[#allocation2 + $0x8b]]  ;;  %v1063_v30 = vstv %s2607_s0  ;;  %v1069_v38 = vstv %s2609_s30 }
  0xb4   : > { %s2687_s26 = sld [smem:[#allocation2 + $0x1e]]  ;;  %s2689_s27 = sld [smem:[#allocation2 + $0x42]]  ;;  %v1075_v60 = vstv %s2615_s23  ;;  %v1081_v53 = vstv %s2617_s24  ;;  %v2729_v43 = vmul.f32 %v1063_v30, %v2150_v50  ;;  %v2732_v36 = vmul.f32 %v1069_v38, %v2150_v50 }
  0xb5   : > { %3861 = sst [smem:[#allocation122_spill]] %s2633_s29  ;;  %s2695_s5 = sld [smem:[#allocation2 + $0x66]]  ;;  %v2735_v49 = vmul.f32 %v1075_v60, %v2150_v50  ;;  %v2738_v42 = vmul.f32 %v1081_v53, %v2150_v50  ;;  %v2758_v50 = vmul.f32 %v1063_v30, %v1942_v21  ;;  %v2761_v52 = vmul.f32 %v1069_v38, %v1942_v21 }
  0xb6   : > { %3862 = sst [smem:[#allocation123_spill]] %s2639_s3  ;;  %s2697_s10 = sld [smem:[#allocation2 + $0x8a]]  ;;  %3885 = vst [vmem:[#allocation146_spill] sm:$0xff] %v2729_v43  ;;  %3886 = vst [vmem:[#allocation147_spill] sm:$0xff] %v2732_v36  ;;  %v2764_v24 = vmul.f32 %v1075_v60, %v1942_v21  ;;  %v2767_v35 = vmul.f32 %v1081_v53, %v1942_v21 }
  0xb7   : > { %3863 = sst [smem:[#allocation124_spill]] %s2647_s16  ;;  %s2703_s9 = sld [smem:[#allocation2 + $0x20]]  ;;  %3887 = vst [vmem:[#allocation148_spill] sm:$0xff] %v2735_v49  ;;  %3888 = vst [vmem:[#allocation149_spill] sm:$0xff] %v2738_v42 }
  0xb8   : > { %3864 = sst [smem:[#allocation125_spill]] %s2649_s17  ;;  %s2705_s19 = sld [smem:[#allocation2 + $0x44]]  ;;  %v1147_v56 = vstv %s2663_s1  ;;  %v1153_v26 = vstv %s2665_s18  ;;  %3893 = vst [vmem:[#allocation154_spill] sm:$0xff] %v2758_v50  ;;  %3894 = vst [vmem:[#allocation155_spill] sm:$0xff] %v2761_v52 }
  0xb9   : > { %s2720_s0 = sld [smem:[#allocation2 + $0x68]]  ;;  %s2722_s30 = sld [smem:[#allocation2 + $0x8c]]  ;;  %v1159_v49 = vstv %s2671_s12  ;;  %v1165_v36 = vstv %s2673_s2  ;;  %3895 = vst [vmem:[#allocation156_spill] sm:$0xff] %v2764_v24  ;;  %3896 = vst [vmem:[#allocation157_spill] sm:$0xff] %v2767_v35  ;;  %v2782_v38 = vmul.f32 %v1901_v9, %v1147_v56  ;;  %v2785_v21 = vmul.f32 %v1901_v9, %v1153_v26 }
  0xba   : > { %3873 = sst [smem:[#allocation134_spill]] %s2687_s26  ;;  %s2746_s24 = sld [smem:[#allocation2 + $0x45]]  ;;  %v2788_v53 = vmul.f32 %v1901_v9, %v1159_v49  ;;  %v2791_v60 = vmul.f32 %v1901_v9, %v1165_v36  ;;  %v2798_v35 = vmul.f32 %v1898_v8, %v1147_v56  ;;  %v2807_v9 = vmul.f32 %v1898_v8, %v1165_v36 }
  0xbb   : > { %3874 = sst [smem:[#allocation135_spill]] %s2689_s27  ;;  %s2744_s23 = sld [smem:[#allocation2 + $0x21]]  ;;  %3897 = vst [vmem:[#allocation158_spill] sm:$0xff] %v2782_v38  ;;  %3898 = vst [vmem:[#allocation159_spill] sm:$0xff] %v2785_v21  ;;  %v2801_v38 = vmul.f32 %v1898_v8, %v1153_v26  ;;  %v2804_v21 = vmul.f32 %v1898_v8, %v1159_v49 }
  0xbc   : > { %3875 = sst [smem:[#allocation136_spill]] %s2695_s5  ;;  %s2753_s29 = sld [smem:[#allocation2 + $0x69]]  ;;  %3899 = vst [vmem:[#allocation160_spill] sm:$0xff] %v2788_v53  ;;  %3900 = vst [vmem:[#allocation161_spill] sm:$0xff] %v2791_v60 }
  0xbd   : > { %3876 = sst [smem:[#allocation137_spill]] %s2697_s10  ;;  %s2755_s3 = sld [smem:[#allocation2 + $0x8d]]  ;;  %3901 = vst [vmem:[#allocation162_spill] sm:$0xff] %v2798_v35  ;;  %3902 = vst [vmem:[#allocation163_spill] sm:$0xff] %v2801_v38 }
  0xbe   : > { %3877 = sst [smem:[#allocation138_spill]] %s2703_s9  ;;  %s2769_s1 = sld [smem:[#allocation2 + $0x22]]  ;;  %3903 = vst [vmem:[#allocation164_spill] sm:$0xff] %v2804_v21  ;;  %3905 = vst [vmem:[#allocation165_spill] sm:$0xff] %v2807_v9 }
  0xbf   : > { %3878 = sst [smem:[#allocation139_spill]] %s2705_s19  ;;  %s2777_s12 = sld [smem:[#allocation2 + $0x6a]] }
  0xc0   : > { %3883 = sst [smem:[#allocation144_spill]] %s2720_s0  ;;  %s2771_s18 = sld [smem:[#allocation2 + $0x46]] }
  0xc1   : > { %3884 = sst [smem:[#allocation145_spill]] %s2722_s30  ;;  %s2779_s2 = sld [smem:[#allocation2 + $0x8e]]  ;;  %v311_v56 = vpop.permute.xlu1 %310  ;;  %v309_v47 = vpop.permute.xlu0 %308 }
  0xc2   : > { %3889 = sst [smem:[#allocation150_spill]] %s2744_s23  ;;  %s3904_s10 = sld [smem:[#allocation21_spill]]  ;;  %v313_v8 = vsel %vm205_vm4, 0.0, %v311_v56  ;;  %v312_v36 = vsel %vm205_vm4, 0.0, %v309_v47 }
  0xc3   : > { %3890 = sst [smem:[#allocation151_spill]] %s2746_s24  ;;  %s3906_s5 = sld [smem:[#allocation22_spill]] }
  0xc4   : > { %3891 = sst [smem:[#allocation152_spill]] %s2753_s29  ;;  %s3907_s0 = sld [smem:[#allocation23_spill]]  ;;  %v1237_v42 = vstv %s2769_s1 }
  0xc5   : > { %3892 = sst [smem:[#allocation153_spill]] %s2755_s3  ;;  %s2809_s9 = sld [smem:[#allocation2 + $0x23]] }
  0xc6   : > { %s2811_s30 = sld [smem:[#allocation2 + $0x47]]  ;;  %s3908_s19 = sld [smem:[#allocation24_spill]]  ;;  %v1243_v9 = vstv %s2771_s18 }
  0xc7   : > { %s2817_s27 = sld [smem:[#allocation2 + $0x6b]]  ;;  %s2819_s26 = sld [smem:[#allocation2 + $0x8f]]  ;;  %v3698_v23 = vstv %s2779_s2  ;;  %v2911_v17 = vmul.f32 %v1243_v9, %v2187_v61 }
  0xc8   : > { %v3909_v26 = vstv %s3904_s10  ;;  %s3913_s3 = sld [smem:[#allocation25_spill]]  ;;  %s3915_s29 = sld [smem:[#allocation26_spill]] }
  0xc9   : > { %v323_v21 = vmul.f32 %v3909_v26, %v313_v8  ;;  %v3910_v30 = vstv %s3906_s5  ;;  %v3914_v56 = vmov %v3909_v26  ;;  %s3917_s24 = sld [smem:[#allocation27_spill]]  ;;  %s3919_s1 = sld [smem:[#allocation28_spill]]  ;;  %3946 = vst [vmem:[#allocation171_spill] sm:$0xff] %v2911_v17 }
  0xca   : > { %v329_v49 = vmul.f32 %v3910_v30, %v313_v8  ;;  %v3911_v50 = vstv %s3907_s0  ;;  %v2839_v53 = vmul.f32 %v3914_v56, %v312_v36  ;;  %v3916_v47 = vmov %v3910_v30  ;;  %s3921_s18 = sld [smem:[#allocation33_spill]]  ;;  %s3922_s23 = sld [smem:[#allocation34_spill]] }
  0xcb   : > { %v335_v38 = vmul.f32 %v3911_v50, %v313_v8  ;;  %v2843_v24 = vmul.f32 %v3916_v47, %v312_v36  ;;  %v3918_v52 = vmov %v3911_v50  ;;  %v233_v50 = vpop.permute.xlu1 %232  ;;  %s3923_s17 = sld [smem:[#allocation35_spill]]  ;;  %s3924_s10 = sld [smem:[#allocation36_spill]]  ;;  %v2857_v56 = vmul.f32 %v1243_v9, %v1946_v22 }
  0xcc   : > { %v3912_v35 = vstv %s3908_s19  ;;  %v2847_v26 = vmul.f32 %v3918_v52, %v312_v36  ;;  %v3697_v47 = vstv %s2777_s12  ;;  %v235_v52 = vsel %vm206_vm5, 0.0, %v233_v50  ;;  %s3928_s5 = sld [smem:[#allocation29_spill]]  ;;  %s3931_s19 = sld [smem:[#allocation30_spill]] }
  0xcd   : > { %v2835_v60 = vmul.f32 %v3912_v35, %v313_v8  ;;  %v3920_v30 = vmov %v3912_v35  ;;  %v227_v35 = vpop.permute.xlu0 %226  ;;  %v2854_v8 = vmul.f32 %v1237_v42, %v1946_v22  ;;  %3926 = vst [vmem:[#allocation167_spill] sm:$0xff] %v2857_v56  ;;  %v2873_v56 = vmul.f32 %v3698_v23, %v1946_v22  ;;  %s3933_s0 = sld [smem:[#allocation31_spill]]  ;;  %s3935_s16 = sld [smem:[#allocation32_spill]] }
  0xce   : > { %v2851_v43 = vmul.f32 %v3920_v30, %v312_v36  ;;  %v229_v36 = vsel %vm205_vm4, 0.0, %v227_v35  ;;  %v2868_v30 = vmul.f32 %v3697_v47, %v1946_v22  ;;  %v3932_v31 = vstv %s3915_s29  ;;  %s3958_s29 = sld [smem:[#allocation39_spill]] }
  0xcf   : > { %3925 = vst [vmem:[#allocation166_spill] sm:$0xff] %v2854_v8  ;;  %3929 = vst [vmem:[#allocation169_spill] sm:$0xff] %v2873_v56  ;;  %v3930_v8 = vstv %s3913_s3  ;;  %v293_v50 = vmul.f32 %v3932_v31, %v235_v52  ;;  %v3934_v51 = vstv %s3917_s24  ;;  %v3936_v35 = vstv %s3919_s1  ;;  %v231_v23 = vpop.permute.xlu1 %230 }
  0xd0   : > { %3927 = vst [vmem:[#allocation168_spill] sm:$0xff] %v2868_v30  ;;  %v287_v37 = vmul.f32 %v3930_v8, %v235_v52  ;;  %v299_v63 = vmul.f32 %v3934_v51, %v235_v52  ;;  %v305_v57 = vmul.f32 %v3936_v35, %v235_v52  ;;  %v3937_v62 = vstv %s3921_s18 }
  0xd1   : > { %v239_v1 = vmul.f32 %v3937_v62, %v229_v36  ;;  %v3938_v47 = vstv %s3922_s23  ;;  %v3939_v15 = vstv %s3923_s17  ;;  %v3940_v12 = vstv %s3924_s10  ;;  %v225_v56 = vpop.permute.xlu0 %224 }
  0xd2   : > { %v245_v30 = vmul.f32 %v3938_v47, %v229_v36  ;;  %v251_v54 = vmul.f32 %v3939_v15, %v229_v36  ;;  %v257_v22 = vmul.f32 %v3940_v12, %v229_v36  ;;  %v3941_v51 = vstv %s3928_s5 }
  0xd3   : > { %v241_v52 = vadd.f32 %v239_v1, %v3941_v51  ;;  %v3942_v35 = vstv %s3931_s19  ;;  %v3943_v11 = vstv %s3933_s0  ;;  %v3944_v55 = vstv %s3935_s16 }
  0xd4   : > { %v247_v62 = vadd.f32 %v245_v30, %v3942_v35  ;;  %v253_v47 = vadd.f32 %v251_v54, %v3943_v11  ;;  %v259_v15 = vadd.f32 %v257_v22, %v3944_v55  ;;  %v234_v12 = vsel %vm206_vm5, 0.0, %v231_v23 }
  0xd5   : > { %v228_v36 = vsel %vm205_vm4, 0.0, %v225_v56  ;;  %v2908_v8 = vmul.f32 %v1237_v42, %v2187_v61  ;;  %v265_v1 = vadd.f32 %v2207_v13, %v241_v52  ;;  %v3947_v23 = vstv %s3913_s3  ;;  %v315_v13 = vpop.permute.xlu0 %314  ;;  %s3956_s3 = sld [smem:[#allocation38_spill]] }
  0xd6   : > { %v271_v54 = vadd.f32 %v2227_v19, %v247_v62  ;;  %v277_v55 = vadd.f32 %v2230_v20, %v253_v47  ;;  %v283_v11 = vadd.f32 %v2233_v27, %v259_v15  ;;  %v286_v56 = vmul.f32 %v3947_v23, %v234_v12 }
  0xd7   : > { %3945 = vst [vmem:[#allocation170_spill] sm:$0xff] %v2908_v8  ;;  %v3948_v30 = vmov %v3932_v31  ;;  %v3949_v22 = vstv %s3917_s24  ;;  %v3950_v35 = vstv %s3919_s1  ;;  %v317_v31 = vpop.permute.xlu1 %316  ;;  %v289_v19 = vadd.f32 %v287_v37, %v265_v1  ;;  %s3960_s24 = sld [smem:[#allocation40_spill]]  ;;  %s3969_s1 = sld [smem:[#allocation44_spill]] }
  0xd8   : > { %v292_v42 = vmul.f32 %v3948_v30, %v234_v12  ;;  %v298_v51 = vmul.f32 %v3949_v22, %v234_v12  ;;  %v304_v9 = vmul.f32 %v3950_v35, %v234_v12  ;;  %v295_v52 = vadd.f32 %v293_v50, %v271_v54 }
  0xd9   : > { %v301_v62 = vadd.f32 %v299_v63, %v277_v55  ;;  %v307_v20 = vadd.f32 %v305_v57, %v283_v11  ;;  %v3951_v47 = vstv %s3921_s18  ;;  %v3952_v15 = vstv %s3922_s23  ;;  %v400_v11 = vpop.permute.xlu0 %399  ;;  %s3968_s23 = sld [smem:[#allocation43_spill]]  ;;  %s3970_s18 = sld [smem:[#allocation45_spill]] }
  0xda   : > { %v238_v27 = vmul.f32 %v3951_v47, %v228_v36  ;;  %v244_v23 = vmul.f32 %v3952_v15, %v228_v36  ;;  %v3953_v0 = vstv %s3923_s17  ;;  %v3954_v17 = vstv %s3924_s10  ;;  %s3962_s17 = sld [smem:[#allocation41_spill]]  ;;  %s3980_s10 = sld [smem:[#allocation46_spill]] }
  0xdb   : > { %v250_v30 = vmul.f32 %v3953_v0, %v228_v36  ;;  %v256_v22 = vmul.f32 %v3954_v17, %v228_v36  ;;  %v319_v12 = vsel %vm206_vm5, 0.0, %v317_v31  ;;  %v325_v35 = vadd.f32 %v323_v21, %v289_v19  ;;  %v402_v0 = vpop.permute.xlu1 %401 }
  0xdc   : > { %v331_v61 = vadd.f32 %v329_v49, %v295_v52  ;;  %v337_v8 = vadd.f32 %v335_v38, %v301_v62  ;;  %v3955_v59 = vstv %s3928_s5  ;;  %v3957_v50 = vstv %s3931_s19  ;;  %s3982_s5 = sld [smem:[#allocation47_spill]]  ;;  %s3984_s19 = sld [smem:[#allocation48_spill]] }
  0xdd   : > { %v240_v37 = vadd.f32 %v238_v27, %v3955_v59  ;;  %v246_v63 = vadd.f32 %v244_v23, %v3957_v50  ;;  %v3959_v57 = vstv %s3933_s0  ;;  %v3961_v54 = vstv %s3935_s16  ;;  %v406_v15 = vpop.permute.xlu0 %405  ;;  %s3967_s16 = sld [smem:[#allocation42_spill]]  ;;  %s3986_s0 = sld [smem:[#allocation49_spill]] }
  0xde   : > { %v252_v1 = vadd.f32 %v250_v30, %v3959_v57  ;;  %v258_v55 = vadd.f32 %v256_v22, %v3961_v54  ;;  %v343_v17 = vadd.f32 %v2835_v60, %v307_v20  ;;  %v349_v31 = vadd.f32 %v2256_v6, %v325_v35 }
  0xdf   : > { %v355_v21 = vadd.f32 %v2259_v34, %v331_v61  ;;  %v361_v38 = vadd.f32 %v2262_v39, %v337_v8  ;;  %v264_v59 = vadd.f32 %v2240_v28, %v240_v37  ;;  %v270_v49 = vadd.f32 %v2243_v29, %v246_v63  ;;  %v408_v28 = vpop.permute.xlu1 %407 }
  0xe0   : > { %v276_v36 = vadd.f32 %v2246_v32, %v252_v1  ;;  %v282_v19 = vadd.f32 %v2249_v33, %v258_v55  ;;  %v367_v52 = vadd.f32 %v2265_v40, %v343_v17  ;;  %v3963_v62 = vstv %s3956_s3  ;;  %s3991_s3 = sld [smem:[#allocation50_spill]] }
  0xe1   : > { %v371_v47 = vmul.f32 %v3963_v62, %v319_v12  ;;  %v3964_v60 = vstv %s3958_s29  ;;  %v3965_v6 = vstv %s3960_s24  ;;  %v288_v61 = vadd.f32 %v286_v56, %v264_v59  ;;  %v493_v50 = vpop.permute.xlu0 %492  ;;  %s3992_s29 = sld [smem:[#allocation51_spill]]  ;;  %s3993_s24 = sld [smem:[#allocation52_spill]] }
  0xe2   : > { %v377_v20 = vmul.f32 %v3964_v60, %v319_v12  ;;  %v383_v27 = vmul.f32 %v3965_v6, %v319_v12  ;;  %v294_v34 = vadd.f32 %v292_v42, %v270_v49  ;;  %v300_v39 = vadd.f32 %v298_v51, %v276_v36 }
  0xe3   : > { %v306_v8 = vadd.f32 %v304_v9, %v282_v19  ;;  %v373_v29 = vadd.f32 %v371_v47, %v349_v31  ;;  %v3966_v32 = vstv %s3962_s17  ;;  %v324_v40 = vadd.f32 %v2839_v53, %v288_v61  ;;  %v495_v37 = vpop.permute.xlu1 %494  ;;  %s3994_s17 = sld [smem:[#allocation53_spill]] }
  0xe4   : > { %v379_v23 = vadd.f32 %v377_v20, %v355_v21  ;;  %v385_v30 = vadd.f32 %v383_v27, %v361_v38  ;;  %v389_v33 = vmul.f32 %v3966_v32, %v319_v12  ;;  %v330_v22 = vadd.f32 %v2843_v24, %v294_v34 }
  0xe5   : > { %v336_v56 = vadd.f32 %v2847_v26, %v300_v39  ;;  %v342_v42 = vadd.f32 %v2851_v43, %v306_v8  ;;  %v318_v9 = vsel %vm206_vm5, 0.0, %v315_v13  ;;  %v404_v12 = vsel %vm205_vm4, 0.0, %v402_v0 }
  0xe6   : > { %v391_v51 = vadd.f32 %v389_v33, %v367_v52  ;;  %v403_v53 = vsel %vm205_vm4, 0.0, %v400_v11  ;;  %v348_v24 = vadd.f32 %v2284_v2, %v324_v40  ;;  %v354_v26 = vadd.f32 %v2287_v48, %v330_v22  ;;  %v3003_v22 = vpop.permute.xlu0 %498 }
  0xe7   : > { %v360_v35 = vadd.f32 %v2296_v5, %v336_v56  ;;  %v366_v43 = vadd.f32 %v2299_v7, %v342_v42  ;;  %v3971_v63 = vmov %v3963_v62  ;;  %v3972_v13 = vmov %v3964_v60  ;;  %v501_v40 = vpop.permute.xlu1 %500 }
  0xe8   : > { %v370_v57 = vmul.f32 %v3971_v63, %v318_v9  ;;  %v376_v1 = vmul.f32 %v3972_v13, %v318_v9  ;;  %v3973_v54 = vmov %v3965_v6  ;;  %v3974_v0 = vmov %v3966_v32 }
  0xe9   : > { %v382_v55 = vmul.f32 %v3973_v54, %v318_v9  ;;  %v388_v11 = vmul.f32 %v3974_v0, %v318_v9  ;;  %v3975_v2 = vstv %s3967_s16  ;;  %v3976_v17 = vstv %s3968_s23  ;;  %s4004_s16 = sld [smem:[#allocation37_spill]]  ;;  %s4006_s23 = sld [smem:[#allocation55_spill]] }
  0xea   : > { %v414_v48 = vmul.f32 %v3975_v2, %v404_v12  ;;  %v420_v5 = vmul.f32 %v3976_v17, %v404_v12  ;;  %v3977_v31 = vstv %s3969_s1  ;;  %v3978_v21 = vstv %s3970_s18  ;;  %s4008_s1 = sld [smem:[#allocation56_spill]]  ;;  %s4010_s18 = sld [smem:[#allocation57_spill]] }
  0xeb   : > { %v426_v7 = vmul.f32 %v3977_v31, %v404_v12  ;;  %v432_v38 = vmul.f32 %v3978_v21, %v404_v12  ;;  %v372_v59 = vadd.f32 %v370_v57, %v348_v24  ;;  %v378_v49 = vadd.f32 %v376_v1, %v354_v26 }
  0xec   : > { %v384_v36 = vadd.f32 %v382_v55, %v360_v35  ;;  %v390_v19 = vadd.f32 %v388_v11, %v366_v43  ;;  %v416_v52 = vadd.f32 %v414_v48, %v373_v29  ;;  %v422_v62 = vadd.f32 %v420_v5, %v379_v23 }
  0xed   : > { %v428_v47 = vadd.f32 %v426_v7, %v385_v30  ;;  %v434_v60 = vadd.f32 %v432_v38, %v391_v51  ;;  %v3979_v20 = vmov %v3975_v2  ;;  %v3981_v27 = vmov %v3976_v17 }
  0xee   : > { %v413_v6 = vmul.f32 %v3979_v20, %v403_v53  ;;  %v419_v61 = vmul.f32 %v3981_v27, %v403_v53  ;;  %v3983_v34 = vmov %v3977_v31  ;;  %v3985_v8 = vmov %v3978_v21  ;;  %v577_v21 = vpop.permute.xlu0 %576 }
  0xef   : > { %v425_v39 = vmul.f32 %v3983_v34, %v403_v53  ;;  %v431_v32 = vmul.f32 %v3985_v8, %v403_v53  ;;  %v410_v33 = vsel %vm206_vm5, 0.0, %v408_v28  ;;  %v440_v29 = vadd.f32 %v2316_v3, %v416_v52 }
  0xf0   : > { %v446_v23 = vadd.f32 %v2319_v16, %v422_v62  ;;  %v452_v30 = vadd.f32 %v2332_v10, %v428_v47  ;;  %v415_v56 = vadd.f32 %v413_v6, %v372_v59  ;;  %v421_v42 = vadd.f32 %v419_v61, %v378_v49 }
  0xf1   : > { %v427_v51 = vadd.f32 %v425_v39, %v384_v36  ;;  %v433_v9 = vadd.f32 %v431_v32, %v390_v19  ;;  %v458_v12 = vadd.f32 %v2335_v41, %v434_v60  ;;  %v3987_v24 = vstv %s3980_s10  ;;  %s4017_s10 = sld [smem:[#allocation58_spill]] }
  0xf2   : > { %v462_v53 = vmul.f32 %v3987_v24, %v410_v33  ;;  %v3988_v26 = vstv %s3982_s5  ;;  %v3989_v3 = vstv %s3984_s19  ;;  %v3990_v35 = vstv %s3986_s0  ;;  %s4019_s5 = sld [smem:[#allocation59_spill]]  ;;  %s4021_s19 = sld [smem:[#allocation60_spill]] }
  0xf3   : > { %v468_v28 = vmul.f32 %v3988_v26, %v410_v33  ;;  %v474_v16 = vmul.f32 %v3989_v3, %v410_v33  ;;  %v480_v10 = vmul.f32 %v3990_v35, %v410_v33  ;;  %v439_v43 = vadd.f32 %v2352_v25, %v415_v56  ;;  %s4022_s0 = sld [smem:[#allocation61_spill]] }
  0xf4   : > { %v445_v63 = vadd.f32 %v2355_v44, %v421_v42  ;;  %v451_v57 = vadd.f32 %v2358_v58, %v427_v51  ;;  %v464_v41 = vadd.f32 %v462_v53, %v440_v29  ;;  %v457_v54 = vadd.f32 %v2361_v18, %v433_v9  ;;  %v579_v18 = vpop.permute.xlu1 %578 }
  0xf5   : > { %v470_v13 = vadd.f32 %v468_v28, %v446_v23  ;;  %v476_v1 = vadd.f32 %v474_v16, %v452_v30  ;;  %v482_v55 = vadd.f32 %v480_v10, %v458_v12  ;;  %v409_v0 = vsel %vm206_vm5, 0.0, %v406_v15  ;;  %v4011_v16 = vld [vmem:[#allocation76_spill] sm:$0xff] }
  0xf6   : > { %v497_v25 = vsel %vm205_vm4, 0.0, %v495_v37  ;;  %v496_v44 = vsel %vm205_vm4, 0.0, %v493_v50  ;;  %v3995_v11 = vmov %v3987_v24  ;;  %v3996_v2 = vmov %v3988_v26 }
  0xf7   : > { %v461_v58 = vmul.f32 %v3995_v11, %v409_v0  ;;  %v467_v48 = vmul.f32 %v3996_v2, %v409_v0  ;;  %v3997_v17 = vmov %v3989_v3  ;;  %v3998_v31 = vmov %v3990_v35  ;;  %v583_v3 = vpop.permute.xlu0 %582 }
  0xf8   : > { %v473_v5 = vmul.f32 %v3997_v17, %v409_v0  ;;  %v479_v7 = vmul.f32 %v3998_v31, %v409_v0  ;;  %v3999_v15 = vstv %s3991_s3  ;;  %v4000_v37 = vstv %s3992_s29  ;;  %v585_v28 = vpop.permute.xlu1 %584  ;;  %s4032_s3 = sld [smem:[#allocation63_spill]]  ;;  %s4033_s29 = sld [smem:[#allocation64_spill]] }
  0xf9   : > { %v507_v38 = vmul.f32 %v3999_v15, %v497_v25  ;;  %v513_v59 = vmul.f32 %v4000_v37, %v497_v25  ;;  %v4001_v49 = vstv %s3993_s24  ;;  %v4002_v36 = vstv %s3994_s17  ;;  %s4035_s24 = sld [smem:[#allocation65_spill]]  ;;  %s4039_s17 = sld [smem:[#allocation66_spill]] }
  0xfa   : > { %v519_v50 = vmul.f32 %v4001_v49, %v497_v25  ;;  %v525_v19 = vmul.f32 %v4002_v36, %v497_v25  ;;  %v463_v52 = vadd.f32 %v461_v58, %v439_v43  ;;  %v469_v62 = vadd.f32 %v467_v48, %v445_v63  ;;  %v4023_v58 = vld [vmem:[#allocation83_spill] sm:$0xff] }
  0xfb   : > { %v475_v47 = vadd.f32 %v473_v5, %v451_v57  ;;  %v481_v60 = vadd.f32 %v479_v7, %v457_v54  ;;  %v509_v20 = vadd.f32 %v507_v38, %v464_v41  ;;  %v515_v6 = vadd.f32 %v513_v59, %v470_v13  ;;  %v4016_v41 = vld [vmem:[#allocation78_spill] sm:$0xff] }
  0xfc   : > { %v521_v27 = vadd.f32 %v519_v50, %v476_v1  ;;  %v527_v61 = vadd.f32 %v525_v19, %v482_v55  ;;  %v4003_v34 = vmov %v3999_v15  ;;  %v4005_v8 = vmov %v4000_v37  ;;  %v4018_v1 = vld [vmem:[#allocation79_spill] sm:$0xff]  ;;  %v4020_v55 = vld [vmem:[#allocation82_spill] sm:$0xff] }
  0xfd   : > { %v506_v39 = vmul.f32 %v4003_v34, %v496_v44  ;;  %v512_v32 = vmul.f32 %v4005_v8, %v496_v44  ;;  %v4007_v33 = vmov %v4001_v49  ;;  %v4009_v23 = vmov %v4002_v36 }
  0xfe   : > { %v518_v29 = vmul.f32 %v4007_v33, %v496_v44  ;;  %v524_v30 = vmul.f32 %v4009_v23, %v496_v44  ;;  %v503_v56 = vsel %vm206_vm5, 0.0, %v501_v40  ;;  %v533_v42 = vadd.f32 %v2371_v4, %v509_v20  ;;  %v669_v20 = vpop.permute.xlu1 %668 }
  0xff   : > { %v539_v51 = vadd.f32 %v2383_v45, %v515_v6  ;;  %v545_v9 = vadd.f32 %v2386_v14, %v521_v27  ;;  %v508_v12 = vadd.f32 %v506_v39, %v463_v52  ;;  %v514_v24 = vadd.f32 %v512_v32, %v469_v62  ;;  %v667_v6 = vpop.permute.xlu0 %666 }
 0x100   : > { %v520_v53 = vadd.f32 %v518_v29, %v475_v47  ;;  %v526_v26 = vadd.f32 %v524_v30, %v481_v60  ;;  %v551_v35 = vadd.f32 %v4011_v16, %v527_v61  ;;  %v4012_v10 = vstv %s4004_s16  ;;  %s4049_s16 = sld [smem:[#allocation67_spill]] }
 0x101   : > { %v555_v43 = vmul.f32 %v4012_v10, %v503_v56  ;;  %v4013_v63 = vstv %s4006_s23  ;;  %v4014_v57 = vstv %s4008_s1  ;;  %v4015_v45 = vstv %s4010_s18  ;;  %s4051_s23 = sld [smem:[#allocation68_spill]]  ;;  %s4053_s1 = sld [smem:[#allocation69_spill]] }
 0x102   : > { %v561_v40 = vmul.f32 %v4013_v63, %v503_v56  ;;  %v567_v4 = vmul.f32 %v4014_v57, %v503_v56  ;;  %v573_v14 = vmul.f32 %v4015_v45, %v503_v56  ;;  %v532_v13 = vadd.f32 %v4016_v41, %v508_v12  ;;  %s4054_s18 = sld [smem:[#allocation70_spill]] }
 0x103   : > { %v538_v54 = vadd.f32 %v4018_v1, %v514_v24  ;;  %v544_v0 = vadd.f32 %v4020_v55, %v520_v53  ;;  %v557_v25 = vadd.f32 %v555_v43, %v533_v42  ;;  %v550_v2 = vadd.f32 %v4023_v58, %v526_v26  ;;  %v4040_v26 = vld [vmem:[#allocation86_spill] sm:$0xff]  ;;  %v4042_v43 = vld [vmem:[#allocation88_spill] sm:$0xff] }
 0x104   : > { %v563_v44 = vadd.f32 %v561_v40, %v539_v51  ;;  %v569_v11 = vadd.f32 %v567_v4, %v545_v9  ;;  %v575_v48 = vadd.f32 %v573_v14, %v551_v35  ;;  %v502_v17 = vsel %vm206_vm5, 0.0, %v3003_v22  ;;  %v4041_v35 = vld [vmem:[#allocation87_spill] sm:$0xff]  ;;  %v4043_v14 = vld [vmem:[#allocation89_spill] sm:$0xff] }
 0x105   : > { %v581_v5 = vsel %vm205_vm4, 0.0, %v579_v18  ;;  %v580_v31 = vsel %vm205_vm4, 0.0, %v577_v21  ;;  %v4024_v7 = vmov %v4012_v10  ;;  %v4025_v38 = vmov %v4013_v63 }
 0x106   : > { %v554_v15 = vmul.f32 %v4024_v7, %v502_v17  ;;  %v560_v37 = vmul.f32 %v4025_v38, %v502_v17  ;;  %v4026_v59 = vmov %v4014_v57  ;;  %v4027_v50 = vmov %v4015_v45 }
 0x107   : > { %v566_v49 = vmul.f32 %v4026_v59, %v502_v17  ;;  %v572_v36 = vmul.f32 %v4027_v50, %v502_v17  ;;  %v4028_v19 = vstv %s4017_s10  ;;  %v4029_v62 = vstv %s4019_s5  ;;  %v4050_v17 = vld [vmem:[#allocation95_spill] sm:$0xff]  ;;  %v4055_v59 = vld [vmem:[#allocation97_spill] sm:$0xff]  ;;  %s4064_s10 = sld [smem:[#allocation71_spill]]  ;;  %s4066_s5 = sld [smem:[#allocation72_spill]] }
 0x108   : > { %v591_v52 = vmul.f32 %v4028_v19, %v581_v5  ;;  %v597_v22 = vmul.f32 %v4029_v62, %v581_v5  ;;  %v4030_v47 = vstv %s4021_s19  ;;  %v4031_v60 = vstv %s4022_s0  ;;  %s4068_s19 = sld [smem:[#allocation73_spill]]  ;;  %s4082_s0 = sld [smem:[#allocation62_spill]] }
 0x109   : > { %v603_v18 = vmul.f32 %v4030_v47, %v581_v5  ;;  %v609_v21 = vmul.f32 %v4031_v60, %v581_v5  ;;  %v556_v27 = vadd.f32 %v554_v15, %v532_v13  ;;  %v562_v61 = vadd.f32 %v560_v37, %v538_v54 }
 0x10a   : > { %v568_v34 = vadd.f32 %v566_v49, %v544_v0  ;;  %v574_v39 = vadd.f32 %v572_v36, %v550_v2  ;;  %v593_v8 = vadd.f32 %v591_v52, %v557_v25  ;;  %v599_v32 = vadd.f32 %v597_v22, %v563_v44  ;;  %v673_v44 = vpop.permute.xlu0 %672  ;;  %v4048_v2 = vld [vmem:[#allocation92_spill] sm:$0xff] }
 0x10b   : > { %v605_v33 = vadd.f32 %v603_v18, %v569_v11  ;;  %v611_v29 = vadd.f32 %v609_v21, %v575_v48  ;;  %v4034_v23 = vmov %v4028_v19  ;;  %v4036_v56 = vmov %v4029_v62 }
 0x10c   : > { %v590_v30 = vmul.f32 %v4034_v23, %v580_v31  ;;  %v596_v42 = vmul.f32 %v4036_v56, %v580_v31  ;;  %v4037_v51 = vmov %v4030_v47  ;;  %v4038_v12 = vmov %v4031_v60 }
 0x10d   : > { %v602_v9 = vmul.f32 %v4037_v51, %v580_v31  ;;  %v608_v24 = vmul.f32 %v4038_v12, %v580_v31  ;;  %v587_v53 = vsel %vm206_vm5, 0.0, %v585_v28  ;;  %v617_v16 = vadd.f32 %v4040_v26, %v593_v8  ;;  %v675_v28 = vpop.permute.xlu1 %674  ;;  %v4052_v31 = vld [vmem:[#allocation96_spill] sm:$0xff] }
 0x10e   : > { %v623_v10 = vadd.f32 %v4041_v35, %v599_v32  ;;  %v629_v63 = vadd.f32 %v4042_v43, %v605_v33  ;;  %v592_v40 = vadd.f32 %v590_v30, %v556_v27  ;;  %v598_v57 = vadd.f32 %v596_v42, %v562_v61  ;;  %v760_v51 = vpop.permute.xlu0 %759 }
 0x10f   : > { %v604_v4 = vadd.f32 %v602_v9, %v568_v34  ;;  %v610_v45 = vadd.f32 %v608_v24, %v574_v39  ;;  %v635_v41 = vadd.f32 %v4043_v14, %v611_v29  ;;  %v4044_v13 = vstv %s4032_s3  ;;  %s4083_s3 = sld [smem:[#allocation77_spill]] }
 0x110   : > { %v639_v1 = vmul.f32 %v4044_v13, %v587_v53  ;;  %v4045_v54 = vstv %s4033_s29  ;;  %v4046_v0 = vstv %s4035_s24  ;;  %v4047_v11 = vstv %s4039_s17  ;;  %s4094_s29 = sld [smem:[#allocation81_spill]]  ;;  %s4096_s24 = sld [smem:[#allocation84_spill]] }
 0x111   : > { %v645_v55 = vmul.f32 %v4045_v54, %v587_v53  ;;  %v651_v25 = vmul.f32 %v4046_v0, %v587_v53  ;;  %v657_v58 = vmul.f32 %v4047_v11, %v587_v53  ;;  %v616_v48 = vadd.f32 %v4048_v2, %v592_v40  ;;  %v762_v42 = vpop.permute.xlu1 %761  ;;  %s4098_s17 = sld [smem:[#allocation85_spill]] }
 0x112   : > { %v622_v5 = vadd.f32 %v4050_v17, %v598_v57  ;;  %v628_v7 = vadd.f32 %v4052_v31, %v604_v4  ;;  %v641_v15 = vadd.f32 %v639_v1, %v617_v16  ;;  %v634_v49 = vadd.f32 %v4055_v59, %v610_v45  ;;  %v4071_v45 = vld [vmem:[#allocation98_spill] sm:$0xff]  ;;  %v4073_v1 = vld [vmem:[#allocation100_spill] sm:$0xff] }
 0x113   : > { %v647_v38 = vadd.f32 %v645_v55, %v623_v10  ;;  %v653_v37 = vadd.f32 %v651_v25, %v629_v63  ;;  %v659_v50 = vadd.f32 %v657_v58, %v635_v41  ;;  %v586_v36 = vsel %vm206_vm5, 0.0, %v583_v3  ;;  %v4072_v41 = vld [vmem:[#allocation99_spill] sm:$0xff]  ;;  %v4074_v58 = vld [vmem:[#allocation101_spill] sm:$0xff] }
 0x114   : > { %v671_v19 = vsel %vm205_vm4, 0.0, %v669_v20  ;;  %v670_v52 = vsel %vm205_vm4, 0.0, %v667_v6  ;;  %v4056_v62 = vmov %v4044_v13  ;;  %v4057_v47 = vmov %v4045_v54 }
 0x115   : > { %v638_v22 = vmul.f32 %v4056_v62, %v586_v36  ;;  %v644_v18 = vmul.f32 %v4057_v47, %v586_v36  ;;  %v4058_v60 = vmov %v4046_v0  ;;  %v4059_v27 = vmov %v4047_v11  ;;  %v766_v62 = vpop.permute.xlu0 %765 }
 0x116   : > { %v650_v21 = vmul.f32 %v4058_v60, %v586_v36  ;;  %v656_v61 = vmul.f32 %v4059_v27, %v586_v36  ;;  %v4060_v34 = vstv %s4049_s16  ;;  %v4061_v8 = vstv %s4051_s23  ;;  %v4081_v36 = vld [vmem:[#allocation108_spill] sm:$0xff]  ;;  %v4084_v60 = vld [vmem:[#allocation109_spill] sm:$0xff]  ;;  %s4114_s16 = sld [smem:[#allocation93_spill]]  ;;  %s4115_s23 = sld [smem:[#allocation94_spill]] }
 0x117   : > { %v681_v39 = vmul.f32 %v4060_v34, %v671_v19  ;;  %v687_v3 = vmul.f32 %v4061_v8, %v671_v19  ;;  %v4062_v32 = vstv %s4053_s1  ;;  %v4063_v33 = vstv %s4054_s18  ;;  %s4128_s1 = sld [smem:[#allocation102_spill]]  ;;  %s4130_s18 = sld [smem:[#allocation103_spill]] }
 0x118   : > { %v693_v20 = vmul.f32 %v4062_v32, %v671_v19  ;;  %v699_v6 = vmul.f32 %v4063_v33, %v671_v19  ;;  %v640_v29 = vadd.f32 %v638_v22, %v616_v48  ;;  %v646_v23 = vadd.f32 %v644_v18, %v622_v5 }
 0x119   : > { %v652_v30 = vadd.f32 %v650_v21, %v628_v7  ;;  %v658_v56 = vadd.f32 %v656_v61, %v634_v49  ;;  %v683_v9 = vadd.f32 %v681_v39, %v641_v15  ;;  %v689_v12 = vadd.f32 %v687_v3, %v647_v38  ;;  %v4080_v49 = vld [vmem:[#allocation106_spill] sm:$0xff] }
 0x11a   : > { %v695_v24 = vadd.f32 %v693_v20, %v653_v37  ;;  %v701_v53 = vadd.f32 %v699_v6, %v659_v50  ;;  %v4065_v26 = vmov %v4060_v34  ;;  %v4067_v35 = vmov %v4061_v8  ;;  %v4079_v37 = vld [vmem:[#allocation105_spill] sm:$0xff] }
 0x11b   : > { %v680_v16 = vmul.f32 %v4065_v26, %v670_v52  ;;  %v686_v10 = vmul.f32 %v4067_v35, %v670_v52  ;;  %v4069_v43 = vmov %v4062_v32  ;;  %v4070_v40 = vmov %v4063_v33 }
 0x11c   : > { %v692_v63 = vmul.f32 %v4069_v43, %v670_v52  ;;  %v698_v57 = vmul.f32 %v4070_v40, %v670_v52  ;;  %v677_v4 = vsel %vm206_vm5, 0.0, %v675_v28  ;;  %v707_v14 = vadd.f32 %v4071_v45, %v683_v9  ;;  %v768_v52 = vpop.permute.xlu1 %767 }
 0x11d   : > { %v713_v13 = vadd.f32 %v4072_v41, %v689_v12  ;;  %v719_v54 = vadd.f32 %v4073_v1, %v695_v24  ;;  %v682_v55 = vadd.f32 %v680_v16, %v640_v29  ;;  %v688_v0 = vadd.f32 %v686_v10, %v646_v23 }
 0x11e   : > { %v694_v25 = vadd.f32 %v692_v63, %v652_v30  ;;  %v700_v11 = vadd.f32 %v698_v57, %v658_v56  ;;  %v725_v2 = vadd.f32 %v4074_v58, %v701_v53  ;;  %v4075_v48 = vstv %s2347_s14  ;;  %s4093_s14 = sld [smem:[#allocation80_spill]] }
 0x11f   : > { %v729_v17 = vmul.f32 %v4075_v48, %v677_v4  ;;  %v4076_v5 = vstv %s4064_s10  ;;  %v4077_v7 = vstv %s4066_s5  ;;  %v4078_v28 = vstv %s4068_s19  ;;  %s4142_s10 = sld [smem:[#allocation104_spill]]  ;;  %s4143_s5 = sld [smem:[#allocation74_spill]] }
 0x120   : > { %v735_v31 = vmul.f32 %v4076_v5, %v677_v4  ;;  %v741_v15 = vmul.f32 %v4077_v7, %v677_v4  ;;  %v747_v38 = vmul.f32 %v4078_v28, %v677_v4  ;;  %v706_v59 = vadd.f32 %v4079_v37, %v682_v55  ;;  %v846_v57 = vpop.permute.xlu1 %845  ;;  %v844_v4 = vpop.permute.xlu0 %843  ;;  %s4144_s19 = sld [smem:[#allocation75_spill]] }
 0x121   : > { %v712_v50 = vadd.f32 %v4080_v49, %v688_v0  ;;  %v718_v19 = vadd.f32 %v4081_v36, %v694_v25  ;;  %v731_v22 = vadd.f32 %v729_v17, %v707_v14  ;;  %v724_v21 = vadd.f32 %v4084_v60, %v700_v11  ;;  %v4101_v11 = vld [vmem:[#allocation110_spill] sm:$0xff]  ;;  %v4103_v17 = vld [vmem:[#allocation112_spill] sm:$0xff] }
 0x122   : > { %v737_v47 = vadd.f32 %v735_v31, %v713_v13  ;;  %v743_v18 = vadd.f32 %v741_v15, %v719_v54  ;;  %v749_v27 = vadd.f32 %v747_v38, %v725_v2  ;;  %v676_v61 = vsel %vm206_vm5, 0.0, %v673_v44  ;;  %v4102_v2 = vld [vmem:[#allocation111_spill] sm:$0xff]  ;;  %v4104_v38 = vld [vmem:[#allocation113_spill] sm:$0xff] }
 0x123   : > { %v764_v34 = vsel %vm205_vm4, 0.0, %v762_v42  ;;  %v763_v39 = vsel %vm205_vm4, 0.0, %v760_v51  ;;  %v4085_v8 = vmov %v4075_v48  ;;  %v4086_v32 = vmov %v4076_v5 }
 0x124   : > { %v728_v3 = vmul.f32 %v4085_v8, %v676_v61  ;;  %v734_v20 = vmul.f32 %v4086_v32, %v676_v61  ;;  %v4087_v33 = vmov %v4077_v7  ;;  %v4088_v29 = vmov %v4078_v28  ;;  %v4116_v32 = vld [vmem:[#allocation117_spill] sm:$0xff] }
 0x125   : > { %v740_v6 = vmul.f32 %v4087_v33, %v676_v61  ;;  %v746_v23 = vmul.f32 %v4088_v29, %v676_v61  ;;  %v4089_v30 = vstv %s3838_s28  ;;  %v4090_v9 = vstv %s3840_s11  ;;  %v4111_v61 = vld [vmem:[#allocation116_spill] sm:$0xff]  ;;  %s4112_s28 = sld [smem:[#allocation90_spill]]  ;;  %s4113_s11 = sld [smem:[#allocation91_spill]]  ;;  %v852_v33 = vpop.permute.xlu1 %851 }
 0x126   : > { %v774_v56 = vmul.f32 %v4089_v30, %v764_v34  ;;  %v780_v44 = vmul.f32 %v4090_v9, %v764_v34  ;;  %v4091_v12 = vstv %s4082_s0  ;;  %v4092_v24 = vstv %s4083_s3  ;;  %s4145_s0 = sld [smem:[#allocation107_spill]]  ;;  %s4214_s3 = sld [smem:[#allocation144_spill]] }
 0x127   : > { %v786_v42 = vmul.f32 %v4091_v12, %v764_v34  ;;  %v792_v51 = vmul.f32 %v4092_v24, %v764_v34  ;;  %v730_v53 = vadd.f32 %v728_v3, %v706_v59  ;;  %v736_v26 = vadd.f32 %v734_v20, %v712_v50 }
 0x128   : > { %v742_v16 = vadd.f32 %v740_v6, %v718_v19  ;;  %v748_v35 = vadd.f32 %v746_v23, %v724_v21  ;;  %v776_v10 = vadd.f32 %v774_v56, %v731_v22  ;;  %v782_v43 = vadd.f32 %v780_v44, %v737_v47  ;;  %v4110_v21 = vld [vmem:[#allocation115_spill] sm:$0xff]  ;;  %v850_v6 = vpop.permute.xlu0 %849 }
 0x129   : > { %v788_v63 = vadd.f32 %v786_v42, %v743_v18  ;;  %v794_v40 = vadd.f32 %v792_v51, %v749_v27  ;;  %v4095_v45 = vmov %v4089_v30  ;;  %v4097_v41 = vmov %v4090_v9  ;;  %v4109_v18 = vld [vmem:[#allocation114_spill] sm:$0xff] }
 0x12a   : > { %v773_v14 = vmul.f32 %v4095_v45, %v763_v39  ;;  %v779_v13 = vmul.f32 %v4097_v41, %v763_v39  ;;  %v4099_v1 = vmov %v4091_v12  ;;  %v4100_v55 = vmov %v4092_v24 }
 0x12b   : > { %v785_v54 = vmul.f32 %v4099_v1, %v763_v39  ;;  %v791_v0 = vmul.f32 %v4100_v55, %v763_v39  ;;  %v770_v25 = vsel %vm206_vm5, 0.0, %v768_v52  ;;  %v800_v58 = vadd.f32 %v4101_v11, %v776_v10 }
 0x12c   : > { %v806_v48 = vadd.f32 %v4102_v2, %v782_v43  ;;  %v812_v5 = vadd.f32 %v4103_v17, %v788_v63  ;;  %v775_v31 = vadd.f32 %v773_v14, %v730_v53  ;;  %v781_v7 = vadd.f32 %v779_v13, %v736_v26 }
 0x12d   : > { %v787_v15 = vadd.f32 %v785_v54, %v742_v16  ;;  %v793_v28 = vadd.f32 %v791_v0, %v748_v35  ;;  %v818_v37 = vadd.f32 %v4104_v38, %v794_v40  ;;  %v4105_v59 = vstv %s4093_s14  ;;  %s4218_s14 = sld [smem:[#allocation145_spill]] }
 0x12e   : > { %v822_v49 = vmul.f32 %v4105_v59, %v770_v25  ;;  %v4106_v50 = vstv %s4094_s29  ;;  %v4107_v19 = vstv %s4096_s24  ;;  %v4108_v52 = vstv %s4098_s17  ;;  %s4228_s29 = sld [smem:[#allocation150_spill]]  ;;  %s4230_s24 = sld [smem:[#allocation151_spill]] }
 0x12f   : > { %v828_v36 = vmul.f32 %v4106_v50, %v770_v25  ;;  %v834_v22 = vmul.f32 %v4107_v19, %v770_v25  ;;  %v840_v47 = vmul.f32 %v4108_v52, %v770_v25  ;;  %v799_v60 = vadd.f32 %v4109_v18, %v775_v31  ;;  %v936_v31 = vpop.permute.xlu1 %935  ;;  %s4232_s17 = sld [smem:[#allocation152_spill]] }
 0x130   : > { %v805_v27 = vadd.f32 %v4110_v21, %v781_v7  ;;  %v811_v34 = vadd.f32 %v4111_v61, %v787_v15  ;;  %v824_v39 = vadd.f32 %v822_v49, %v800_v58  ;;  %v817_v20 = vadd.f32 %v4116_v32, %v793_v28  ;;  %v934_v7 = vpop.permute.xlu0 %933  ;;  %v4131_v28 = vld [vmem:[#allocation118_spill] sm:$0xff]  ;;  %v4133_v49 = vld [vmem:[#allocation120_spill] sm:$0xff] }
 0x131   : > { %v830_v8 = vadd.f32 %v828_v36, %v806_v48  ;;  %v836_v3 = vadd.f32 %v834_v22, %v812_v5  ;;  %v842_v29 = vadd.f32 %v840_v47, %v818_v37  ;;  %v769_v23 = vsel %vm206_vm5, 0.0, %v766_v62  ;;  %v4132_v37 = vld [vmem:[#allocation119_spill] sm:$0xff]  ;;  %v4134_v47 = vld [vmem:[#allocation121_spill] sm:$0xff]  ;;  %v4139_v32 = vld [vmem:[#allocation126_spill] sm:$0xff] }
 0x132   : > { %v848_v30 = vsel %vm205_vm4, 0.0, %v846_v57  ;;  %v847_v56 = vsel %vm205_vm4, 0.0, %v844_v4  ;;  %v4117_v9 = vmov %v4105_v59  ;;  %v4118_v12 = vmov %v4106_v50 }
 0x133   : > { %v821_v44 = vmul.f32 %v4117_v9, %v769_v23  ;;  %v827_v42 = vmul.f32 %v4118_v12, %v769_v23  ;;  %v4119_v24 = vmov %v4107_v19  ;;  %v4120_v53 = vmov %v4108_v52  ;;  %v4146_v12 = vld [vmem:[#allocation129_spill] sm:$0xff] }
 0x134   : > { %v833_v51 = vmul.f32 %v4119_v24, %v769_v23  ;;  %v839_v26 = vmul.f32 %v4120_v53, %v769_v23  ;;  %v4121_v16 = vstv %s4112_s28  ;;  %v4122_v35 = vstv %s4113_s11  ;;  %v4141_v23 = vld [vmem:[#allocation128_spill] sm:$0xff]  ;;  %s4233_s28 = sld [smem:[#allocation153_spill]]  ;;  %s4242_s11 = sld [smem:[#allocation12_spill]] }
 0x135   : > { %v858_v62 = vmul.f32 %v4121_v16, %v848_v30  ;;  %v864_v10 = vmul.f32 %v4122_v35, %v848_v30  ;;  %v4123_v43 = vstv %s4114_s16  ;;  %v4124_v40 = vstv %s4115_s23  ;;  %s4248_s16 = sld [smem:[#allocation20_spill]] }
 0x136   : > { %v870_v63 = vmul.f32 %v4123_v43, %v848_v30  ;;  %v876_v57 = vmul.f32 %v4124_v40, %v848_v30  ;;  %v823_v4 = vadd.f32 %v821_v44, %v799_v60  ;;  %v829_v45 = vadd.f32 %v827_v42, %v805_v27 }
 0x137   : > { %v835_v14 = vadd.f32 %v833_v51, %v811_v34  ;;  %v841_v41 = vadd.f32 %v839_v26, %v817_v20  ;;  %v860_v13 = vadd.f32 %v858_v62, %v824_v39  ;;  %v866_v1 = vadd.f32 %v864_v10, %v830_v8  ;;  %v940_v62 = vpop.permute.xlu0 %939 }
 0x138   : > { %v872_v54 = vadd.f32 %v870_v63, %v836_v3  ;;  %v878_v55 = vadd.f32 %v876_v57, %v842_v29  ;;  %v4125_v0 = vmov %v4121_v16  ;;  %v4126_v11 = vmov %v4122_v35  ;;  %v942_v16 = vpop.permute.xlu1 %941 }
 0x139   : > { %v857_v25 = vmul.f32 %v4125_v0, %v847_v56  ;;  %v863_v58 = vmul.f32 %v4126_v11, %v847_v56  ;;  %v4127_v2 = vmov %v4123_v43  ;;  %v4129_v17 = vmov %v4124_v40 }
 0x13a   : > { %v869_v48 = vmul.f32 %v4127_v2, %v847_v56  ;;  %v875_v5 = vmul.f32 %v4129_v17, %v847_v56  ;;  %v854_v15 = vsel %vm206_vm5, 0.0, %v852_v33  ;;  %v884_v38 = vadd.f32 %v4131_v28, %v860_v13  ;;  %v4140_v33 = vld [vmem:[#allocation127_spill] sm:$0xff]  ;;  %s188_s23 = sand.u32 1, %s4242_s11  }
 0x13b   : > { %v890_v59 = vadd.f32 %v4132_v37, %v866_v1  ;;  %v896_v50 = vadd.f32 %v4133_v49, %v872_v54  ;;  %v859_v36 = vadd.f32 %v857_v25, %v823_v4  ;;  %v865_v19 = vadd.f32 %v863_v58, %v829_v45  ;;  %v1570_v46 = vld [vmem:[%s4248_s16 + $0x10] sm:$0xff] }
 0x13c   : > { %v871_v22 = vadd.f32 %v869_v48, %v835_v14  ;;  %v877_v52 = vadd.f32 %v875_v5, %v841_v41  ;;  %v902_v18 = vadd.f32 %v4134_v47, %v878_v55  ;;  %v4135_v60 = vstv %s2495_s13  ;;  %s4170_s13 = sld [smem:[#allocation122_spill]] }
 0x13d   : > { %v906_v21 = vmul.f32 %v4135_v60, %v854_v15  ;;  %v4136_v27 = vstv %s2497_s22  ;;  %v4137_v34 = vstv %s4128_s1  ;;  %v4138_v8 = vstv %s4130_s18  ;;  %s4186_s22 = sld [smem:[#allocation125_spill]]  ;;  %s1415_s1 = sshll.u32 %s188_s23, 6 }
 0x13e   : > { %v912_v61 = vmul.f32 %v4136_v27, %v854_v15  ;;  %v918_v39 = vmul.f32 %v4137_v34, %v854_v15  ;;  %v924_v3 = vmul.f32 %v4138_v8, %v854_v15  ;;  %v883_v20 = vadd.f32 %v4139_v32, %v859_v36 }
 0x13f   : > { %v889_v29 = vadd.f32 %v4140_v33, %v865_v19  ;;  %v895_v30 = vadd.f32 %v4141_v23, %v871_v22  ;;  %v908_v56 = vadd.f32 %v906_v21, %v884_v38  ;;  %v901_v42 = vadd.f32 %v4146_v12, %v877_v52  ;;  %v4159_v19 = vld [vmem:[#allocation130_spill] sm:$0xff]  ;;  %v4160_v52 = vld [vmem:[#allocation131_spill] sm:$0xff]  ;;  %v1029_v21 = vpop.permute.xlu1 %1028 }
 0x140   : > { %v914_v9 = vadd.f32 %v912_v61, %v890_v59  ;;  %v920_v44 = vadd.f32 %v918_v39, %v896_v50  ;;  %v926_v24 = vadd.f32 %v924_v3, %v902_v18  ;;  %v853_v51 = vsel %vm206_vm5, 0.0, %v850_v6  ;;  %v4161_v18 = vld [vmem:[#allocation132_spill] sm:$0xff]  ;;  %v4162_v3 = vld [vmem:[#allocation133_spill] sm:$0xff]  ;;  %v4167_v12 = vld [vmem:[#allocation140_spill] sm:$0xff] }
 0x141   : > { %v938_v53 = vsel %vm205_vm4, 0.0, %v936_v31  ;;  %v937_v26 = vsel %vm205_vm4, 0.0, %v934_v7  ;;  %v4147_v35 = vmov %v4135_v60  ;;  %v4148_v43 = vmov %v4136_v27  ;;  %v1027_v27 = vpop.permute.xlu0 %1026 }
 0x142   : > { %v905_v10 = vmul.f32 %v4147_v35, %v853_v51  ;;  %v911_v63 = vmul.f32 %v4148_v43, %v853_v51  ;;  %v4149_v40 = vmov %v4137_v34  ;;  %v4150_v4 = vmov %v4138_v8  ;;  %v4171_v43 = vld [vmem:[#allocation143_spill] sm:$0xff] }
 0x143   : > { %v917_v57 = vmul.f32 %v4149_v40, %v853_v51  ;;  %v923_v45 = vmul.f32 %v4150_v4, %v853_v51  ;;  %v4151_v6 = vstv %s4142_s10  ;;  %v4152_v41 = vstv %s4143_s5  ;;  %s4268_s5 = sld [smem:[#allocation175_spill]] }
 0x144   : > { %v948_v14 = vmul.f32 %v4151_v6, %v938_v53  ;;  %v954_v13 = vmul.f32 %v4152_v41, %v938_v53  ;;  %v4153_v1 = vstv %s4144_s19  ;;  %v4154_v55 = vstv %s4145_s0 }
 0x145   : > { %v960_v54 = vmul.f32 %v4153_v1, %v938_v53  ;;  %v966_v0 = vmul.f32 %v4154_v55, %v938_v53  ;;  %v907_v25 = vadd.f32 %v905_v10, %v883_v20  ;;  %v913_v11 = vadd.f32 %v911_v63, %v889_v29  ;;  %v4169_v53 = vld [vmem:[#allocation142_spill] sm:$0xff] }
 0x146   : > { %v919_v58 = vadd.f32 %v917_v57, %v895_v30  ;;  %v925_v2 = vadd.f32 %v923_v45, %v901_v42  ;;  %v950_v48 = vadd.f32 %v948_v14, %v908_v56  ;;  %v956_v17 = vadd.f32 %v954_v13, %v914_v9 }
 0x147   : > { %v962_v5 = vadd.f32 %v960_v54, %v920_v44  ;;  %v968_v31 = vadd.f32 %v966_v0, %v926_v24  ;;  %v4155_v7 = vmov %v4151_v6  ;;  %v4156_v28 = vmov %v4152_v41  ;;  %v4168_v24 = vld [vmem:[#allocation141_spill] sm:$0xff] }
 0x148   : > { %v947_v15 = vmul.f32 %v4155_v7, %v937_v26  ;;  %v953_v38 = vmul.f32 %v4156_v28, %v937_v26  ;;  %v4157_v37 = vmov %v4153_v1  ;;  %v4158_v49 = vmov %v4154_v55 }
 0x149   : > { %v959_v59 = vmul.f32 %v4157_v37, %v937_v26  ;;  %v965_v50 = vmul.f32 %v4158_v49, %v937_v26  ;;  %v944_v36 = vsel %vm206_vm5, 0.0, %v942_v16  ;;  %v974_v22 = vadd.f32 %v4159_v19, %v950_v48 }
 0x14a   : > { %v980_v47 = vadd.f32 %v4160_v52, %v956_v17  ;;  %v986_v60 = vadd.f32 %v4161_v18, %v962_v5  ;;  %v949_v61 = vadd.f32 %v947_v15, %v907_v25  ;;  %v955_v34 = vadd.f32 %v953_v38, %v913_v11  ;;  %v1035_v25 = vpop.permute.xlu1 %1034  ;;  %v1033_v11 = vpop.permute.xlu0 %1032 }
 0x14b   : > { %v961_v39 = vadd.f32 %v959_v59, %v919_v58  ;;  %v967_v8 = vadd.f32 %v965_v50, %v925_v2  ;;  %v992_v32 = vadd.f32 %v4162_v3, %v968_v31  ;;  %v4163_v20 = vstv %s2567_s15  ;;  %s4200_s15 = sld [smem:[#allocation136_spill]] }
 0x14c   : > { %v996_v33 = vmul.f32 %v4163_v20, %v944_v36  ;;  %v4164_v29 = vstv %s2569_s6  ;;  %v4165_v30 = vstv %s2583_s8  ;;  %v4166_v9 = vstv %s2585_s7  ;;  %s4181_s7 = sld [smem:[#allocation123_spill]]  ;;  %s4184_s8 = sld [smem:[#allocation124_spill]] }
 0x14d   : > { %v1002_v23 = vmul.f32 %v4164_v29, %v944_v36  ;;  %v1008_v56 = vmul.f32 %v4165_v30, %v944_v36  ;;  %v1014_v44 = vmul.f32 %v4166_v9, %v944_v36  ;;  %v973_v42 = vadd.f32 %v4167_v12, %v949_v61  ;;  %s4201_s6 = sld [smem:[#allocation137_spill]] }
 0x14e   : > { %v979_v51 = vadd.f32 %v4168_v24, %v955_v34  ;;  %v985_v26 = vadd.f32 %v4169_v53, %v961_v39  ;;  %v998_v16 = vadd.f32 %v996_v33, %v974_v22  ;;  %v991_v63 = vadd.f32 %v4171_v43, %v967_v8  ;;  %v4187_v34 = vld [vmem:[#allocation146_spill] sm:$0xff]  ;;  %v4188_v8 = vld [vmem:[#allocation147_spill] sm:$0xff] }
 0x14f   : > { %v1004_v35 = vadd.f32 %v1002_v23, %v980_v47  ;;  %v1010_v10 = vadd.f32 %v1008_v56, %v986_v60  ;;  %v1016_v40 = vadd.f32 %v1014_v44, %v992_v32  ;;  %v943_v57 = vsel %vm206_vm5, 0.0, %v940_v62  ;;  %v4189_v32 = vld [vmem:[#allocation148_spill] sm:$0xff]  ;;  %v1113_v56 = vpop.permute.xlu1 %1112  ;;  %v4190_v44 = vld [vmem:[#allocation149_spill] sm:$0xff]  ;;  %v4195_v43 = vld [vmem:[#allocation154_spill] sm:$0xff] }
 0x150   : > { %v1031_v4 = vsel %vm205_vm4, 0.0, %v1029_v21  ;;  %v1030_v45 = vsel %vm205_vm4, 0.0, %v1027_v27  ;;  %v4172_v6 = vmov %v4163_v20  ;;  %v4173_v41 = vmov %v4164_v29 }
 0x151   : > { %v995_v14 = vmul.f32 %v4172_v6, %v943_v57  ;;  %v1001_v13 = vmul.f32 %v4173_v41, %v943_v57  ;;  %v4174_v1 = vmov %v4165_v30  ;;  %v4175_v55 = vmov %v4166_v9  ;;  %v1111_v9 = vpop.permute.xlu0 %1110 }
 0x152   : > { %v1007_v54 = vmul.f32 %v4174_v1, %v943_v57  ;;  %v1013_v0 = vmul.f32 %v4175_v55, %v943_v57  ;;  %v4176_v62 = vstv %s2591_s20  ;;  %v4177_v2 = vstv %s2593_s25  ;;  %s4198_s25 = sld [smem:[#allocation135_spill]]  ;;  %s4212_s20 = sld [smem:[#allocation139_spill]] }
 0x153   : > { %v1041_v58 = vmul.f32 %v4176_v62, %v1031_v4  ;;  %v1047_v48 = vmul.f32 %v4177_v2, %v1031_v4  ;;  %v4178_v17 = vstv %s2631_s4  ;;  %v4179_v31 = vstv %s4170_s13  ;;  %s4196_s4 = sld [smem:[#allocation134_spill]]  ;;  %s1761_s13 = smov [#allocation7]  }
 0x154   : > { %v1053_v5 = vmul.f32 %v4178_v17, %v1031_v4  ;;  %v1059_v7 = vmul.f32 %v4179_v31, %v1031_v4  ;;  %v997_v15 = vadd.f32 %v995_v14, %v973_v42  ;;  %v1003_v28 = vadd.f32 %v1001_v13, %v979_v51  ;;  %v4199_v4 = vld [vmem:[#allocation156_spill] sm:$0xff]  ;;  %v4202_v13 = vld [vmem:[#allocation157_spill] sm:$0xff] }
 0x155   : > { %v1009_v38 = vadd.f32 %v1007_v54, %v985_v26  ;;  %v1015_v37 = vadd.f32 %v1013_v0, %v991_v63  ;;  %v1043_v59 = vadd.f32 %v1041_v58, %v998_v16  ;;  %v1049_v49 = vadd.f32 %v1047_v48, %v1004_v35 }
 0x156   : > { %v1055_v50 = vadd.f32 %v1053_v5, %v1010_v10  ;;  %v1061_v36 = vadd.f32 %v1059_v7, %v1016_v40  ;;  %v4180_v19 = vmov %v4176_v62  ;;  %v4182_v52 = vmov %v4177_v2  ;;  %v4197_v40 = vld [vmem:[#allocation155_spill] sm:$0xff] }
 0x157   : > { %v1040_v22 = vmul.f32 %v4180_v19, %v1030_v45  ;;  %v1046_v47 = vmul.f32 %v4182_v52, %v1030_v45  ;;  %v4183_v18 = vmov %v4178_v17  ;;  %v4185_v21 = vmov %v4179_v31  ;;  %v1117_v19 = vpop.permute.xlu0 %1116 }
 0x158   : > { %v1052_v60 = vmul.f32 %v4183_v18, %v1030_v45  ;;  %v1058_v27 = vmul.f32 %v4185_v21, %v1030_v45  ;;  %v1037_v61 = vsel %vm206_vm5, 0.0, %v1035_v25  ;;  %v1067_v39 = vadd.f32 %v4187_v34, %v1043_v59 }
 0x159   : > { %v1073_v3 = vadd.f32 %v4188_v8, %v1049_v49  ;;  %v1079_v20 = vadd.f32 %v4189_v32, %v1055_v50  ;;  %v1042_v33 = vadd.f32 %v1040_v22, %v997_v15  ;;  %v1048_v29 = vadd.f32 %v1046_v47, %v1003_v28 }
 0x15a   : > { %v1054_v23 = vadd.f32 %v1052_v60, %v1009_v38  ;;  %v1060_v30 = vadd.f32 %v1058_v27, %v1015_v37  ;;  %v1085_v12 = vadd.f32 %v4190_v44, %v1061_v36  ;;  %v4191_v42 = vstv %s4181_s7  ;;  %v1119_v36 = vpop.permute.xlu1 %1118  ;;  %s1689_s7 = sshll.u32 %s1761_s13, 4  ;;  %s1690_s7 = int_to_ptr.vmem [resolvable:$false] %s1689_s7 }
 0x15b   : > { %v1089_v24 = vmul.f32 %v4191_v42, %v1037_v61  ;;  %v4192_v51 = vstv %s2641_s21  ;;  %v4193_v26 = vstv %s4184_s8  ;;  %v4194_v35 = vstv %s4186_s22  ;;  %s4211_s21 = sld [smem:[#allocation138_spill]]  ;;  %s1691_s8 = scalar_lea.vmem %s1690_s7, 2048 }
 0x15c   : > { %v1095_v53 = vmul.f32 %v4192_v51, %v1037_v61  ;;  %v1101_v16 = vmul.f32 %v4193_v26, %v1037_v61  ;;  %v1107_v10 = vmul.f32 %v4194_v35, %v1037_v61  ;;  %v1066_v63 = vadd.f32 %v4195_v43, %v1042_v33 }
 0x15d   : > { %v1072_v57 = vadd.f32 %v4197_v40, %v1048_v29  ;;  %v1078_v45 = vadd.f32 %v4199_v4, %v1054_v23  ;;  %v1091_v6 = vadd.f32 %v1089_v24, %v1067_v39  ;;  %v1084_v1 = vadd.f32 %v4202_v13, %v1060_v30  ;;  %v4219_v30 = vld [vmem:[#allocation158_spill] sm:$0xff] }
 0x15e   : > { %v1097_v14 = vadd.f32 %v1095_v53, %v1073_v3  ;;  %v1103_v41 = vadd.f32 %v1101_v16, %v1079_v20  ;;  %v1109_v54 = vadd.f32 %v1107_v10, %v1085_v12  ;;  %v1036_v55 = vsel %vm206_vm5, 0.0, %v1033_v11  ;;  %v4221_v12 = vld [vmem:[#allocation160_spill] sm:$0xff]  ;;  %v4222_v16 = vld [vmem:[#allocation161_spill] sm:$0xff]  ;;  %v4227_v13 = vld [vmem:[#allocation162_spill] sm:$0xff] }
 0x15f   : > { %v1115_v0 = vsel %vm205_vm4, 0.0, %v1113_v56  ;;  %v1114_v25 = vsel %vm205_vm4, 0.0, %v1111_v9  ;;  %v4203_v62 = vmov %v4191_v42  ;;  %v4204_v2 = vmov %v4192_v51  ;;  %v4220_v9 = vld [vmem:[#allocation159_spill] sm:$0xff] }
 0x160   : > { %v1088_v58 = vmul.f32 %v4203_v62, %v1036_v55  ;;  %v1094_v48 = vmul.f32 %v4204_v2, %v1036_v55  ;;  %v4205_v17 = vmov %v4193_v26  ;;  %v4206_v31 = vmov %v4194_v35 }
 0x161   : > { %v1100_v5 = vmul.f32 %v4205_v17, %v1036_v55  ;;  %v1106_v7 = vmul.f32 %v4206_v31, %v1036_v55  ;;  %v4207_v15 = vstv %s4196_s4  ;;  %v4208_v38 = vstv %s4198_s25 }
 0x162   : > { %v1125_v28 = vmul.f32 %v4207_v15, %v1115_v0  ;;  %v1131_v11 = vmul.f32 %v4208_v38, %v1115_v0  ;;  %v4209_v37 = vstv %s4200_s15  ;;  %v4210_v49 = vstv %s4201_s6 }
 0x163   : > { %v1137_v59 = vmul.f32 %v4209_v37, %v1115_v0  ;;  %v1143_v50 = vmul.f32 %v4210_v49, %v1115_v0  ;;  %v1090_v22 = vadd.f32 %v1088_v58, %v1066_v63  ;;  %v1096_v52 = vadd.f32 %v1094_v48, %v1072_v57  ;;  %v4231_v0 = vld [vmem:[#allocation164_spill] sm:$0xff]  ;;  %v4234_v48 = vld [vmem:[#allocation165_spill] sm:$0xff] }
 0x164   : > { %v1102_v47 = vadd.f32 %v1100_v5, %v1078_v45  ;;  %v1108_v18 = vadd.f32 %v1106_v7, %v1084_v1  ;;  %v1127_v60 = vadd.f32 %v1125_v28, %v1091_v6  ;;  %v1133_v21 = vadd.f32 %v1131_v11, %v1097_v14  ;;  %v1203_v45 = vpop.permute.xlu1 %1202  ;;  %v1201_v6 = vpop.permute.xlu0 %1200 }
 0x165   : > { %v1139_v27 = vadd.f32 %v1137_v59, %v1103_v41  ;;  %v1145_v61 = vadd.f32 %v1143_v50, %v1109_v54  ;;  %v4213_v34 = vmov %v4207_v15  ;;  %v4215_v8 = vmov %v4208_v38  ;;  %v4229_v54 = vld [vmem:[#allocation163_spill] sm:$0xff] }
 0x166   : > { %v1124_v39 = vmul.f32 %v4213_v34, %v1114_v25  ;;  %v1130_v3 = vmul.f32 %v4215_v8, %v1114_v25  ;;  %v4216_v32 = vmov %v4209_v37  ;;  %v4217_v33 = vmov %v4210_v49 }
 0x167   : > { %v1136_v20 = vmul.f32 %v4216_v32, %v1114_v25  ;;  %v1142_v29 = vmul.f32 %v4217_v33, %v1114_v25  ;;  %v1121_v23 = vsel %vm206_vm5, 0.0, %v1119_v36  ;;  %v1151_v56 = vadd.f32 %v4219_v30, %v1127_v60 }
 0x168   : > { %v1157_v44 = vadd.f32 %v4220_v9, %v1133_v21  ;;  %v1163_v42 = vadd.f32 %v4221_v12, %v1139_v27  ;;  %v1126_v24 = vadd.f32 %v1124_v39, %v1090_v22  ;;  %v1132_v51 = vadd.f32 %v1130_v3, %v1096_v52  ;;  %v1209_v3 = vpop.permute.xlu1 %1208 }
 0x169   : > { %v1138_v53 = vadd.f32 %v1136_v20, %v1102_v47  ;;  %v1144_v26 = vadd.f32 %v1142_v29, %v1108_v18  ;;  %v1169_v35 = vadd.f32 %v4222_v16, %v1145_v61  ;;  %v4223_v10 = vstv %s4211_s21  ;;  %v4250_v16 = vld [vmem:[#allocation167_spill] sm:$0xff] }
 0x16a   : > { %v1173_v43 = vmul.f32 %v4223_v10, %v1121_v23  ;;  %v4224_v63 = vstv %s4212_s20  ;;  %v4225_v57 = vstv %s4214_s3  ;;  %v4226_v14 = vstv %s4218_s14 }
 0x16b   : > { %v1179_v40 = vmul.f32 %v4224_v63, %v1121_v23  ;;  %v1185_v4 = vmul.f32 %v4225_v57, %v1121_v23  ;;  %v1191_v41 = vmul.f32 %v4226_v14, %v1121_v23  ;;  %v1150_v1 = vadd.f32 %v4227_v13, %v1126_v24 }
 0x16c   : > { %v1156_v55 = vadd.f32 %v4229_v54, %v1132_v51  ;;  %v1162_v25 = vadd.f32 %v4231_v0, %v1138_v53  ;;  %v1175_v62 = vadd.f32 %v1173_v43, %v1151_v56  ;;  %v1168_v17 = vadd.f32 %v4234_v48, %v1144_v26  ;;  %v4249_v53 = vld [vmem:[#allocation166_spill] sm:$0xff]  ;;  %v1207_v0 = vpop.permute.xlu0 %1206 }
 0x16d   : > { %v1181_v58 = vadd.f32 %v1179_v40, %v1157_v44  ;;  %v1187_v2 = vadd.f32 %v1185_v4, %v1163_v42  ;;  %v1193_v5 = vadd.f32 %v1191_v41, %v1169_v35  ;;  %v1120_v31 = vsel %vm206_vm5, 0.0, %v1117_v19  ;;  %v4257_v48 = vld [vmem:[#allocation170_spill] sm:$0xff] }
 0x16e   : > { %v1205_v7 = vsel %vm205_vm4, 0.0, %v1203_v45  ;;  %v1204_v15 = vsel %vm205_vm4, 0.0, %v1201_v6  ;;  %v4235_v28 = vmov %v4223_v10  ;;  %v4236_v11 = vmov %v4224_v63  ;;  %v4251_v10 = vld [vmem:[#allocation168_spill] sm:$0xff]  ;;  %v4252_v45 = vld [vmem:[#allocation169_spill] sm:$0xff] }
 0x16f   : > { %v1172_v38 = vmul.f32 %v4235_v28, %v1120_v31  ;;  %v1178_v37 = vmul.f32 %v4236_v11, %v1120_v31  ;;  %v4237_v59 = vmov %v4225_v57  ;;  %v4238_v50 = vmov %v4226_v14 }
 0x170   : > { %v1184_v49 = vmul.f32 %v4237_v59, %v1120_v31  ;;  %v1190_v36 = vmul.f32 %v4238_v50, %v1120_v31  ;;  %v4239_v22 = vstv %s4228_s29  ;;  %v4240_v19 = vstv %s4230_s24  ;;  %v4261_v50 = vld [vmem:[#allocation171_spill] sm:$0xff] }
 0x171   : > { %v1215_v52 = vmul.f32 %v4239_v22, %v1205_v7  ;;  %v1221_v47 = vmul.f32 %v4240_v19, %v1205_v7  ;;  %v4241_v18 = vstv %s4232_s17  ;;  %v4243_v21 = vstv %s4233_s28 }
 0x172   : > { %v1227_v60 = vmul.f32 %v4241_v18, %v1205_v7  ;;  %v1233_v27 = vmul.f32 %v4243_v21, %v1205_v7  ;;  %v1174_v61 = vadd.f32 %v1172_v38, %v1150_v1  ;;  %v1180_v34 = vadd.f32 %v1178_v37, %v1156_v55 }
 0x173   : > { %v1186_v39 = vadd.f32 %v1184_v49, %v1162_v25  ;;  %v1192_v8 = vadd.f32 %v1190_v36, %v1168_v17  ;;  %v1217_v32 = vadd.f32 %v1215_v52, %v1175_v62  ;;  %v1223_v20 = vadd.f32 %v1221_v47, %v1181_v58  ;;  %v1571_v25 = vld [vmem:[%s4248_s16 + $0x18] sm:$0xff]  ;;  %v1575_v62 = vld [vmem:[%s4248_s16 + $0x28] sm:$0xff] }
 0x174   : > { %v1229_v33 = vadd.f32 %v1227_v60, %v1187_v2  ;;  %v1235_v29 = vadd.f32 %v1233_v27, %v1193_v5  ;;  %v4244_v23 = vmov %v4239_v22  ;;  %v4245_v56 = vmov %v4240_v19  ;;  %v4258_v5 = vld [vmem:[#allocation54_spill] sm:$0xff]  ;;  %v1653_v19 = vld [vmem:[%s4248_s16 + $0x8] sm:$0xff] }
 0x175   : > { %v1214_v30 = vmul.f32 %v4244_v23, %v1204_v15  ;;  %v1220_v9 = vmul.f32 %v4245_v56, %v1204_v15  ;;  %v4246_v44 = vmov %v4241_v18  ;;  %v4247_v42 = vmov %v4243_v21  ;;  %v1578_v23 = vld [vmem:[%s4248_s16 + $0x30] sm:$0xff] }
 0x176   : > { %v1226_v12 = vmul.f32 %v4246_v44, %v1204_v15  ;;  %v1232_v24 = vmul.f32 %v4247_v42, %v1204_v15  ;;  %v1211_v51 = vsel %vm206_vm5, 0.0, %v1209_v3  ;;  %v1241_v26 = vadd.f32 %v4249_v53, %v1217_v32  ;;  %v1579_v15 = vld [vmem:[%s4248_s16 + $0x38] sm:$0xff] }
 0x177   : > { %v1247_v35 = vadd.f32 %v4250_v16, %v1223_v20  ;;  %v1253_v43 = vadd.f32 %v4251_v10, %v1229_v33  ;;  %v1216_v63 = vadd.f32 %v1214_v30, %v1174_v61  ;;  %v1222_v40 = vadd.f32 %v1220_v9, %v1180_v34  ;;  %v1574_v20 = vld [vmem:[%s4248_s16 + $0x20] sm:$0xff] }
 0x178   : > { %v1228_v57 = vadd.f32 %v1226_v12, %v1186_v39  ;;  %v1234_v4 = vadd.f32 %v1232_v24, %v1192_v8  ;;  %v1259_v6 = vadd.f32 %v4252_v45, %v1235_v29  ;;  %v4253_v14 = vstv %s2809_s9  ;;  %s4267_s9 = sld [smem:[#allocation18_spill]]  ;;  %v1654_v12 = vld [vmem:[%s4248_s16] sm:$0xff] }
 0x179   : > { %v1263_v41 = vmul.f32 %v4253_v14, %v1211_v51  ;;  %v4254_v13 = vstv %s2811_s30  ;;  %v4255_v54 = vstv %s2817_s27  ;;  %v4256_v58 = vstv %s2819_s26  ;;  %s3486_s26 = scalar_lea.sflag [#allocation3], %s188_s23 }
 0x17a   : > { %v1269_v1 = vmul.f32 %v4254_v13, %v1211_v51  ;;  %v1275_v55 = vmul.f32 %v4255_v54, %v1211_v51  ;;  %v1281_v2 = vmul.f32 %v4256_v58, %v1211_v51  ;;  %v1240_v17 = vadd.f32 %v4257_v48, %v1216_v63 }
 0x17b   : > { %v4259_v31 = vstv %s2777_s12  ;;  %v1265_v28 = vadd.f32 %v1263_v41, %v1241_v26  ;;  %v4260_v37 = vstv %s2779_s2  ;;  %v1246_v36 = vadd.f32 %v4261_v50, %v1222_v40  ;;  %s4262_s12 = sld [smem:[#allocation15_spill]]  ;;  %s190_s2 = scalar_lea.vmem [#allocation7], %s1415_s1 }
 0x17c   : > { %v1250_v7 = vmul.f32 %v4259_v31, %v4258_v5  ;;  %v1271_v38 = vadd.f32 %v1269_v1, %v1247_v35  ;;  %v1277_v11 = vadd.f32 %v1275_v55, %v1253_v43  ;;  %v1256_v59 = vmul.f32 %v4260_v37, %v4258_v5  ;;  %s1323_s10 = sshll.u32 %s190_s2, 4  ;;  %s3482_s10 = int_to_ptr.vmem [resolvable:$true] %s1323_s10 }
 0x17d   : > { %v1283_v49 = vadd.f32 %v1281_v2, %v1259_v6  ;;  %v1210_v52 = vsel %vm206_vm5, 0.0, %v1207_v0  ;;  %v1285_v47 = vadd.f32 %v1653_v19, %v1265_v28  ;;  %v4263_v61 = vmov %v4253_v14  ;;  %s1685_s0 = scalar_lea.vmem %s3482_s10, 1024  ;;  %p1692_p8 = scmp.lt.s32.totalorder %s3482_s10, %s1690_s7 }
 0x17e   : > { %v1252_v22 = vadd.f32 %v1250_v7, %v1228_v57  ;;  %v1291_v18 = vadd.f32 %v1571_v25, %v1271_v38  ;;  %v1298_v60 = vadd.f32 %v1575_v62, %v1277_v11  ;;  %v1258_v21 = vadd.f32 %v1256_v59, %v1234_v4  ;;  %p1686_p10 = scmp.ne.s32.totalorder %s3482_s10, %s1685_s0  ;;  %p4269_p12 = scmp.ne.s32.totalorder %s4267_s9, 0 }
 0x17f   : > { %v1305_v27 = vadd.f32 %v1579_v15, %v1283_v49  ;;  %v1262_v34 = vmul.f32 %v4263_v61, %v1210_v52  ;;  %v4264_v39 = vmov %v4254_v13  ;;  %v4265_v3 = vmov %v4255_v54  ;;  %1287 = vst [vmem:[%s190_s2 + $0x8] sm:$0xff] %v1285_v47  ;;  %p1693_p11 = scmp.lt.s32.totalorder %s1691_s8, %s1685_s0 }
 0x180   : > { %v1268_v8 = vmul.f32 %v4264_v39, %v1210_v52  ;;  %v1274_v32 = vmul.f32 %v4265_v3, %v1210_v52  ;;  %1573 = vst [vmem:[%s190_s2 + $0x18] sm:$0xff] %v1291_v18  ;;  %1577 = vst [vmem:[%s190_s2 + $0x28] sm:$0xff] %v1298_v60  ;;  %v4266_v33 = vmov %v4256_v58  ;;  %p1687_p0 = pnand %p1686_p10, %p4269_p12 }
 0x181   : > { %v1280_v29 = vmul.f32 %v4266_v33, %v1210_v52  ;;  %s1588_s18 = sshll.u32 %s4262_s12, 10  ;;  %1581 = vst [vmem:[%s190_s2 + $0x38] sm:$0xff] %v1305_v27  ;;  %v1264_v30 = vadd.f32 %v1262_v34, %v1240_v17  ;;  %p1694_p13 = por %p1693_p11, %p1692_p8 }
 0x182   : > { %v1270_v56 = vadd.f32 %v1268_v8, %v1246_v36  ;;  %v1276_v9 = vadd.f32 %v1274_v32, %v1252_v22  ;;  %s3480_s19 = scalar_lea.hbm %s4268_s5, %s1588_s18  ;;  %p1688_p7 = pneg %p1687_p0 }
 0x183   : > { %v1282_v44 = vadd.f32 %v1280_v29, %v1258_v21  ;;  %v1284_v42 = vadd.f32 %v1654_v12, %v1264_v30 }
 0x184   : > { %v1290_v24 = vadd.f32 %v1570_v46, %v1270_v56  ;;  %v1297_v51 = vadd.f32 %v1574_v20, %v1276_v9  ;;  %p1695_p1 = pnand %p1694_p13, %p1688_p7 }
 0x185   : > { %v1304_v53 = vadd.f32 %v1578_v23, %v1282_v44  ;;  %1286 = vst [vmem:[%s190_s2] sm:$0xff] %v1284_v42 }
 0x186   : > { %1572 = vst [vmem:[%s190_s2 + $0x10] sm:$0xff] %v1290_v24  ;;  %1576 = vst [vmem:[%s190_s2 + $0x20] sm:$0xff] %v1297_v51 }
 0x187   : > { %1580 = vst [vmem:[%s190_s2 + $0x30] sm:$0xff] %v1304_v53 }
 0x188   : > { %1698 = shalt.err (!%p1695_p1)
}
 0x189   : > { %s1699_s22 = scalar_lea.hbm %s3480_s19, 1024  ;;  %s1703_s15 = scalar_lea.hbm %s4268_s5, 2048 }
 0x18a   : > { %p1700_p2 = scmp.ne.s32.totalorder %s3480_s19, %s1699_s22  ;;  %p1704_p9 = scmp.lt.u32.totalorder %s3480_s19, %s4268_s5 }
 0x18b   : > { %p1705_p5 = scmp.lt.u32.totalorder %s1703_s15, %s1699_s22  ;;  %p1707_p10 = scmp.lt.u32.totalorder %s1699_s22, %s3480_s19 }
 0x18c   : > { %p1701_p3 = pnand %p1700_p2, %p4269_p12 }
 0x18d   : > { %p1706_p6 = por %p1705_p5, %p1704_p9 }
 0x18e   : > { %p1702_p4 = pneg %p1701_p3 }
 0x18f   : > { %p1708_p0 = por %p1707_p10, %p1706_p6 }
 0x191   : > { %p1709_p7 = pnand %p1708_p0, %p1702_p4 }
 0x193   : > { %1712 = shalt.err (!%p1709_p7)
}
 0x194   : > { %s1762_s20 = smov 128   ;;  %s1763_s3 = smov 8  }
 0x195   : > { %1597 = dma.vmem_to_hbm [thread:$0]  (%p4269_p12), %s3482_s10, 1024, %s3480_s19, %s3486_s26, %s1762_s20, %s1762_s20, %s1763_s3  }
 0x196 PF: > { %s4270_s14 = sld [smem:[#allocation14_spill]]  ;;  %s4271_s29 = sld [smem:[#allocation11_spill]] }
 0x197   : > { %s4272_s24 = sld [smem:[#allocation19_spill]] }
 0x19c   : > { %p1614_p8 = scmp.ge.s32.totalorder %s4270_s14, 2  ;;  %s1338_s17 = sand.u32 1, %s4271_s29  }
 0x19d   : > { %p4273_p11 = scmp.ne.s32.totalorder %s4272_s24, 0  ;;  %s1339_s28 = scalar_lea.sflag [#allocation3], %s1338_s17 }
 0x19f   : > { %p1607_p13 = pnand %p1614_p8, %p4273_p11 }
 0x1a1   : > { %1738 = dma.done.wait (!%p1607_p13), %s1339_s28, 1024  }
 0x1a2   : > { %1740 = vsyncadd (!%p1607_p13), %s1339_s28, 4294966272  ;;  %s4274_s15 = sld [smem:[#allocation16_spill]]  ;;  %s4275_s12 = sld [smem:[#allocation12_spill]] }
 0x1a3   : > { %s4276_s13 = sld [smem:[#allocation13_spill]]  ;;  %s4277_s14 = sld [smem:[#allocation17_spill]] }
 0x1a8   : > { %p15_p1 = scmp.ge.s32.totalorder %s4274_s15, 4  }
 0x1aa   :  { %17 = sbr.rel (!%p15_p1) target bundleno = 10 (0xa), region = 82 }
 0x1b1   :  { %1344 = vsyncpa [#allocation3], 1 }
 0x1b2   :  { %1346 = vsyncpa [#allocation3 + $0x1], 1 }
 0x1b3   :  { %1347 = vsyncpa [#allocation4], 1 }
 0x1b4   :  { %1349 = vsyncpa [#allocation4 + $0x1], 1 }
 0x1b5   :  { %1350 = vsyncpa [#allocation6], 1 }

</bundles_post_ra>
